<compile_context>
chip_gen: v6e
topology: v6e:2x2x1
jax: 0.10.0
libtpu: 0.0.40
codegen_flags: <defaults>
</compile_context>

<pallas_src>
import functools
import math

import jax
import jax.numpy as jnp
from jax.experimental import pallas as pl
from jax.experimental.pallas import tpu as pltpu

# ---------------- model hyper-params (small, consistent with the module) ----------------
VOCAB = 1000
EMBED = 128
HEADS = 4
HEAD_DIM = EMBED // HEADS
FFN = 4 * EMBED
NUM_LAYERS = 2
MAX_LEN = 32
BATCH = 2
SEQ = 8
LN_EPS = 1e-5


def _round_up(x, m):
    return (x + m - 1) // m * m


VOCAB_PAD = _round_up(VOCAB, 128)  # 1024: lane-dense fc_out weight / output


# ---------------- fused Pallas kernel ----------------
def _layer_norm(x, gamma, beta):
    # PyTorch nn.LayerNorm: biased variance over last dim, eps=1e-5, affine. All f32.
    mu = jnp.mean(x, axis=-1, keepdims=True)
    xc = x - mu
    var = jnp.mean(xc * xc, axis=-1, keepdims=True)
    return xc * jax.lax.rsqrt(var + LN_EPS) * gamma + beta


def decoder_kernel(x_ref,
                   wqkv_ref, bqkv_ref, wo_ref, bo_ref,
                   ln1g_ref, ln1b_ref,
                   w1_ref, b1_ref, w2_ref, b2_ref,
                   ln2g_ref, ln2b_ref,
                   fcw_ref, fcb_ref,
                   o_ref, *, n_batch, seq_len):
    rows = n_batch * seq_len
    x = x_ref[...]                                           # (N*S, E) float32

    def split_heads(m):                                      # (N*S, E) -> (N*H, S, Dh)
        m = m.reshape(n_batch, seq_len, HEADS, HEAD_DIM)
        m = jnp.transpose(m, (0, 2, 1, 3))
        return m.reshape(n_batch * HEADS, seq_len, HEAD_DIM)

    for l in range(NUM_LAYERS):                              # static unroll over layers
        # Fused QKV projection: one wide bf16 MXU pass, f32 accumulation.
        qkv = jnp.dot(x.astype(jnp.bfloat16), wqkv_ref[l],
                      preferred_element_type=jnp.float32) + bqkv_ref[l]       # (N*S, 3E)

        # Lane-aligned 128-wide slices; the 1/sqrt(E) scale is pre-folded into Q.
        q = split_heads(qkv[:, :EMBED]).astype(jnp.bfloat16)                  # (N*H, S, Dh)
        k = split_heads(qkv[:, EMBED:2 * EMBED]).astype(jnp.bfloat16)
        v = split_heads(qkv[:, 2 * EMBED:]).astype(jnp.bfloat16)

        # Batched attention over the merged (batch, head) axis: 2 batched matmuls + softmax.
        energy = jnp.einsum("gqd,gkd->gqk", q, k,
                            preferred_element_type=jnp.float32)               # (N*H, S, S)
        energy = energy - jnp.max(energy, axis=-1, keepdims=True)
        p = jnp.exp(energy)
        p = p * pl.reciprocal(jnp.sum(p, axis=-1, keepdims=True), approx=True)
        ctx = jnp.einsum("gqk,gkd->gqd", p.astype(jnp.bfloat16), v,
                         preferred_element_type=jnp.float32)                  # (N*H, S, Dh)

        # Merge heads back to (N*S, E) and apply the output projection.
        ctx = ctx.reshape(n_batch, HEADS, seq_len, HEAD_DIM)
        ctx = jnp.transpose(ctx, (0, 2, 1, 3)).reshape(rows, EMBED)
        attn = jnp.dot(ctx.astype(jnp.bfloat16), wo_ref[l],
                       preferred_element_type=jnp.float32) + bo_ref[l]

        x1 = _layer_norm(attn + x, ln1g_ref[l], ln1b_ref[l])                  # f32

        ff = jnp.dot(x1.astype(jnp.bfloat16), w1_ref[l],
                     preferred_element_type=jnp.float32) + b1_ref[l]
        ff = jnp.maximum(ff, 0.0)
        ff = jnp.dot(ff.astype(jnp.bfloat16), w2_ref[l],
                     preferred_element_type=jnp.float32) + b2_ref[l]

        x = _layer_norm(ff + x1, ln2g_ref[l], ln2b_ref[l])                    # f32

    # Final projection to the lane-dense padded vocab (1024 = 8*128 -> unmasked stores).
    o_ref[...] = jnp.dot(x.astype(jnp.bfloat16), fcw_ref[...],
                         preferred_element_type=jnp.float32) + fcb_ref[...]


# ---------------- wrapper ----------------
def decoder_forward(kparams, tokens):
    N, S = tokens.shape
    # Embedding gather + positional embedding (glue, plain JAX). Dropout = identity.
    x = jnp.take(kparams["word_emb"], tokens, axis=0) + kparams["pos_emb"][:S][None, :, :]
    x = x.reshape(N * S, EMBED).astype(jnp.float32)

    vmem = pl.BlockSpec(memory_space=pltpu.MemorySpace.VMEM)  # whole-array, VMEM-resident
    kernel = functools.partial(decoder_kernel, n_batch=N, seq_len=S)

    logits = pl.pallas_call(
        kernel,
        out_shape=jax.ShapeDtypeStruct((N * S, VOCAB_PAD), jnp.float32),
        in_specs=[vmem] * 15,
        out_specs=vmem,
    )(
        x,
        kparams["wqkv"], kparams["bqkv"], kparams["wo"], kparams["bo"],
        kparams["ln1_g"], kparams["ln1_b"],
        kparams["w1"], kparams["b1"], kparams["w2"], kparams["b2"],
        kparams["ln2_g"], kparams["ln2_b"],
        kparams["fc_w"], kparams["fc_b"],
    )
    return logits.reshape(N, S, VOCAB_PAD)[..., :VOCAB]


# ---------------- parameter init (raw, PyTorch-like layout) ----------------
def init_params(key):
    keys = iter(jax.random.split(key, 4 + NUM_LAYERS * 12))

    def nrm(shape, scale=0.02):
        return jax.random.normal(next(keys), shape, jnp.float32) * scale

    def mat(shape):
        # Matmul weights are drawn on the bf16 grid so the kernel's bf16 storage is
        # lossless and the f32 reference uses numerically identical weight values.
        return nrm(shape).astype(jnp.bfloat16).astype(jnp.float32)

    layers = []
    for _ in range(NUM_LAYERS):
        layers.append(dict(
            wq=mat((EMBED, EMBED)), bq=nrm((EMBED,)),
            wk=mat((EMBED, EMBED)), bk=nrm((EMBED,)),
            wv=mat((EMBED, EMBED)), bv=nrm((EMBED,)),
            wo=mat((EMBED, EMBED)), bo=nrm((EMBED,)),
            ln1_g=jnp.ones((EMBED,), jnp.float32), ln1_b=jnp.zeros((EMBED,), jnp.float32),
            w1=mat((EMBED, FFN)), b1=nrm((FFN,)),
            w2=mat((FFN, EMBED)), b2=nrm((EMBED,)),
            ln2_g=jnp.ones((EMBED,), jnp.float32), ln2_b=jnp.zeros((EMBED,), jnp.float32),
        ))
    return dict(
        word_emb=nrm((VOCAB, EMBED)),
        pos_emb=nrm((MAX_LEN, EMBED)),
        fc_w=mat((EMBED, VOCAB)),
        fc_b=nrm((VOCAB,)),
        layers=layers,
    )


# ---------------- one-time kernel-param preparation (NOT on the per-call path) ----------------
def prepare_params(raw):
    """Stack per-layer weights, fold 1/sqrt(E) into Q, cast matmul weights to bf16,
    and pad fc_out to the lane-dense vocab. Done once at init time."""
    scale = 1.0 / math.sqrt(EMBED)  # reference scales by sqrt(embed_size), not head_dim
    L = raw["layers"]

    def stack(fn, dtype=jnp.float32):
        return jnp.stack([fn(l) for l in L], axis=0).astype(dtype)

    fc_w = jnp.pad(raw["fc_w"], ((0, 0), (0, VOCAB_PAD - VOCAB)))
    fc_b = jnp.pad(raw["fc_b"], (0, VOCAB_PAD - VOCAB))

    return dict(
        word_emb=raw["word_emb"],
        pos_emb=raw["pos_emb"],
        wqkv=stack(lambda l: jnp.concatenate([l["wq"] * scale, l["wk"], l["wv"]], axis=1),
                   jnp.bfloat16),
        bqkv=stack(lambda l: jnp.concatenate([l["bq"] * scale, l["bk"], l["bv"]])[None, :]),
        wo=stack(lambda l: l["wo"], jnp.bfloat16),
        bo=stack(lambda l: l["bo"][None, :]),
        ln1_g=stack(lambda l: l["ln1_g"][None, :]),
        ln1_b=stack(lambda l: l["ln1_b"][None, :]),
        w1=stack(lambda l: l["w1"], jnp.bfloat16),
        b1=stack(lambda l: l["b1"][None, :]),
        w2=stack(lambda l: l["w2"], jnp.bfloat16),
        b2=stack(lambda l: l["b2"][None, :]),
        ln2_g=stack(lambda l: l["ln2_g"][None, :]),
        ln2_b=stack(lambda l: l["ln2_b"][None, :]),
        fc_w=fc_w.astype(jnp.bfloat16),
        fc_b=fc_b[None, :],
    )


# ---------------- pure-JAX f32 reference (follows the PyTorch module) ----------------
def _ref_forward(raw, tokens):
    N, S = tokens.shape
    x = jnp.take(raw["word_emb"], tokens, axis=0) + raw["pos_emb"][:S][None, :, :]

    def ln(z, g, b):
        mu = jnp.mean(z, -1, keepdims=True)
        var = jnp.mean((z - mu) ** 2, -1, keepdims=True)
        return (z - mu) / jnp.sqrt(var + LN_EPS) * g + b

    for lyr in raw["layers"]:
        q = x @ lyr["wq"] + lyr["bq"]
        k = x @ lyr["wk"] + lyr["bk"]
        v = x @ lyr["wv"] + lyr["bv"]
        q = jnp.transpose(q.reshape(N, S, HEADS, HEAD_DIM), (0, 2, 1, 3))
        k = jnp.transpose(k.reshape(N, S, HEADS, HEAD_DIM), (0, 2, 1, 3))
        v = jnp.transpose(v.reshape(N, S, HEADS, HEAD_DIM), (0, 2, 1, 3))
        e = jnp.einsum("nhqd,nhkd->nhqk", q, k) / math.sqrt(EMBED)
        a = jax.nn.softmax(e, axis=-1)
        o = jnp.einsum("nhqk,nhkd->nhqd", a, v)
        o = jnp.transpose(o, (0, 2, 1, 3)).reshape(N, S, EMBED)
        o = o @ lyr["wo"] + lyr["bo"]
        x1 = ln(o + x, lyr["ln1_g"], lyr["ln1_b"])
        ff = jnp.maximum(x1 @ lyr["w1"] + lyr["b1"], 0.0)
        ff = ff @ lyr["w2"] + lyr["b2"]
        x = ln(ff + x1, lyr["ln2_g"], lyr["ln2_b"])
    return x @ raw["fc_w"] + raw["fc_b"]


if __name__ == "__main__":
    key = jax.random.PRNGKey(0)
    pkey, tkey = jax.random.split(key)
    raw_params = init_params(pkey)
    kernel_params = prepare_params(raw_params)   # one-time: stack / bf16 / fold scale / pad
    tokens = jax.random.randint(tkey, (BATCH, SEQ), 0, VOCAB, dtype=jnp.int32)

    logits = jax.block_until_ready(decoder_forward(kernel_params, tokens))
    assert logits.shape == (BATCH, SEQ, VOCAB)

    ref = _ref_forward(raw_params, tokens)
    max_err = float(jnp.max(jnp.abs(logits - ref)))
    # Tolerance covers bf16 matmul operands (activations) + the approx softmax reciprocal;
    # weights themselves are on the bf16 grid, so their storage is lossless.
    assert jnp.allclose(logits, ref, atol=1e-2, rtol=1e-2), max_err

    print("KERNEL_OK")
</pallas_src>

<mosaic_0001>
module attributes {stable_mosaic.version = 11 : i64} {
  func.func @decoder_kernel(%arg0: memref<16x128xf32, #tpu.memory_space<vmem>>, %arg1: memref<2x128x384xbf16, #tpu.memory_space<vmem>>, %arg2: memref<2x1x384xf32, #tpu.memory_space<vmem>>, %arg3: memref<2x128x128xbf16, #tpu.memory_space<vmem>>, %arg4: memref<2x1x128xf32, #tpu.memory_space<vmem>>, %arg5: memref<2x1x128xf32, #tpu.memory_space<vmem>>, %arg6: memref<2x1x128xf32, #tpu.memory_space<vmem>>, %arg7: memref<2x128x512xbf16, #tpu.memory_space<vmem>>, %arg8: memref<2x1x512xf32, #tpu.memory_space<vmem>>, %arg9: memref<2x512x128xbf16, #tpu.memory_space<vmem>>, %arg10: memref<2x1x128xf32, #tpu.memory_space<vmem>>, %arg11: memref<2x1x128xf32, #tpu.memory_space<vmem>>, %arg12: memref<2x1x128xf32, #tpu.memory_space<vmem>>, %arg13: memref<128x1024xbf16, #tpu.memory_space<vmem>>, %arg14: memref<1x1024xf32, #tpu.memory_space<vmem>>, %arg15: memref<16x1024xf32, #tpu.memory_space<vmem>>) attributes {dimension_semantics = [], scalar_prefetch = 0 : i64, scratch_operands = 0 : i64, tpu.core_type = #tpu.core_type<tc>} {
    %c0 = arith.constant 0 : index
    %c0_0 = arith.constant 0 : index
    %0 = vector.load %arg0[%c0, %c0_0] : memref<16x128xf32, #tpu.memory_space<vmem>>, vector<16x128xf32>
    %1 = arith.truncf %0 : vector<16x128xf32> to vector<16x128xbf16>
    %c0_1 = arith.constant 0 : index
    %c0_2 = arith.constant 0 : index
    %c0_3 = arith.constant 0 : index
    %2 = vector.load %arg1[%c0_1, %c0_2, %c0_3] : memref<2x128x384xbf16, #tpu.memory_space<vmem>>, vector<1x128x384xbf16>
    %3 = vector.shape_cast %2 : vector<1x128x384xbf16> to vector<128x384xbf16>
    %cst = arith.constant dense<0.000000e+00> : vector<16x384xf32>
    %4 = tpu.matmul %1, %3, %cst {dimension_numbers = #tpu.dot_dimension_numbers<[1], [0], [0], [1], [0, 0, 1, 1], [], []>} : vector<16x128xbf16>, vector<128x384xbf16>, vector<16x384xf32> -> vector<16x384xf32>
    %c0_4 = arith.constant 0 : index
    %c0_5 = arith.constant 0 : index
    %c0_6 = arith.constant 0 : index
    %5 = vector.load %arg2[%c0_4, %c0_5, %c0_6] : memref<2x1x384xf32, #tpu.memory_space<vmem>>, vector<1x1x384xf32>
    %6 = vector.shape_cast %5 : vector<1x1x384xf32> to vector<1x384xf32>
    %7 = vector.broadcast %6 : vector<1x384xf32> to vector<16x384xf32>
    %8 = arith.addf %4, %7 : vector<16x384xf32>
    %9 = vector.extract_strided_slice %8 {offsets = [0, 0], sizes = [16, 128], strides = [1, 1]} : vector<16x384xf32> to vector<16x128xf32>
    %10 = vector.shape_cast %9 : vector<16x128xf32> to vector<2x8x4x32xf32>
    %11 = tpu.transpose %10, [0, 2, 1, 3] : vector<2x8x4x32xf32> -> vector<2x4x8x32xf32>
    %12 = vector.shape_cast %11 : vector<2x4x8x32xf32> to vector<8x8x32xf32>
    %13 = arith.truncf %12 : vector<8x8x32xf32> to vector<8x8x32xbf16>
    %14 = vector.extract_strided_slice %8 {offsets = [0, 128], sizes = [16, 128], strides = [1, 1]} : vector<16x384xf32> to vector<16x128xf32>
    %15 = vector.shape_cast %14 : vector<16x128xf32> to vector<2x8x4x32xf32>
    %16 = tpu.transpose %15, [0, 2, 1, 3] : vector<2x8x4x32xf32> -> vector<2x4x8x32xf32>
    %17 = vector.shape_cast %16 : vector<2x4x8x32xf32> to vector<8x8x32xf32>
    %18 = arith.truncf %17 : vector<8x8x32xf32> to vector<8x8x32xbf16>
    %19 = vector.extract_strided_slice %8 {offsets = [0, 256], sizes = [16, 128], strides = [1, 1]} : vector<16x384xf32> to vector<16x128xf32>
    %20 = vector.shape_cast %19 : vector<16x128xf32> to vector<2x8x4x32xf32>
    %21 = tpu.transpose %20, [0, 2, 1, 3] : vector<2x8x4x32xf32> -> vector<2x4x8x32xf32>
    %22 = vector.shape_cast %21 : vector<2x4x8x32xf32> to vector<8x8x32xf32>
    %23 = arith.truncf %22 : vector<8x8x32xf32> to vector<8x8x32xbf16>
    "tpu.trace_start"() <{level = 10 : i32, message = "gqd,gkd->gqk"}> : () -> ()
    %cst_7 = arith.constant dense<0.000000e+00> : vector<8x8x8xf32>
    %24 = tpu.matmul %13, %18, %cst_7 {dimension_numbers = #tpu.dot_dimension_numbers<[2], [2], [1], [1], [0, 0, 0, 1, 1, 1], [0], [0]>} : vector<8x8x32xbf16>, vector<8x8x32xbf16>, vector<8x8x8xf32> -> vector<8x8x8xf32>
    "tpu.trace_stop"() : () -> ()
    %cst_8 = arith.constant dense<0xFF800000> : vector<8x8xf32>
    %25 = vector.multi_reduction <maximumf>, %24, %cst_8 [2] : vector<8x8x8xf32> to vector<8x8xf32>
    %26 = vector.shape_cast %25 : vector<8x8xf32> to vector<8x8x1xf32>
    %27 = vector.broadcast %26 : vector<8x8x1xf32> to vector<8x8x8xf32>
    %28 = arith.subf %24, %27 : vector<8x8x8xf32>
    %29 = math.exp %28 : vector<8x8x8xf32>
    %cst_9 = arith.constant dense<0.000000e+00> : vector<8x8xf32>
    %30 = vector.multi_reduction <add>, %29, %cst_9 [2] : vector<8x8x8xf32> to vector<8x8xf32>
    %31 = vector.shape_cast %30 : vector<8x8xf32> to vector<8x8x1xf32>
    %32 = tpu.reciprocal %31 {approx = true} : vector<8x8x1xf32> -> vector<8x8x1xf32>
    %33 = vector.broadcast %32 : vector<8x8x1xf32> to vector<8x8x8xf32>
    %34 = arith.mulf %29, %33 : vector<8x8x8xf32>
    %35 = arith.truncf %34 : vector<8x8x8xf32> to vector<8x8x8xbf16>
    "tpu.trace_start"() <{level = 10 : i32, message = "gqk,gkd->gqd"}> : () -> ()
    %cst_10 = arith.constant dense<0.000000e+00> : vector<8x8x32xf32>
    %36 = tpu.matmul %35, %23, %cst_10 {dimension_numbers = #tpu.dot_dimension_numbers<[2], [1], [1], [2], [0, 0, 0, 1, 1, 2], [0], [0]>} : vector<8x8x8xbf16>, vector<8x8x32xbf16>, vector<8x8x32xf32> -> vector<8x8x32xf32>
    "tpu.trace_stop"() : () -> ()
    %37 = vector.shape_cast %36 : vector<8x8x32xf32> to vector<2x4x8x32xf32>
    %38 = tpu.transpose %37, [0, 2, 1, 3] : vector<2x4x8x32xf32> -> vector<2x8x4x32xf32>
    %39 = vector.shape_cast %38 : vector<2x8x4x32xf32> to vector<16x128xf32>
    %40 = arith.truncf %39 : vector<16x128xf32> to vector<16x128xbf16>
    %c0_11 = arith.constant 0 : index
    %c0_12 = arith.constant 0 : index
    %c0_13 = arith.constant 0 : index
    %41 = vector.load %arg3[%c0_11, %c0_12, %c0_13] : memref<2x128x128xbf16, #tpu.memory_space<vmem>>, vector<1x128x128xbf16>
    %42 = vector.shape_cast %41 : vector<1x128x128xbf16> to vector<128x128xbf16>
    %cst_14 = arith.constant dense<0.000000e+00> : vector<16x128xf32>
    %43 = tpu.matmul %40, %42, %cst_14 {dimension_numbers = #tpu.dot_dimension_numbers<[1], [0], [0], [1], [0, 0, 1, 1], [], []>} : vector<16x128xbf16>, vector<128x128xbf16>, vector<16x128xf32> -> vector<16x128xf32>
    %c0_15 = arith.constant 0 : index
    %c0_16 = arith.constant 0 : index
    %c0_17 = arith.constant 0 : index
    %44 = vector.load %arg4[%c0_15, %c0_16, %c0_17] : memref<2x1x128xf32, #tpu.memory_space<vmem>>, vector<1x1x128xf32>
    %45 = vector.shape_cast %44 : vector<1x1x128xf32> to vector<1x128xf32>
    %46 = vector.broadcast %45 : vector<1x128xf32> to vector<16x128xf32>
    %47 = arith.addf %43, %46 : vector<16x128xf32>
    %48 = arith.addf %47, %0 : vector<16x128xf32>
    %c0_18 = arith.constant 0 : index
    %c0_19 = arith.constant 0 : index
    %c0_20 = arith.constant 0 : index
    %49 = vector.load %arg5[%c0_18, %c0_19, %c0_20] : memref<2x1x128xf32, #tpu.memory_space<vmem>>, vector<1x1x128xf32>
    %50 = vector.shape_cast %49 : vector<1x1x128xf32> to vector<1x128xf32>
    %c0_21 = arith.constant 0 : index
    %c0_22 = arith.constant 0 : index
    %c0_23 = arith.constant 0 : index
    %51 = vector.load %arg6[%c0_21, %c0_22, %c0_23] : memref<2x1x128xf32, #tpu.memory_space<vmem>>, vector<1x1x128xf32>
    %52 = vector.shape_cast %51 : vector<1x1x128xf32> to vector<1x128xf32>
    %cst_24 = arith.constant dense<0.000000e+00> : vector<16xf32>
    %53 = vector.multi_reduction <add>, %48, %cst_24 [1] : vector<16x128xf32> to vector<16xf32>
    %54 = vector.shape_cast %53 : vector<16xf32> to vector<16x1xf32>
    %cst_25 = arith.constant 1.280000e+02 : f32
    %55 = vector.broadcast %cst_25 : f32 to vector<16x1xf32>
    %56 = arith.divf %54, %55 : vector<16x1xf32>
    %57 = vector.broadcast %56 : vector<16x1xf32> to vector<16x128xf32>
    %58 = arith.subf %48, %57 : vector<16x128xf32>
    %59 = arith.mulf %58, %58 : vector<16x128xf32>
    %cst_26 = arith.constant dense<0.000000e+00> : vector<16xf32>
    %60 = vector.multi_reduction <add>, %59, %cst_26 [1] : vector<16x128xf32> to vector<16xf32>
    %61 = vector.shape_cast %60 : vector<16xf32> to vector<16x1xf32>
    %cst_27 = arith.constant 1.280000e+02 : f32
    %62 = vector.broadcast %cst_27 : f32 to vector<16x1xf32>
    %63 = arith.divf %61, %62 : vector<16x1xf32>
    %cst_28 = arith.constant 9.99999974E-6 : f32
    %64 = vector.broadcast %cst_28 : f32 to vector<16x1xf32>
    %65 = arith.addf %63, %64 : vector<16x1xf32>
    %66 = math.rsqrt %65 : vector<16x1xf32>
    %67 = vector.broadcast %66 : vector<16x1xf32> to vector<16x128xf32>
    %68 = arith.mulf %58, %67 : vector<16x128xf32>
    %69 = vector.broadcast %50 : vector<1x128xf32> to vector<16x128xf32>
    %70 = arith.mulf %68, %69 : vector<16x128xf32>
    %71 = vector.broadcast %52 : vector<1x128xf32> to vector<16x128xf32>
    %72 = arith.addf %70, %71 : vector<16x128xf32>
    %73 = arith.truncf %72 : vector<16x128xf32> to vector<16x128xbf16>
    %c0_29 = arith.constant 0 : index
    %c0_30 = arith.constant 0 : index
    %c0_31 = arith.constant 0 : index
    %74 = vector.load %arg7[%c0_29, %c0_30, %c0_31] : memref<2x128x512xbf16, #tpu.memory_space<vmem>>, vector<1x128x512xbf16>
    %75 = vector.shape_cast %74 : vector<1x128x512xbf16> to vector<128x512xbf16>
    %cst_32 = arith.constant dense<0.000000e+00> : vector<16x512xf32>
    %76 = tpu.matmul %73, %75, %cst_32 {dimension_numbers = #tpu.dot_dimension_numbers<[1], [0], [0], [1], [0, 0, 1, 1], [], []>} : vector<16x128xbf16>, vector<128x512xbf16>, vector<16x512xf32> -> vector<16x512xf32>
    %c0_33 = arith.constant 0 : index
    %c0_34 = arith.constant 0 : index
    %c0_35 = arith.constant 0 : index
    %77 = vector.load %arg8[%c0_33, %c0_34, %c0_35] : memref<2x1x512xf32, #tpu.memory_space<vmem>>, vector<1x1x512xf32>
    %78 = vector.shape_cast %77 : vector<1x1x512xf32> to vector<1x512xf32>
    %79 = vector.broadcast %78 : vector<1x512xf32> to vector<16x512xf32>
    %80 = arith.addf %76, %79 : vector<16x512xf32>
    %cst_36 = arith.constant 0.000000e+00 : f32
    %81 = vector.broadcast %cst_36 : f32 to vector<16x512xf32>
    %82 = arith.maximumf %80, %81 : vector<16x512xf32>
    %83 = arith.truncf %82 : vector<16x512xf32> to vector<16x512xbf16>
    %c0_37 = arith.constant 0 : index
    %c0_38 = arith.constant 0 : index
    %c0_39 = arith.constant 0 : index
    %84 = vector.load %arg9[%c0_37, %c0_38, %c0_39] : memref<2x512x128xbf16, #tpu.memory_space<vmem>>, vector<1x512x128xbf16>
    %85 = vector.shape_cast %84 : vector<1x512x128xbf16> to vector<512x128xbf16>
    %cst_40 = arith.constant dense<0.000000e+00> : vector<16x128xf32>
    %86 = tpu.matmul %83, %85, %cst_40 {dimension_numbers = #tpu.dot_dimension_numbers<[1], [0], [0], [1], [0, 0, 1, 1], [], []>} : vector<16x512xbf16>, vector<512x128xbf16>, vector<16x128xf32> -> vector<16x128xf32>
    %c0_41 = arith.constant 0 : index
    %c0_42 = arith.constant 0 : index
    %c0_43 = arith.constant 0 : index
    %87 = vector.load %arg10[%c0_41, %c0_42, %c0_43] : memref<2x1x128xf32, #tpu.memory_space<vmem>>, vector<1x1x128xf32>
    %88 = vector.shape_cast %87 : vector<1x1x128xf32> to vector<1x128xf32>
    %89 = vector.broadcast %88 : vector<1x128xf32> to vector<16x128xf32>
    %90 = arith.addf %86, %89 : vector<16x128xf32>
    %91 = arith.addf %90, %72 : vector<16x128xf32>
    %c0_44 = arith.constant 0 : index
    %c0_45 = arith.constant 0 : index
    %c0_46 = arith.constant 0 : index
    %92 = vector.load %arg11[%c0_44, %c0_45, %c0_46] : memref<2x1x128xf32, #tpu.memory_space<vmem>>, vector<1x1x128xf32>
    %93 = vector.shape_cast %92 : vector<1x1x128xf32> to vector<1x128xf32>
    %c0_47 = arith.constant 0 : index
    %c0_48 = arith.constant 0 : index
    %c0_49 = arith.constant 0 : index
    %94 = vector.load %arg12[%c0_47, %c0_48, %c0_49] : memref<2x1x128xf32, #tpu.memory_space<vmem>>, vector<1x1x128xf32>
    %95 = vector.shape_cast %94 : vector<1x1x128xf32> to vector<1x128xf32>
    %cst_50 = arith.constant dense<0.000000e+00> : vector<16xf32>
    %96 = vector.multi_reduction <add>, %91, %cst_50 [1] : vector<16x128xf32> to vector<16xf32>
    %97 = vector.shape_cast %96 : vector<16xf32> to vector<16x1xf32>
    %cst_51 = arith.constant 1.280000e+02 : f32
    %98 = vector.broadcast %cst_51 : f32 to vector<16x1xf32>
    %99 = arith.divf %97, %98 : vector<16x1xf32>
    %100 = vector.broadcast %99 : vector<16x1xf32> to vector<16x128xf32>
    %101 = arith.subf %91, %100 : vector<16x128xf32>
    %102 = arith.mulf %101, %101 : vector<16x128xf32>
    %cst_52 = arith.constant dense<0.000000e+00> : vector<16xf32>
    %103 = vector.multi_reduction <add>, %102, %cst_52 [1] : vector<16x128xf32> to vector<16xf32>
    %104 = vector.shape_cast %103 : vector<16xf32> to vector<16x1xf32>
    %cst_53 = arith.constant 1.280000e+02 : f32
    %105 = vector.broadcast %cst_53 : f32 to vector<16x1xf32>
    %106 = arith.divf %104, %105 : vector<16x1xf32>
    %cst_54 = arith.constant 9.99999974E-6 : f32
    %107 = vector.broadcast %cst_54 : f32 to vector<16x1xf32>
    %108 = arith.addf %106, %107 : vector<16x1xf32>
    %109 = math.rsqrt %108 : vector<16x1xf32>
    %110 = vector.broadcast %109 : vector<16x1xf32> to vector<16x128xf32>
    %111 = arith.mulf %101, %110 : vector<16x128xf32>
    %112 = vector.broadcast %93 : vector<1x128xf32> to vector<16x128xf32>
    %113 = arith.mulf %111, %112 : vector<16x128xf32>
    %114 = vector.broadcast %95 : vector<1x128xf32> to vector<16x128xf32>
    %115 = arith.addf %113, %114 : vector<16x128xf32>
    %116 = arith.truncf %115 : vector<16x128xf32> to vector<16x128xbf16>
    %c1 = arith.constant 1 : index
    %c0_55 = arith.constant 0 : index
    %c0_56 = arith.constant 0 : index
    %117 = vector.load %arg1[%c1, %c0_55, %c0_56] : memref<2x128x384xbf16, #tpu.memory_space<vmem>>, vector<1x128x384xbf16>
    %118 = vector.shape_cast %117 : vector<1x128x384xbf16> to vector<128x384xbf16>
    %cst_57 = arith.constant dense<0.000000e+00> : vector<16x384xf32>
    %119 = tpu.matmul %116, %118, %cst_57 {dimension_numbers = #tpu.dot_dimension_numbers<[1], [0], [0], [1], [0, 0, 1, 1], [], []>} : vector<16x128xbf16>, vector<128x384xbf16>, vector<16x384xf32> -> vector<16x384xf32>
    %c1_58 = arith.constant 1 : index
    %c0_59 = arith.constant 0 : index
    %c0_60 = arith.constant 0 : index
    %120 = vector.load %arg2[%c1_58, %c0_59, %c0_60] : memref<2x1x384xf32, #tpu.memory_space<vmem>>, vector<1x1x384xf32>
    %121 = vector.shape_cast %120 : vector<1x1x384xf32> to vector<1x384xf32>
    %122 = vector.broadcast %121 : vector<1x384xf32> to vector<16x384xf32>
    %123 = arith.addf %119, %122 : vector<16x384xf32>
    %124 = vector.extract_strided_slice %123 {offsets = [0, 0], sizes = [16, 128], strides = [1, 1]} : vector<16x384xf32> to vector<16x128xf32>
    %125 = vector.shape_cast %124 : vector<16x128xf32> to vector<2x8x4x32xf32>
    %126 = tpu.transpose %125, [0, 2, 1, 3] : vector<2x8x4x32xf32> -> vector<2x4x8x32xf32>
    %127 = vector.shape_cast %126 : vector<2x4x8x32xf32> to vector<8x8x32xf32>
    %128 = arith.truncf %127 : vector<8x8x32xf32> to vector<8x8x32xbf16>
    %129 = vector.extract_strided_slice %123 {offsets = [0, 128], sizes = [16, 128], strides = [1, 1]} : vector<16x384xf32> to vector<16x128xf32>
    %130 = vector.shape_cast %129 : vector<16x128xf32> to vector<2x8x4x32xf32>
    %131 = tpu.transpose %130, [0, 2, 1, 3] : vector<2x8x4x32xf32> -> vector<2x4x8x32xf32>
    %132 = vector.shape_cast %131 : vector<2x4x8x32xf32> to vector<8x8x32xf32>
    %133 = arith.truncf %132 : vector<8x8x32xf32> to vector<8x8x32xbf16>
    %134 = vector.extract_strided_slice %123 {offsets = [0, 256], sizes = [16, 128], strides = [1, 1]} : vector<16x384xf32> to vector<16x128xf32>
    %135 = vector.shape_cast %134 : vector<16x128xf32> to vector<2x8x4x32xf32>
    %136 = tpu.transpose %135, [0, 2, 1, 3] : vector<2x8x4x32xf32> -> vector<2x4x8x32xf32>
    %137 = vector.shape_cast %136 : vector<2x4x8x32xf32> to vector<8x8x32xf32>
    %138 = arith.truncf %137 : vector<8x8x32xf32> to vector<8x8x32xbf16>
    "tpu.trace_start"() <{level = 10 : i32, message = "gqd,gkd->gqk"}> : () -> ()
    %cst_61 = arith.constant dense<0.000000e+00> : vector<8x8x8xf32>
    %139 = tpu.matmul %128, %133, %cst_61 {dimension_numbers = #tpu.dot_dimension_numbers<[2], [2], [1], [1], [0, 0, 0, 1, 1, 1], [0], [0]>} : vector<8x8x32xbf16>, vector<8x8x32xbf16>, vector<8x8x8xf32> -> vector<8x8x8xf32>
    "tpu.trace_stop"() : () -> ()
    %cst_62 = arith.constant dense<0xFF800000> : vector<8x8xf32>
    %140 = vector.multi_reduction <maximumf>, %139, %cst_62 [2] : vector<8x8x8xf32> to vector<8x8xf32>
    %141 = vector.shape_cast %140 : vector<8x8xf32> to vector<8x8x1xf32>
    %142 = vector.broadcast %141 : vector<8x8x1xf32> to vector<8x8x8xf32>
    %143 = arith.subf %139, %142 : vector<8x8x8xf32>
    %144 = math.exp %143 : vector<8x8x8xf32>
    %cst_63 = arith.constant dense<0.000000e+00> : vector<8x8xf32>
    %145 = vector.multi_reduction <add>, %144, %cst_63 [2] : vector<8x8x8xf32> to vector<8x8xf32>
    %146 = vector.shape_cast %145 : vector<8x8xf32> to vector<8x8x1xf32>
    %147 = tpu.reciprocal %146 {approx = true} : vector<8x8x1xf32> -> vector<8x8x1xf32>
    %148 = vector.broadcast %147 : vector<8x8x1xf32> to vector<8x8x8xf32>
    %149 = arith.mulf %144, %148 : vector<8x8x8xf32>
    %150 = arith.truncf %149 : vector<8x8x8xf32> to vector<8x8x8xbf16>
    "tpu.trace_start"() <{level = 10 : i32, message = "gqk,gkd->gqd"}> : () -> ()
    %cst_64 = arith.constant dense<0.000000e+00> : vector<8x8x32xf32>
    %151 = tpu.matmul %150, %138, %cst_64 {dimension_numbers = #tpu.dot_dimension_numbers<[2], [1], [1], [2], [0, 0, 0, 1, 1, 2], [0], [0]>} : vector<8x8x8xbf16>, vector<8x8x32xbf16>, vector<8x8x32xf32> -> vector<8x8x32xf32>
    "tpu.trace_stop"() : () -> ()
    %152 = vector.shape_cast %151 : vector<8x8x32xf32> to vector<2x4x8x32xf32>
    %153 = tpu.transpose %152, [0, 2, 1, 3] : vector<2x4x8x32xf32> -> vector<2x8x4x32xf32>
    %154 = vector.shape_cast %153 : vector<2x8x4x32xf32> to vector<16x128xf32>
    %155 = arith.truncf %154 : vector<16x128xf32> to vector<16x128xbf16>
    %c1_65 = arith.constant 1 : index
    %c0_66 = arith.constant 0 : index
    %c0_67 = arith.constant 0 : index
    %156 = vector.load %arg3[%c1_65, %c0_66, %c0_67] : memref<2x128x128xbf16, #tpu.memory_space<vmem>>, vector<1x128x128xbf16>
    %157 = vector.shape_cast %156 : vector<1x128x128xbf16> to vector<128x128xbf16>
    %cst_68 = arith.constant dense<0.000000e+00> : vector<16x128xf32>
    %158 = tpu.matmul %155, %157, %cst_68 {dimension_numbers = #tpu.dot_dimension_numbers<[1], [0], [0], [1], [0, 0, 1, 1], [], []>} : vector<16x128xbf16>, vector<128x128xbf16>, vector<16x128xf32> -> vector<16x128xf32>
    %c1_69 = arith.constant 1 : index
    %c0_70 = arith.constant 0 : index
    %c0_71 = arith.constant 0 : index
    %159 = vector.load %arg4[%c1_69, %c0_70, %c0_71] : memref<2x1x128xf32, #tpu.memory_space<vmem>>, vector<1x1x128xf32>
    %160 = vector.shape_cast %159 : vector<1x1x128xf32> to vector<1x128xf32>
    %161 = vector.broadcast %160 : vector<1x128xf32> to vector<16x128xf32>
    %162 = arith.addf %158, %161 : vector<16x128xf32>
    %163 = arith.addf %162, %115 : vector<16x128xf32>
    %c1_72 = arith.constant 1 : index
    %c0_73 = arith.constant 0 : index
    %c0_74 = arith.constant 0 : index
    %164 = vector.load %arg5[%c1_72, %c0_73, %c0_74] : memref<2x1x128xf32, #tpu.memory_space<vmem>>, vector<1x1x128xf32>
    %165 = vector.shape_cast %164 : vector<1x1x128xf32> to vector<1x128xf32>
    %c1_75 = arith.constant 1 : index
    %c0_76 = arith.constant 0 : index
    %c0_77 = arith.constant 0 : index
    %166 = vector.load %arg6[%c1_75, %c0_76, %c0_77] : memref<2x1x128xf32, #tpu.memory_space<vmem>>, vector<1x1x128xf32>
    %167 = vector.shape_cast %166 : vector<1x1x128xf32> to vector<1x128xf32>
    %cst_78 = arith.constant dense<0.000000e+00> : vector<16xf32>
    %168 = vector.multi_reduction <add>, %163, %cst_78 [1] : vector<16x128xf32> to vector<16xf32>
    %169 = vector.shape_cast %168 : vector<16xf32> to vector<16x1xf32>
    %cst_79 = arith.constant 1.280000e+02 : f32
    %170 = vector.broadcast %cst_79 : f32 to vector<16x1xf32>
    %171 = arith.divf %169, %170 : vector<16x1xf32>
    %172 = vector.broadcast %171 : vector<16x1xf32> to vector<16x128xf32>
    %173 = arith.subf %163, %172 : vector<16x128xf32>
    %174 = arith.mulf %173, %173 : vector<16x128xf32>
    %cst_80 = arith.constant dense<0.000000e+00> : vector<16xf32>
    %175 = vector.multi_reduction <add>, %174, %cst_80 [1] : vector<16x128xf32> to vector<16xf32>
    %176 = vector.shape_cast %175 : vector<16xf32> to vector<16x1xf32>
    %cst_81 = arith.constant 1.280000e+02 : f32
    %177 = vector.broadcast %cst_81 : f32 to vector<16x1xf32>
    %178 = arith.divf %176, %177 : vector<16x1xf32>
    %cst_82 = arith.constant 9.99999974E-6 : f32
    %179 = vector.broadcast %cst_82 : f32 to vector<16x1xf32>
    %180 = arith.addf %178, %179 : vector<16x1xf32>
    %181 = math.rsqrt %180 : vector<16x1xf32>
    %182 = vector.broadcast %181 : vector<16x1xf32> to vector<16x128xf32>
    %183 = arith.mulf %173, %182 : vector<16x128xf32>
    %184 = vector.broadcast %165 : vector<1x128xf32> to vector<16x128xf32>
    %185 = arith.mulf %183, %184 : vector<16x128xf32>
    %186 = vector.broadcast %167 : vector<1x128xf32> to vector<16x128xf32>
    %187 = arith.addf %185, %186 : vector<16x128xf32>
    %188 = arith.truncf %187 : vector<16x128xf32> to vector<16x128xbf16>
    %c1_83 = arith.constant 1 : index
    %c0_84 = arith.constant 0 : index
    %c0_85 = arith.constant 0 : index
    %189 = vector.load %arg7[%c1_83, %c0_84, %c0_85] : memref<2x128x512xbf16, #tpu.memory_space<vmem>>, vector<1x128x512xbf16>
    %190 = vector.shape_cast %189 : vector<1x128x512xbf16> to vector<128x512xbf16>
    %cst_86 = arith.constant dense<0.000000e+00> : vector<16x512xf32>
    %191 = tpu.matmul %188, %190, %cst_86 {dimension_numbers = #tpu.dot_dimension_numbers<[1], [0], [0], [1], [0, 0, 1, 1], [], []>} : vector<16x128xbf16>, vector<128x512xbf16>, vector<16x512xf32> -> vector<16x512xf32>
    %c1_87 = arith.constant 1 : index
    %c0_88 = arith.constant 0 : index
    %c0_89 = arith.constant 0 : index
    %192 = vector.load %arg8[%c1_87, %c0_88, %c0_89] : memref<2x1x512xf32, #tpu.memory_space<vmem>>, vector<1x1x512xf32>
    %193 = vector.shape_cast %192 : vector<1x1x512xf32> to vector<1x512xf32>
    %194 = vector.broadcast %193 : vector<1x512xf32> to vector<16x512xf32>
    %195 = arith.addf %191, %194 : vector<16x512xf32>
    %cst_90 = arith.constant 0.000000e+00 : f32
    %196 = vector.broadcast %cst_90 : f32 to vector<16x512xf32>
    %197 = arith.maximumf %195, %196 : vector<16x512xf32>
    %198 = arith.truncf %197 : vector<16x512xf32> to vector<16x512xbf16>
    %c1_91 = arith.constant 1 : index
    %c0_92 = arith.constant 0 : index
    %c0_93 = arith.constant 0 : index
    %199 = vector.load %arg9[%c1_91, %c0_92, %c0_93] : memref<2x512x128xbf16, #tpu.memory_space<vmem>>, vector<1x512x128xbf16>
    %200 = vector.shape_cast %199 : vector<1x512x128xbf16> to vector<512x128xbf16>
    %cst_94 = arith.constant dense<0.000000e+00> : vector<16x128xf32>
    %201 = tpu.matmul %198, %200, %cst_94 {dimension_numbers = #tpu.dot_dimension_numbers<[1], [0], [0], [1], [0, 0, 1, 1], [], []>} : vector<16x512xbf16>, vector<512x128xbf16>, vector<16x128xf32> -> vector<16x128xf32>
    %c1_95 = arith.constant 1 : index
    %c0_96 = arith.constant 0 : index
    %c0_97 = arith.constant 0 : index
    %202 = vector.load %arg10[%c1_95, %c0_96, %c0_97] : memref<2x1x128xf32, #tpu.memory_space<vmem>>, vector<1x1x128xf32>
    %203 = vector.shape_cast %202 : vector<1x1x128xf32> to vector<1x128xf32>
    %204 = vector.broadcast %203 : vector<1x128xf32> to vector<16x128xf32>
    %205 = arith.addf %201, %204 : vector<16x128xf32>
    %206 = arith.addf %205, %187 : vector<16x128xf32>
    %c1_98 = arith.constant 1 : index
    %c0_99 = arith.constant 0 : index
    %c0_100 = arith.constant 0 : index
    %207 = vector.load %arg11[%c1_98, %c0_99, %c0_100] : memref<2x1x128xf32, #tpu.memory_space<vmem>>, vector<1x1x128xf32>
    %208 = vector.shape_cast %207 : vector<1x1x128xf32> to vector<1x128xf32>
    %c1_101 = arith.constant 1 : index
    %c0_102 = arith.constant 0 : index
    %c0_103 = arith.constant 0 : index
    %209 = vector.load %arg12[%c1_101, %c0_102, %c0_103] : memref<2x1x128xf32, #tpu.memory_space<vmem>>, vector<1x1x128xf32>
    %210 = vector.shape_cast %209 : vector<1x1x128xf32> to vector<1x128xf32>
    %cst_104 = arith.constant dense<0.000000e+00> : vector<16xf32>
    %211 = vector.multi_reduction <add>, %206, %cst_104 [1] : vector<16x128xf32> to vector<16xf32>
    %212 = vector.shape_cast %211 : vector<16xf32> to vector<16x1xf32>
    %cst_105 = arith.constant 1.280000e+02 : f32
    %213 = vector.broadcast %cst_105 : f32 to vector<16x1xf32>
    %214 = arith.divf %212, %213 : vector<16x1xf32>
    %215 = vector.broadcast %214 : vector<16x1xf32> to vector<16x128xf32>
    %216 = arith.subf %206, %215 : vector<16x128xf32>
    %217 = arith.mulf %216, %216 : vector<16x128xf32>
    %cst_106 = arith.constant dense<0.000000e+00> : vector<16xf32>
    %218 = vector.multi_reduction <add>, %217, %cst_106 [1] : vector<16x128xf32> to vector<16xf32>
    %219 = vector.shape_cast %218 : vector<16xf32> to vector<16x1xf32>
    %cst_107 = arith.constant 1.280000e+02 : f32
    %220 = vector.broadcast %cst_107 : f32 to vector<16x1xf32>
    %221 = arith.divf %219, %220 : vector<16x1xf32>
    %cst_108 = arith.constant 9.99999974E-6 : f32
    %222 = vector.broadcast %cst_108 : f32 to vector<16x1xf32>
    %223 = arith.addf %221, %222 : vector<16x1xf32>
    %224 = math.rsqrt %223 : vector<16x1xf32>
    %225 = vector.broadcast %224 : vector<16x1xf32> to vector<16x128xf32>
    %226 = arith.mulf %216, %225 : vector<16x128xf32>
    %227 = vector.broadcast %208 : vector<1x128xf32> to vector<16x128xf32>
    %228 = arith.mulf %226, %227 : vector<16x128xf32>
    %229 = vector.broadcast %210 : vector<1x128xf32> to vector<16x128xf32>
    %230 = arith.addf %228, %229 : vector<16x128xf32>
    %231 = arith.truncf %230 : vector<16x128xf32> to vector<16x128xbf16>
    %c0_109 = arith.constant 0 : index
    %c0_110 = arith.constant 0 : index
    %232 = vector.load %arg13[%c0_109, %c0_110] : memref<128x1024xbf16, #tpu.memory_space<vmem>>, vector<128x1024xbf16>
    %cst_111 = arith.constant dense<0.000000e+00> : vector<16x1024xf32>
    %233 = tpu.matmul %231, %232, %cst_111 {dimension_numbers = #tpu.dot_dimension_numbers<[1], [0], [0], [1], [0, 0, 1, 1], [], []>} : vector<16x128xbf16>, vector<128x1024xbf16>, vector<16x1024xf32> -> vector<16x1024xf32>
    %c0_112 = arith.constant 0 : index
    %c0_113 = arith.constant 0 : index
    %234 = vector.load %arg14[%c0_112, %c0_113] : memref<1x1024xf32, #tpu.memory_space<vmem>>, vector<1x1024xf32>
    %235 = vector.broadcast %234 : vector<1x1024xf32> to vector<16x1024xf32>
    %236 = arith.addf %233, %235 : vector<16x1024xf32>
    %c0_114 = arith.constant 0 : index
    %c0_115 = arith.constant 0 : index
    %237 = vector.load %arg15[%c0_114, %c0_115] : memref<16x1024xf32, #tpu.memory_space<vmem>>, vector<16x1024xf32>
    tpu.vector_store %arg15[%c0_114, %c0_115], %236 {strides = array<i32>} : memref<16x1024xf32, #tpu.memory_space<vmem>>, vector<16x1024xf32>,
    return
  }
}

</mosaic_0001>

<bundles_post_ra>
// kernel: tpu_custom_call.1
= control target key start
LH: loop header
LB: loop body
LE: loop exit
PB: predicated region body
PF: predicated region fallthrough
CT: control target
= control target key end

     0   :  { %20 = vsyncpa [#allocation3], 0  ;;  %s9753_s0 = inlined_call_operand.hbm [shape: f32[16,128], index: 0, kind: input, shape index: {}]   ;;  %s9754_s1 = inlined_call_operand.hbm [shape: bf16[2,128,384], index: 1, kind: input, shape index: {}]   ;;  %s9755_s2 = inlined_call_operand.hbm [shape: f32[2,1,384], index: 2, kind: input, shape index: {}]   ;;  %s9756_s3 = inlined_call_operand.hbm [shape: bf16[2,128,128], index: 3, kind: input, shape index: {}]   ;;  %s9757_s4 = inlined_call_operand.hbm [shape: f32[2,1,128], index: 4, kind: input, shape index: {}]   ;;  %s9758_s5 = inlined_call_operand.hbm [shape: f32[2,1,128], index: 5, kind: input, shape index: {}]   ;;  %s9759_s6 = inlined_call_operand.hbm [shape: f32[2,1,128], index: 6, kind: input, shape index: {}]   ;;  %s9760_s7 = inlined_call_operand.hbm [shape: bf16[2,128,512], index: 7, kind: input, shape index: {}]   ;;  %s9761_s8 = inlined_call_operand.vmem [shape: f32[2,1,512], index: 8, kind: input, shape index: {}]   ;;  %s9762_s9 = inlined_call_operand.hbm [shape: bf16[2,512,128], index: 9, kind: input, shape index: {}]   ;;  %s9763_s10 = inlined_call_operand.vmem [shape: f32[2,1,128], index: 10, kind: input, shape index: {}]   ;;  %s9764_s11 = inlined_call_operand.vmem [shape: f32[2,1,128], index: 11, kind: input, shape index: {}]   ;;  %s9765_s12 = inlined_call_operand.hbm [shape: f32[2,1,128], index: 12, kind: input, shape index: {}]   ;;  %s9766_s13 = inlined_call_operand.hbm [shape: bf16[128,1024], index: 13, kind: input, shape index: {}]   ;;  %s9767_s14 = inlined_call_operand.vmem [shape: f32[1,1024], index: 14, kind: input, shape index: {}]   ;;  %s9768_s15 = inlined_call_operand.hbm [shape: f32[16,1024], index: 15, kind: output, shape index: {}]  }
   0x1   :  { %21 = vsyncpa [#allocation6], 0 }
   0x2   :  { %22 = vsyncpa [#allocation9], 0 }
   0x3   :  { %23 = vsyncpa [#allocation12], 0 }
   0x4   :  { %24 = vsyncpa [#allocation15], 0 }
   0x5   :  { %25 = vsyncpa [#allocation18], 0 }
   0x6   :  { %26 = vsyncpa [#allocation4], 0  ;;  %s8593_s18 = smov [#allocation5]  }
   0x7   :  { %s44_s19 = sshll.u32 %s8593_s18, 4  ;;  %s45_s19 = int_to_ptr.vmem [resolvable:$true] %s44_s19 }
   0x8   :  { %s8347_s20 = scalar_lea.vmem %s45_s19, 6144  ;;  %p8352_p1 = scmp.lt.s32.totalorder %s45_s19, %s45_s19 }
   0x9   :  { %p8348_p0 = scmp.ne.s32.totalorder %s45_s19, %s8347_s20  ;;  %p8353_p2 = scmp.lt.s32.totalorder %s8347_s20, %s8347_s20 }
   0xb   :  { %p8354_p3 = por %p8353_p2, %p8352_p1 }
   0xd   :  { %p8355_p4 = pnand %p8354_p3, %p8348_p0 }
   0xf   :  { %8358 = shalt.err (!%p8355_p4)
}
  0x10   :  { %s8594_s21 = smov 192   ;;  %s8595_s22 = smov 12  }
  0x11   :  { %50 = dma.hbm_to_vmem [thread:$0]  %s9754_s1, 6144, %s45_s19, [#allocation6], %s8594_s21, %s8594_s21, %s8595_s22  }
  0x12   :  { %s8596_s25 = smov [#allocation8]  }
  0x13   :  { %s68_s26 = sshll.u32 %s8596_s25, 4  ;;  %s69_s26 = int_to_ptr.vmem [resolvable:$true] %s68_s26 }
  0x14   :  { %s8367_s27 = scalar_lea.vmem %s69_s26, 2048  ;;  %p8372_p6 = scmp.lt.s32.totalorder %s69_s26, %s69_s26 }
  0x15   :  { %p8368_p5 = scmp.ne.s32.totalorder %s69_s26, %s8367_s27  ;;  %p8373_p7 = scmp.lt.s32.totalorder %s8367_s27, %s8367_s27 }
  0x17   :  { %p8374_p8 = por %p8373_p7, %p8372_p6 }
  0x19   :  { %p8375_p9 = pnand %p8374_p8, %p8368_p5 }
  0x1b   :  { %8378 = shalt.err (!%p8375_p9)
}
  0x1c   :  { %s8597_s28 = smov 64   ;;  %s8598_s29 = smov 4  }
  0x1d   :  { %74 = dma.hbm_to_vmem [thread:$0]  %s9756_s3, 2048, %s69_s26, [#allocation9], %s8597_s28, %s8597_s28, %s8598_s29  }
  0x1e   :  { %s8599_s1 = smov [#allocation11]   ;;  %s8600_s18 = smov [#allocation14]  }
  0x1f   :  { %s92_s17 = sshll.u32 %s8599_s1, 4  ;;  %s116_s19 = sshll.u32 %s8600_s18, 4  ;;  %s93_s17 = int_to_ptr.vmem [resolvable:$true] %s92_s17  ;;  %s117_s19 = int_to_ptr.vmem [resolvable:$true] %s116_s19 }
  0x20   :  { %s8387_s20 = scalar_lea.vmem %s93_s17, 32  ;;  %p8392_p11 = scmp.lt.s32.totalorder %s93_s17, %s93_s17 }
  0x21   :  { %p8388_p10 = scmp.ne.s32.totalorder %s93_s17, %s8387_s20  ;;  %p8393_p12 = scmp.lt.s32.totalorder %s8387_s20, %s8387_s20 }
  0x23   :  { %p8394_p13 = por %p8393_p12, %p8392_p11 }
  0x25   :  { %p8395_p0 = pnand %p8394_p13, %p8388_p10 }
  0x27   :  { %8398 = shalt.err (!%p8395_p0)
}
  0x28   :  { %s8601_s21 = smov 16   ;;  %s8602_s22 = smov 1  }
  0x29   :  { %98 = dma.hbm_to_vmem [thread:$0]  %s9758_s5, 32, %s93_s17, [#allocation12], %s8601_s21, %s8601_s21, %s8602_s22  }
  0x2a   :  { %s8407_s24 = scalar_lea.vmem %s117_s19, 8192  ;;  %p8412_p2 = scmp.lt.s32.totalorder %s117_s19, %s117_s19 }
  0x2b   :  { %p8408_p1 = scmp.ne.s32.totalorder %s117_s19, %s8407_s24  ;;  %p8413_p3 = scmp.lt.s32.totalorder %s8407_s24, %s8407_s24 }
  0x2d   :  { %p8414_p4 = por %p8413_p3, %p8412_p2 }
  0x2f   :  { %p8415_p5 = pnand %p8414_p4, %p8408_p1 }
  0x31   :  { %8418 = shalt.err (!%p8415_p5)
}
  0x32   :  { %s8603_s25 = smov 256   ;;  %s8604_s30 = smov [#allocation17]  }
  0x33   :  { %122 = dma.hbm_to_vmem [thread:$0]  %s9760_s7, 8192, %s117_s19, [#allocation15], %s8603_s25, %s8603_s25, %s8601_s21  }
  0x34   :  { %s146_s16 = sshll.u32 %s8604_s30, 4  ;;  %s8605_s1 = smov [#allocation2]   ;;  %s147_s16 = int_to_ptr.vmem [resolvable:$true] %s146_s16 }
  0x35   :  { %s32_s18 = sshll.u32 %s8605_s1, 4  ;;  %s8427_s20 = scalar_lea.vmem %s147_s16, 32  ;;  %s33_s18 = int_to_ptr.vmem [resolvable:$true] %s32_s18 }
  0x36   :  { %p8428_p6 = scmp.ne.s32.totalorder %s147_s16, %s8427_s20  ;;  %p8432_p7 = scmp.lt.s32.totalorder %s147_s16, %s147_s16 }
  0x37   :  { %p8433_p8 = scmp.lt.s32.totalorder %s8427_s20, %s8427_s20 }
  0x39   :  { %p8434_p9 = por %p8433_p8, %p8432_p7 }
  0x3b   :  { %p8435_p10 = pnand %p8434_p9, %p8428_p6 }
  0x3d   :  { %8438 = shalt.err (!%p8435_p10)
}
  0x3e   :  { %152 = dma.hbm_to_vmem [thread:$0]  %s9765_s12, 32, %s147_s16, [#allocation18], %s8601_s21, %s8601_s21, %s8602_s22  }
  0x3f   :  { %s8447_s7 = scalar_lea.vmem %s33_s18, 256  ;;  %p8452_p12 = scmp.lt.s32.totalorder %s33_s18, %s33_s18 }
  0x40   :  { %p8448_p11 = scmp.ne.s32.totalorder %s33_s18, %s8447_s7  ;;  %p8453_p13 = scmp.lt.s32.totalorder %s8447_s7, %s8447_s7 }
  0x42   :  { %p8454_p0 = por %p8453_p13, %p8452_p12 }
  0x44   :  { %p8455_p1 = pnand %p8454_p0, %p8448_p11 }
  0x46   :  { %8458 = shalt.err (!%p8455_p1)
}
  0x47   :  { %s8606_s19 = smov 128   ;;  %s8607_s23 = smov 8  }
  0x48   :  { %38 = dma.hbm_to_vmem [thread:$0]  %s9753_s0, 256, %s33_s18, [#allocation3], %s8606_s19, %s8606_s19, %s8607_s23  }
  0x49   :  { %s8608_s25 = smov [#allocation7]  }
  0x4a   :  { %s56_s26 = sshll.u32 %s8608_s25, 4  ;;  %s57_s26 = int_to_ptr.vmem [resolvable:$true] %s56_s26 }
  0x4b   :  { %s8467_s27 = scalar_lea.vmem %s57_s26, 96  ;;  %p8472_p3 = scmp.lt.s32.totalorder %s57_s26, %s57_s26 }
  0x4c   :  { %p8468_p2 = scmp.ne.s32.totalorder %s57_s26, %s8467_s27  ;;  %p8473_p4 = scmp.lt.s32.totalorder %s8467_s27, %s8467_s27 }
  0x4e   :  { %p8474_p5 = por %p8473_p4, %p8472_p3 }
  0x50   :  { %p8475_p6 = pnand %p8474_p5, %p8468_p2 }
  0x52   :  { %8478 = shalt.err (!%p8475_p6)
}
  0x53   :  { %s8609_s12 = smov 48   ;;  %s8610_s30 = smov 3  }
  0x54   :  { %62 = dma.hbm_to_vmem [thread:$0]  %s9755_s2, 96, %s57_s26, [#allocation6], %s8609_s12, %s8609_s12, %s8610_s30  }
  0x55   :  { %s8611_s20 = smov [#allocation10]   ;;  %s8612_s17 = smov [#allocation13]  }
  0x56   :  { %s80_s5 = sshll.u32 %s8611_s20, 4  ;;  %s104_s0 = sshll.u32 %s8612_s17, 4  ;;  %s81_s5 = int_to_ptr.vmem [resolvable:$true] %s80_s5  ;;  %s105_s0 = int_to_ptr.vmem [resolvable:$true] %s104_s0 }
  0x57   :  { %s8487_s18 = scalar_lea.vmem %s81_s5, 32  ;;  %p8492_p8 = scmp.lt.s32.totalorder %s81_s5, %s81_s5 }
  0x58   :  { %p8488_p7 = scmp.ne.s32.totalorder %s81_s5, %s8487_s18  ;;  %p8493_p9 = scmp.lt.s32.totalorder %s8487_s18, %s8487_s18 }
  0x5a   :  { %p8494_p10 = por %p8493_p9, %p8492_p8 }
  0x5c   :  { %p8495_p11 = pnand %p8494_p10, %p8488_p7 }
  0x5e   :  { %8498 = shalt.err (!%p8495_p11)
}
  0x5f   :  { %86 = dma.hbm_to_vmem [thread:$0]  %s9757_s4, 32, %s81_s5, [#allocation9], %s8601_s21, %s8601_s21, %s8602_s22  }
  0x60   :  { %s8507_s2 = scalar_lea.vmem %s105_s0, 32  ;;  %p8512_p13 = scmp.lt.s32.totalorder %s105_s0, %s105_s0 }
  0x61   :  { %p8508_p12 = scmp.ne.s32.totalorder %s105_s0, %s8507_s2  ;;  %p8513_p0 = scmp.lt.s32.totalorder %s8507_s2, %s8507_s2 }
  0x63   :  { %p8514_p1 = por %p8513_p0, %p8512_p13 }
  0x65   :  { %p8515_p2 = pnand %p8514_p1, %p8508_p12 }
  0x67   :  { %8518 = shalt.err (!%p8515_p2)
}
  0x68   :  { %110 = dma.hbm_to_vmem [thread:$0]  %s9759_s6, 32, %s105_s0, [#allocation12], %s8601_s21, %s8601_s21, %s8602_s22  }
  0x69   :  { %s8613_s24 = smov [#allocation16]   ;;  %s8614_s26 = smov [#allocation19]  }
  0x6a   :  { %s130_s25 = sshll.u32 %s8613_s24, 4  ;;  %s158_s27 = sshll.u32 %s8614_s26, 4  ;;  %s131_s25 = int_to_ptr.vmem [resolvable:$true] %s130_s25  ;;  %s159_s27 = int_to_ptr.vmem [resolvable:$true] %s158_s27 }
  0x6b   :  { %s8527_s4 = scalar_lea.vmem %s131_s25, 8192  ;;  %p8532_p4 = scmp.lt.s32.totalorder %s131_s25, %s131_s25 }
  0x6c   :  { %p8528_p3 = scmp.ne.s32.totalorder %s131_s25, %s8527_s4  ;;  %p8533_p5 = scmp.lt.s32.totalorder %s8527_s4, %s8527_s4 }
  0x6e   :  { %p8534_p6 = por %p8533_p5, %p8532_p4 }
  0x70   :  { %p8535_p7 = pnand %p8534_p6, %p8528_p3 }
  0x72   :  { %8538 = shalt.err (!%p8535_p7)
}
  0x73   :  { %136 = dma.hbm_to_vmem [thread:$0]  %s9762_s9, 8192, %s131_s25, [#allocation15], %s8597_s28, %s8597_s28, %s8598_s29  }
  0x74   :  { %s8547_s6 = scalar_lea.vmem %s159_s27, 8192  ;;  %p8552_p9 = scmp.lt.s32.totalorder %s159_s27, %s159_s27 }
  0x75   :  { %p8548_p8 = scmp.ne.s32.totalorder %s159_s27, %s8547_s6  ;;  %p8553_p10 = scmp.lt.s32.totalorder %s8547_s6, %s8547_s6 }
  0x77   :  { %p8554_p11 = por %p8553_p10, %p8552_p9 }
  0x79   :  { %p8555_p12 = pnand %p8554_p11, %p8548_p8 }
  0x7b   :  { %8558 = shalt.err (!%p8555_p12)
}
  0x7c   :  { %s8615_s21 = smov 512   ;;  %s8616_s22 = smov 32  }
  0x7d   :  { %164 = dma.hbm_to_vmem [thread:$0]  %s9766_s13, 8192, %s159_s27, [#allocation18], %s8615_s21, %s8615_s21, %s8616_s22  }
  0x7e   :  { %8579 = dma.done.wait [#allocation3], 256  }
  0x7f   :  { %8580 = vsyncadd [#allocation3], 4294967040 }
  0x80   :  { %8581 = dma.done.wait [#allocation6], 6240  }
  0x81   :  { %8582 = vsyncadd [#allocation6], 4294961056 }
  0x82   :  { %8583 = dma.done.wait [#allocation9], 2080  }
  0x83   :  { %8584 = vsyncadd [#allocation9], 4294965216 }
  0x84   :  { %8585 = dma.done.wait [#allocation12], 64  }
  0x85   :  { %8586 = vsyncadd [#allocation12], 4294967232 }
  0x86   :  { %8587 = dma.done.wait [#allocation15], 16384  }
  0x87   :  { %8588 = vsyncadd [#allocation15], 4294950912 }
  0x88   :  { %8589 = dma.done.wait [#allocation18], 8224  }
  0x89   :  { %8590 = vsyncadd [#allocation18], 4294959072  ;;  %v8617_v0 = vmov 0   ;;  %v8017_v1 = vld [vmem:[#allocation5 + $0xac] ss:$12 sps:$4 sm:$0xff]   ;;  %v201_v17 = vld [vmem:[#allocation2] sm:$0xff]  ;;  %v238_v27 = vlaneseq }
  0x8a   :  { %413 = vmatprep.mubr.bf16.mxu0 %v8617_v0  ;;  %v8019_v2 = vld [vmem:[#allocation5 + $0xa8] ss:$12 sps:$4 sm:$0xff]   ;;  %381 = vmatprep.subr.bf16.mxu0 %v8017_v1  ;;  %v8022_v4 = vld [vmem:[#allocation5 + $0x90] ss:$12 sps:$4 sm:$0xff]   ;;  %v8025_v6 = vld [vmem:[#allocation5 + $0x78] ss:$12 sps:$4 sm:$0xff]  }
  0x8b   :  { %v8020_v3 = vld [vmem:[#allocation5 + $0x94] ss:$12 sps:$4 sm:$0xff]   ;;  %382 = vmatpush1.bf16.msra.mxu0 %v8019_v2  ;;  %v8023_v5 = vld [vmem:[#allocation5 + $0x7c] ss:$12 sps:$4 sm:$0xff]   ;;  %v8026_v7 = vld [vmem:[#allocation5 + $0x64] ss:$12 sps:$4 sm:$0xff]  }
  0x8c   :  { %383 = vmatprep.subr.bf16.mxu0 %v8020_v3  ;;  %v8028_v8 = vld [vmem:[#allocation5 + $0x60] ss:$12 sps:$4 sm:$0xff]   ;;  %v8031_v10 = vld [vmem:[#allocation5 + $0x48] ss:$12 sps:$4 sm:$0xff]   ;;  %v8034_v12 = vld [vmem:[#allocation5 + $0x30] ss:$12 sps:$4 sm:$0xff]  }
  0x8d   :  { %v8029_v9 = vld [vmem:[#allocation5 + $0x4c] ss:$12 sps:$4 sm:$0xff]   ;;  %v8032_v11 = vld [vmem:[#allocation5 + $0x34] ss:$12 sps:$4 sm:$0xff]   ;;  %v8035_v13 = vld [vmem:[#allocation5 + $0x1c] ss:$12 sps:$4 sm:$0xff]  }
  0x8e   :  { %v8037_v14 = vld [vmem:[#allocation5 + $0x18] ss:$12 sps:$4 sm:$0xff]   ;;  %v8040_v16 = vld [vmem:[#allocation5] ss:$12 sps:$4 sm:$0xff]   ;;  %v8041_v20 = vld [vmem:[#allocation5 + $0xb0] ss:$12 sps:$4 sm:$0xff]  }
  0x8f   :  { %384 = vmatpush1.bf16.msra.mxu0 %v8022_v4  ;;  %v8038_v15 = vld [vmem:[#allocation5 + $0x4] ss:$12 sps:$4 sm:$0xff]   ;;  %v202_v18 = vld [vmem:[#allocation2 + $0x8] sm:$0xff]  ;;  %v8618_v21 = vmov 0.0   ;;  %v8043_v23 = vld [vmem:[#allocation5 + $0x80] ss:$12 sps:$4 sm:$0xff]  }
  0x90   :  { %385 = vmatprep.subr.bf16.mxu0 %v8023_v5  ;;  %v203_v19 = vpack.c.bf16 %v202_v18, %v201_v17  ;;  %7683 = vmatprep.subr.bf16.mxu1 %v8618_v21  ;;  %v8042_v22 = vld [vmem:[#allocation5 + $0x98] ss:$12 sps:$4 sm:$0xff]   ;;  %v8044_v24 = vld [vmem:[#allocation5 + $0x68] ss:$12 sps:$4 sm:$0xff]   ;;  %v8045_v25 = vld [vmem:[#allocation5 + $0x50] ss:$12 sps:$4 sm:$0xff]  }
  0x91   :  { %7684 = vmatpush3.bf16.msra.mxu1 %v8041_v20  ;;  %v8046_v26 = vld [vmem:[#allocation5 + $0x38] ss:$12 sps:$4 sm:$0xff]   ;;  %v8047_v28 = vld [vmem:[#allocation5 + $0x20] ss:$12 sps:$4 sm:$0xff]   ;;  %v8767_v29 = vshrl.u32 %v238_v27, 7  ;;  %vm8619_vm0 = vmmov 0  }
  0x92   :  { %7685 = vmatprep.subr.bf16.mxu1 %v8618_v21  ;;  %v8048_v30 = vld [vmem:[#allocation5 + $0x8] ss:$12 sps:$4 sm:$0xff]   ;;  %v8774_v32 = vld [vmem:[#allocation7] sm:$0x7]  ;;  %7699 = vmatprep.mubr.msk.bf16.mxu1 %vm8619_vm0, %v8618_v21  ;;  %s8620_s9 = smov 96   ;;  %vm1365_vm1 = vcmask 261120  }
  0x93   :  { %386 = vmatpush1.bf16.msra.mxu0 %v8025_v6  ;;  %v8771_v31 = vsub.s32 1, %v8767_v29  ;;  %v8781_v33 = vsub.s32 0, %v8767_v29  ;;  %v8621_v44 = vmov 1983009808   ;;  %v8622_v46 = vmov 1934713408  }
  0x94   :  { %387 = vmatprep.subr.bf16.mxu0 %v8026_v7  ;;  %v488_v45 = vunpack.c.l.s4 %v8621_v44  ;;  %v520_v47 = vunpack.c.l.s4 %v8622_v46  ;;  %vm1734_vm2 = vcmask 64512   ;;  %vm1834_vm3 = vcmask 1043456  }
  0x95   :  { %7686 = vmatpush3.bf16.msra.mxu1 %v8042_v22  ;;  %v245_v34 = vrot.slane %v8774_v32, %v8771_v31  ;;  %v241_v37 = vrot.slane %v8774_v32, %v8781_v33  ;;  %vm2498_vm4 = vcmask 523264   ;;  %vm2501_vm5 = vcmask 785408  }
  0x96   :  { %7687 = vmatprep.subr.bf16.mxu1 %v8618_v21  ;;  %v489_v48 = vunpack.c.0.s8 %v488_v45  ;;  %v521_v51 = vunpack.c.0.s8 %v520_v47 }
  0x97   :  { %388 = vmatpush1.bf16.msra.mxu0 %v8028_v8 }
  0x98   :  { %389 = vmatprep.subr.bf16.mxu0 %v8029_v9  ;;  %v8812_v52 = vsub.s32 %v489_v48, %v8767_v29  ;;  %v8815_v59 = vsub.s32 %v521_v51, %v8767_v29 }
  0x99   :  { %7688 = vmatpush3.bf16.msra.mxu1 %v8043_v23 }
  0x9a   :  { %7689 = vmatprep.subr.bf16.mxu1 %v8618_v21 }
  0x9b   :  { %390 = vmatpush1.bf16.msra.mxu0 %v8031_v10 }
  0x9c   :  { %391 = vmatprep.subr.bf16.mxu0 %v8032_v11 }
  0x9d   :  { %7690 = vmatpush3.bf16.msra.mxu1 %v8044_v24 }
  0x9e   :  { %7691 = vmatprep.subr.bf16.mxu1 %v8618_v21 }
  0x9f   :  { %392 = vmatpush1.bf16.msra.mxu0 %v8034_v12 }
  0xa0   :  { %393 = vmatprep.subr.bf16.mxu0 %v8035_v13 }
  0xa1   :  { %7692 = vmatpush3.bf16.msra.mxu1 %v8045_v25 }
  0xa2   :  { %7693 = vmatprep.subr.bf16.mxu1 %v8618_v21 }
  0xa3   :  { %394 = vmatpush1.bf16.msra.mxu0 %v8037_v14 }
  0xa4   :  { %395 = vmatprep.subr.bf16.mxu0 %v8038_v15 }
  0xa5   :  { %7694 = vmatpush3.bf16.msra.mxu1 %v8046_v26 }
  0xa6   :  { %7695 = vmatprep.subr.bf16.mxu1 %v8618_v21 }
  0xa7   :  { %396 = vmatpush1.bf16.msra.mxu0 %v8040_v16 }
  0xa8   :  { %7727 = vmatprep.subr.bf16.mxu0 %v8618_v21 }
  0xa9   :  { %7696 = vmatpush3.bf16.msra.mxu1 %v8047_v28 }
  0xaa   :  { %414 = vmatmul.mubr.bf16.vlgmr.msra.gmra.mxu0 %v203_v19  ;;  %7697 = vmatprep.subr.bf16.mxu1 %v8618_v21 }
  0xab   :  { %7729 = vmatprep.mubr.msk.bf16.mxu0 %vm8619_vm0, %v8618_v21 }
  0xad   :  { %7698 = vmatpush3.bf16.msra.mxu1 %v8048_v30 }
  0xae   :  { %7703 = vmatprep.subr.bf16.mxu1 %v8618_v21 }
  0xb0   :  { %7700 = vmatmul.mubr.bf16.vlgmr.msra.gmra.mxu1 %v203_v19 }
  0xb1   :  { %7705 = vmatprep.mubr.msk.bf16.mxu1 %vm8619_vm0, %v8618_v21 }
 0x16a   :  { %v415_v35 = vpop.f32.mrf.mxu0 }
 0x16b   :  { %v416_v39 = vadd.f32 %v415_v35, %v241_v37 }
 0x16c   :  { %v417_v36 = vpop.f32.mrf.mxu0 }
 0x16d   :  { %v418_v38 = vadd.f32 %v417_v36, %v245_v34 }
 0x16e   :  { %v419_v40 = vpop.f32.mrf.mxu0 }
 0x16f   :  { %779 = vrot.lane.b32.xlu1 %v418_v38, %s8616_s22  ;;  %767 = vrot.lane.b32.xlu0 %v418_v38, %s8620_s9  ;;  %v8801_v43 = vadd.f32 %v419_v40, %v241_v37 }
 0x170   :  { %v421_v41 = vpop.f32.mrf.mxu0 }
 0x171   :  { %v8795_v42 = vadd.f32 %v421_v41, %v245_v34 }
 0x173   :  { %773 = vrot.lane.b32.xlu0 %v418_v38, %s8597_s28  ;;  %467 = vrot.lane.b32.xlu1 %v416_v39, %s8620_s9 }
 0x177   :  { %473 = vrot.lane.b32.xlu0 %v416_v39, %s8597_s28  ;;  %479 = vrot.lane.b32.xlu1 %v416_v39, %s8616_s22 }
 0x17b   :  { %769 = vrot.lane.b32.xlu0 %v8795_v42, %s8620_s9  ;;  %775 = vrot.lane.b32.xlu1 %v8795_v42, %s8597_s28 }
 0x17f   :  { %781 = vrot.lane.b32.xlu0 %v8795_v42, %s8616_s22  ;;  %469 = vrot.lane.b32.xlu1 %v8801_v43, %s8620_s9 }
 0x183   :  { %475 = vrot.lane.b32.xlu0 %v8801_v43, %s8597_s28  ;;  %481 = vrot.lane.b32.xlu1 %v8801_v43, %s8616_s22 }
 0x1e1   :  { %v780_v49 = vpop.permute.xlu1 %779  ;;  %v768_v50 = vpop.permute.xlu0 %767 }
 0x1e2   :  { %v801_v53 = vcombine.low %v768_v50, %v780_v49  ;;  %v802_v54 = vcombine.high %v768_v50, %v780_v49 }
 0x1e4   :  { %v809_v60 = vrot.slane %v801_v53, %v8812_v52  ;;  %v816_v61 = vrot.slane %v802_v54, %v8812_v52 }
 0x1e5   :  { %v774_v55 = vpop.permute.xlu0 %773  ;;  %v468_v56 = vpop.permute.xlu1 %467 }
 0x1e6   :  { %v785_v57 = vcombine.low %v418_v38, %v774_v55  ;;  %v786_v58 = vcombine.high %v418_v38, %v774_v55 }
 0x1e8   :  { %v793_v62 = vrot.slane %v785_v57, %v8812_v52  ;;  %v800_v63 = vrot.slane %v786_v58, %v8812_v52 }
 0x1e9   :  { %v474_v1 = vpop.permute.xlu0 %473  ;;  %v480_v2 = vpop.permute.xlu1 %479 }
 0x1ea   :  { %v817_v3 = vcombine.low %v793_v62, %v809_v60  ;;  %v818_v4 = vcombine.high %v793_v62, %v809_v60  ;;  %v833_v5 = vcombine.low %v800_v63, %v816_v61  ;;  %v834_v6 = vcombine.high %v800_v63, %v816_v61 }
 0x1eb   :  { %v485_v7 = vcombine.low %v416_v39, %v474_v1  ;;  %v486_v8 = vcombine.high %v416_v39, %v474_v1  ;;  %v501_v9 = vcombine.low %v468_v56, %v480_v2  ;;  %v502_v10 = vcombine.high %v468_v56, %v480_v2 }
 0x1ec   :  { %v825_v11 = vrot.slane %v817_v3, %v8815_v59  ;;  %v832_v12 = vrot.slane %v818_v4, %v8815_v59  ;;  %v841_v13 = vrot.slane %v833_v5, %v8815_v59  ;;  %v848_v14 = vrot.slane %v834_v6, %v8815_v59 }
 0x1ed   :  { %v493_v15 = vrot.slane %v485_v7, %v8812_v52  ;;  %v500_v16 = vrot.slane %v486_v8, %v8812_v52  ;;  %v509_v17 = vrot.slane %v501_v9, %v8812_v52  ;;  %v516_v18 = vrot.slane %v502_v10, %v8812_v52  ;;  %v770_v19 = vpop.permute.xlu0 %769  ;;  %v776_v20 = vpop.permute.xlu1 %775 }
 0x1ee   :  { %v921_v26 = vcombine.low %v825_v11, %v832_v12  ;;  %v7188_v27 = vcombine.high %v825_v11, %v832_v12  ;;  %v937_v28 = vcombine.low %v841_v13, %v848_v14  ;;  %v853_v39 = vcombine.low %v8795_v42, %v776_v20 }
 0x1ef   :  { %v517_v22 = vcombine.low %v493_v15, %v509_v17  ;;  %v518_v23 = vcombine.high %v493_v15, %v509_v17  ;;  %v533_v24 = vcombine.low %v500_v16, %v516_v18  ;;  %v534_v25 = vcombine.high %v500_v16, %v516_v18 }
 0x1f0   :  { %v854_v40 = vcombine.high %v8795_v42, %v776_v20  ;;  %v7189_v45 = vcombine.high %v841_v13, %v848_v14  ;;  %v861_v49 = vrot.slane %v853_v39, %v8812_v52  ;;  %v8840_v54 = vrot.slane %v921_v26, %v8812_v52 }
 0x1f1   :  { %v525_v30 = vrot.slane %v517_v22, %v8815_v59  ;;  %v532_v34 = vrot.slane %v518_v23, %v8815_v59  ;;  %v541_v35 = vrot.slane %v533_v24, %v8815_v59  ;;  %v548_v36 = vrot.slane %v534_v25, %v8815_v59  ;;  %v782_v37 = vpop.permute.xlu0 %781  ;;  %v470_v38 = vpop.permute.xlu1 %469 }
 0x1f2   :  { %v869_v41 = vcombine.low %v770_v19, %v782_v37  ;;  %v870_v44 = vcombine.high %v770_v19, %v782_v37  ;;  %v868_v50 = vrot.slane %v854_v40, %v8812_v52  ;;  %v8843_v55 = vrot.slane %v7188_v27, %v8812_v52 }
 0x1f3   :  { %v621_v46 = vcombine.low %v525_v30, %v532_v34  ;;  %v7184_v47 = vcombine.high %v525_v30, %v532_v34  ;;  %v637_v48 = vcombine.low %v541_v35, %v548_v36  ;;  %v8846_v42 = vrot.slane %v937_v28, %v8812_v52 }
 0x1f4   :  { %v877_v51 = vrot.slane %v869_v41, %v8812_v52  ;;  %v884_v53 = vrot.slane %v870_v44, %v8812_v52  ;;  %v7185_v56 = vcombine.high %v541_v35, %v548_v36  ;;  %v8849_v1 = vrot.slane %v7189_v45, %v8812_v52 }
 0x1f5   :  { %v476_v62 = vpop.permute.xlu0 %475  ;;  %v482_v63 = vpop.permute.xlu1 %481  ;;  %v8852_v2 = vrot.slane %v621_v46, %v8812_v52  ;;  %v8855_v3 = vrot.slane %v7184_v47, %v8812_v52  ;;  %v8858_v4 = vrot.slane %v637_v48, %v8812_v52  ;;  %v953_v35 = vcombine.low %v8840_v54, %v8843_v55 }
 0x1f6   :  { %v885_v57 = vcombine.low %v861_v49, %v877_v51  ;;  %v886_v58 = vcombine.high %v861_v49, %v877_v51  ;;  %v901_v60 = vcombine.low %v868_v50, %v884_v53  ;;  %v902_v61 = vcombine.high %v868_v50, %v884_v53 }
 0x1f7   :  { %v553_v9 = vcombine.low %v8801_v43, %v476_v62  ;;  %v554_v10 = vcombine.high %v8801_v43, %v476_v62  ;;  %v569_v11 = vcombine.low %v470_v38, %v482_v63  ;;  %v570_v12 = vcombine.high %v470_v38, %v482_v63 }
 0x1f8   :  { %v893_v5 = vrot.slane %v885_v57, %v8815_v59  ;;  %v900_v6 = vrot.slane %v886_v58, %v8815_v59  ;;  %v909_v7 = vrot.slane %v901_v60, %v8815_v59  ;;  %v916_v8 = vrot.slane %v902_v61, %v8815_v59 }
 0x1f9   :  { %v8867_v13 = vrot.slane %v7185_v56, %v8812_v52  ;;  %v561_v17 = vrot.slane %v553_v9, %v8812_v52  ;;  %v568_v18 = vrot.slane %v554_v10, %v8812_v52  ;;  %v577_v19 = vrot.slane %v569_v11, %v8812_v52 }
 0x1fa   :  { %v989_v14 = vcombine.low %v893_v5, %v900_v6  ;;  %v7190_v15 = vcombine.high %v893_v5, %v900_v6  ;;  %v1005_v16 = vcombine.low %v909_v7, %v916_v8  ;;  %v584_v20 = vrot.slane %v570_v12, %v8812_v52 }
 0x1fb   :  { %v653_v22 = vcombine.low %v8852_v2, %v8855_v3  ;;  %v7191_v24 = vcombine.high %v909_v7, %v916_v8  ;;  %v585_v25 = vcombine.low %v561_v17, %v577_v19  ;;  %v586_v26 = vcombine.high %v561_v17, %v577_v19 }
 0x1fc   :  { %v996_v43 = vrot.slane %v989_v14, %v8812_v52  ;;  %v1004_v23 = vrot.slane %v7190_v15, %v8812_v52  ;;  %v601_v27 = vcombine.low %v568_v18, %v584_v20  ;;  %v602_v28 = vcombine.high %v568_v18, %v584_v20 }
 0x1fd   :  { %v669_v30 = vcombine.low %v8858_v4, %v8867_v13  ;;  %v1012_v34 = vrot.slane %v1005_v16, %v8812_v52  ;;  %v969_v36 = vcombine.low %v8846_v42, %v8849_v1  ;;  %v593_v37 = vrot.slane %v585_v25, %v8815_v59 }
 0x1fe   :  { %v600_v38 = vrot.slane %v586_v26, %v8815_v59  ;;  %v609_v39 = vrot.slane %v601_v27, %v8815_v59  ;;  %v616_v40 = vrot.slane %v602_v28, %v8815_v59  ;;  %v1020_v41 = vrot.slane %v7191_v24, %v8812_v52 }
 0x1ff   :  { %v961_v44 = vrot.slane %v953_v35, %v8815_v59  ;;  %v977_v45 = vrot.slane %v969_v36, %v8815_v59  ;;  %v1021_v46 = vcombine.low %v996_v43, %v1004_v23  ;;  %v661_v53 = vrot.slane %v653_v22, %v8815_v59 }
 0x200   :  { %v689_v47 = vcombine.low %v593_v37, %v600_v38  ;;  %v7186_v48 = vcombine.high %v593_v37, %v600_v38  ;;  %v705_v49 = vcombine.low %v609_v39, %v616_v40  ;;  %v7187_v50 = vcombine.high %v609_v39, %v616_v40 }
 0x201   :  { %v985_v51 = vcombine.low %v961_v44, %v977_v45  ;;  %v677_v62 = vrot.slane %v669_v30, %v8815_v59  ;;  %v8898_v63 = vrot.slane %v1021_v46, %v8815_v59  ;;  %v1037_v5 = vcombine.low %v1012_v34, %v1020_v41 }
 0x202   :  { %v696_v56 = vrot.slane %v689_v47, %v8812_v52  ;;  %v704_v57 = vrot.slane %v7186_v48, %v8812_v52  ;;  %v712_v58 = vrot.slane %v705_v49, %v8812_v52  ;;  %v720_v60 = vrot.slane %v7187_v50, %v8812_v52 }
 0x203   :  { %v1057_v61 = vpack.c.bf16 %v985_v51, %v985_v51  ;;  %v986_v8 = vcombine.high %v961_v44, %v977_v45  ;;  %v1045_v10 = vrot.slane %v1037_v5, %v8815_v59  ;;  %v954_v11 = vcombine.high %v8840_v54, %v8843_v55 }
 0x204   :  { %v721_v6 = vcombine.low %v696_v56, %v704_v57  ;;  %v737_v7 = vcombine.low %v712_v58, %v720_v60  ;;  %v970_v12 = vcombine.high %v8846_v42, %v8849_v1  ;;  %v685_v14 = vcombine.low %v661_v53, %v677_v62 }
 0x205   :  { %v1370_v9 = vsel %vm1365_vm1, %v1057_v61, 0  ;;  %v1053_v15 = vcombine.low %v8898_v63, %v1045_v10  ;;  %v1022_v16 = vcombine.high %v996_v43, %v1004_v23  ;;  %v1038_v17 = vcombine.high %v1012_v34, %v1020_v41 }
 0x206   :  { %7704 = vmatpush3.bf16.xpose.msra.mxu1 %v1370_v9  ;;  %v1058_v18 = vpack.c.bf16 %v986_v8, %v986_v8  ;;  %v968_v19 = vrot.slane %v954_v11, %v8815_v59  ;;  %v8910_v20 = vrot.slane %v721_v6, %v8815_v59  ;;  %v8913_v22 = vrot.slane %v737_v7, %v8815_v59  ;;  %v458_v6 = vpop.f32.mrf.mxu1 }
 0x207   :  { %7709 = vmatprep.subr.bf16.mxu1 %v8618_v21  ;;  %v1061_v54 = vpack.c.bf16 %v1053_v15, %v1053_v15  ;;  %v984_v55 = vrot.slane %v970_v12, %v8815_v59  ;;  %v1036_v42 = vrot.slane %v1022_v16, %v8815_v59  ;;  %v1052_v1 = vrot.slane %v1038_v17, %v8815_v59 }
 0x208   :  { %v757_v24 = vpack.c.bf16 %v685_v14, %v685_v14  ;;  %v722_v25 = vcombine.high %v696_v56, %v704_v57  ;;  %v738_v26 = vcombine.high %v712_v58, %v720_v60  ;;  %v1416_v27 = vsel %vm1365_vm1, %v1058_v18, 0  ;;  %v7701_v9 = vpop.f32.mrf.mxu1 }
 0x209   :  { %v1554_v43 = vsel %vm1365_vm1, %v1061_v54, 0  ;;  %v1055_v23 = vcombine.low %v1036_v42, %v1052_v1  ;;  %v987_v28 = vcombine.low %v968_v19, %v984_v55  ;;  %v753_v30 = vcombine.low %v8910_v20, %v8913_v22 }
 0x20a   :  { %7728 = vmatpush3.bf16.xpose.msra.mxu0 %v1554_v43  ;;  %v654_v34 = vcombine.high %v8852_v2, %v8855_v3  ;;  %v670_v35 = vcombine.high %v8858_v4, %v8867_v13  ;;  %v686_v36 = vcombine.high %v661_v53, %v677_v62  ;;  %v736_v40 = vrot.slane %v722_v25, %v8815_v59  ;;  %v461_v11 = vpop.f32.mrf.mxu1 }
 0x20b   :  { %7739 = vmatprep.subr.bf16.mxu0 %v8618_v21  ;;  %v1063_v37 = vpack.c.bf16 %v1055_v23, %v1055_v23  ;;  %v1059_v38 = vpack.c.bf16 %v987_v28, %v987_v28  ;;  %v761_v39 = vpack.c.bf16 %v753_v30, %v753_v30  ;;  %v752_v41 = vrot.slane %v738_v26, %v8815_v59 }
 0x20c   :  { %v758_v44 = vpack.c.bf16 %v686_v36, %v686_v36  ;;  %v668_v2 = vrot.slane %v654_v34, %v8815_v59  ;;  %v684_v3 = vrot.slane %v670_v35, %v8815_v59  ;;  %v988_v13 = vcombine.high %v968_v19, %v984_v55  ;;  %v7702_v14 = vpop.f32.mrf.mxu1 }
 0x20d   :  { %7706 = vmatmul.mubr.msk.bf16.vlgmr.msra.gmra.mxu1 %vm1365_vm1, %v757_v24  ;;  %v1646_v45 = vsel %vm1365_vm1, %v1063_v37, 0  ;;  %v1462_v4 = vsel %vm1365_vm1, %v1059_v38, 0  ;;  %v755_v46 = vcombine.low %v736_v40, %v752_v41  ;;  %v1054_v53 = vcombine.high %v8898_v63, %v1045_v10 }
 0x20e   :  { %7710 = vmatpush3.bf16.xpose.msra.mxu1 %v1416_v27  ;;  %7711 = vmatprep.mubr.msk.bf16.mxu1 %vm8619_vm0, %v8618_v21  ;;  %v687_v47 = vcombine.low %v668_v2, %v684_v3  ;;  %v1060_v48 = vpack.c.bf16 %v988_v13, %v988_v13  ;;  %v688_v56 = vcombine.high %v668_v2, %v684_v3  ;;  %v8955_v58 = vsub.s32 2, %v8767_v29 }
 0x20f   :  { %7715 = vmatprep.subr.bf16.mxu1 %v8618_v21  ;;  %v763_v49 = vpack.c.bf16 %v755_v46, %v755_v46  ;;  %v1062_v57 = vpack.c.bf16 %v1054_v53, %v1054_v53  ;;  %v1056_v62 = vcombine.high %v1036_v42, %v1052_v1  ;;  %v754_v5 = vcombine.high %v8910_v20, %v8913_v22 }
 0x210   :  { %v759_v50 = vpack.c.bf16 %v687_v47, %v687_v47  ;;  %v1508_v51 = vsel %vm1365_vm1, %v1060_v48, 0  ;;  %v760_v60 = vpack.c.bf16 %v688_v56, %v688_v56  ;;  %v249_v63 = vrot.slane %v8774_v32, %v8955_v58 }
 0x211   :  { %7730 = vmatmul.mubr.msk.bf16.vlgmr.msra.gmra.mxu0 %vm1365_vm1, %v761_v39  ;;  %v1600_v61 = vsel %vm1365_vm1, %v1062_v57, 0  ;;  %v1064_v7 = vpack.c.bf16 %v1056_v62, %v1056_v62  ;;  %v762_v10 = vpack.c.bf16 %v754_v5, %v754_v5  ;;  %v756_v15 = vcombine.high %v736_v40, %v752_v41 }
 0x212   :  { %7740 = vmatpush3.bf16.xpose.msra.mxu0 %v1646_v45  ;;  %7741 = vmatprep.mubr.msk.bf16.mxu0 %vm8619_vm0, %v8618_v21  ;;  %v8966_v8 = vadd.f32 %v458_v6, %v249_v63  ;;  %v8972_v12 = vadd.f32 %v461_v11, %v249_v63 }
 0x213   :  { %7751 = vmatprep.subr.bf16.mxu0 %v8618_v21  ;;  %v1692_v32 = vsel %vm1365_vm1, %v1064_v7, 0  ;;  %v764_v16 = vpack.c.bf16 %v756_v15, %v756_v15 }
 0x214   :  { %1067 = vrot.lane.b32.xlu1 %v8966_v8, %s8620_s9 }
 0x215   :  { %7712 = vmatmul.mubr.msk.bf16.vlgmr.msra.gmra.mxu1 %vm1365_vm1, %v758_v44 }
 0x216   :  { %7716 = vmatpush3.bf16.xpose.msra.mxu1 %v1462_v4  ;;  %7717 = vmatprep.mubr.msk.bf16.mxu1 %vm8619_vm0, %v8618_v21 }
 0x217   :  { %7721 = vmatprep.subr.bf16.mxu1 %v8618_v21 }
 0x219   :  { %7742 = vmatmul.mubr.msk.bf16.vlgmr.msra.gmra.mxu0 %vm1365_vm1, %v763_v49 }
 0x21a   :  { %7753 = vmatprep.mubr.msk.bf16.mxu0 %vm8619_vm0, %v8618_v21 }
 0x21d   :  { %7718 = vmatmul.mubr.msk.bf16.vlgmr.msra.gmra.mxu1 %vm1365_vm1, %v759_v50 }
 0x21e   :  { %7722 = vmatpush3.bf16.xpose.msra.mxu1 %v1508_v51  ;;  %7723 = vmatprep.mubr.msk.bf16.mxu1 %vm8619_vm0, %v8618_v21 }
 0x21f   :  { %7733 = vmatprep.subr.bf16.mxu1 %v8618_v21 }
 0x225   :  { %7724 = vmatmul.mubr.msk.bf16.vlgmr.msra.gmra.mxu1 %vm1365_vm1, %v760_v60 }
 0x226   :  { %7734 = vmatpush3.bf16.xpose.msra.mxu1 %v1600_v61  ;;  %7735 = vmatprep.mubr.msk.bf16.mxu1 %vm8619_vm0, %v8618_v21 }
 0x227   :  { %7745 = vmatprep.subr.bf16.mxu1 %v8618_v21 }
 0x22d   :  { %7736 = vmatmul.mubr.msk.bf16.vlgmr.msra.gmra.mxu1 %vm1365_vm1, %v762_v10 }
 0x22e   :  { %7746 = vmatpush3.bf16.xpose.msra.mxu1 %v1692_v32  ;;  %7747 = vmatprep.mubr.msk.bf16.mxu1 %vm8619_vm0, %v8618_v21 }
 0x22f   :  { %7757 = vmatprep.subr.bf16.mxu1 %v8618_v21 }
 0x235   :  { %7748 = vmatmul.mubr.msk.bf16.vlgmr.msra.gmra.mxu1 %vm1365_vm1, %v764_v16 }
 0x236   :  { %7759 = vmatprep.mubr.msk.bf16.mxu1 %vm8619_vm0, %v8618_v21 }
 0x286   :  { %v1068_v62 = vpop.permute.xlu1 %1067 }
 0x2cd   :  { %v1406_v17 = vpop.f32.mrf.mxu1 }
 0x2ce   :  { %v1735_v18 = vsel %vm1734_vm2, %v1406_v17, -inf }
 0x2cf   :  { %1736 = vmax.xlane.f32.xlu0 %v1735_v18  ;;  %v7707_v19 = vpop.f32.mrf.mxu1 }
 0x2d1   :  { %v1409_v20 = vpop.f32.mrf.mxu1  ;;  %v1590_v54 = vpop.f32.mrf.mxu0 }
 0x2d2   :  { %v1747_v55 = vsel %vm1734_vm2, %v1590_v54, -inf }
 0x2d3   :  { %v7708_v22 = vpop.f32.mrf.mxu1  ;;  %1748 = vmax.xlane.f32.xlu1 %v1747_v55  ;;  %v7731_v1 = vpop.f32.mrf.mxu0 }
 0x2d5   :  { %v1452_v42 = vpop.f32.mrf.mxu1  ;;  %v1593_v43 = vpop.f32.mrf.mxu0 }
 0x2d6   :  { %v1738_v23 = vsel %vm1734_vm2, %v1452_v42, -inf }
 0x2d7   :  { %v7713_v24 = vpop.f32.mrf.mxu1  ;;  %1739 = vmax.xlane.f32.xlu1 %v1738_v23  ;;  %v7732_v26 = vpop.f32.mrf.mxu0 }
 0x2d9   :  { %v1455_v25 = vpop.f32.mrf.mxu1  ;;  %v8983_v28 = vpop.f32.mrf.mxu0 }
 0x2da   :  { %v1753_v30 = vsel %vm1734_vm2, %v8983_v28, -inf }
 0x2db   :  { %v7714_v27 = vpop.f32.mrf.mxu1  ;;  %1754 = vmax.xlane.f32.xlu1 %v1753_v30  ;;  %v7743_v35 = vpop.f32.mrf.mxu0 }
 0x2dd   :  { %v1498_v34 = vpop.f32.mrf.mxu1  ;;  %v1685_v38 = vpop.f32.mrf.mxu0 }
 0x2de   :  { %v1741_v36 = vsel %vm1734_vm2, %v1498_v34, -inf }
 0x2df   :  { %1742 = vmax.xlane.f32.xlu0 %v1741_v36  ;;  %v7719_v37 = vpop.f32.mrf.mxu1  ;;  %v7744_v40 = vpop.f32.mrf.mxu0 }
 0x2e1   :  { %v1501_v39 = vpop.f32.mrf.mxu1 }
 0x2e3   :  { %v7720_v41 = vpop.f32.mrf.mxu1 }
 0x2e5   :  { %v1544_v44 = vpop.f32.mrf.mxu1 }
 0x2e6   :  { %v1744_v45 = vsel %vm1734_vm2, %v1544_v44, -inf }
 0x2e7   :  { %1745 = vmax.xlane.f32.xlu0 %v1744_v45  ;;  %v7725_v2 = vpop.f32.mrf.mxu1 }
 0x2e9   :  { %v1547_v3 = vpop.f32.mrf.mxu1 }
 0x2eb   :  { %v7726_v4 = vpop.f32.mrf.mxu1 }
 0x2ec   :  { %1079 = vrot.lane.b32.xlu1 %v8966_v8, %s8616_s22 }
 0x2ed   :  { %v8989_v13 = vpop.f32.mrf.mxu1 }
 0x2ee   :  { %v1750_v46 = vsel %vm1734_vm2, %v8989_v13, -inf }
 0x2ef   :  { %1751 = vmax.xlane.f32.xlu0 %v1750_v46  ;;  %v7737_v47 = vpop.f32.mrf.mxu1 }
 0x2f1   :  { %v1639_v48 = vpop.f32.mrf.mxu1 }
 0x2f3   :  { %v7738_v49 = vpop.f32.mrf.mxu1 }
 0x2f5   :  { %v8995_v50 = vpop.f32.mrf.mxu1 }
 0x2f6   :  { %v1756_v51 = vsel %vm1734_vm2, %v8995_v50, -inf }
 0x2f7   :  { %1757 = vmax.xlane.f32.xlu0 %v1756_v51  ;;  %v7749_v53 = vpop.f32.mrf.mxu1 }
 0x2f9   :  { %v1731_v56 = vpop.f32.mrf.mxu1 }
 0x2fb   :  { %v7750_v57 = vpop.f32.mrf.mxu1 }
 0x30d   :  { %1073 = vrot.lane.b32.xlu0 %v8966_v8, %s8597_s28 }
 0x358   :  { %v1737_v60 = vpop.xlane.xlu0 %1736 }
 0x359   :  { %v1759_v61 = vsub.f32 %v1406_v17, %v1737_v60 }
 0x35b   :  { %v1767_v63 = vmul.f32 1.442695, %v1759_v61 }
 0x35c   :  { %v1749_v5 = vpop.xlane.xlu1 %1748 }
 0x35d   :  { %8257 = vpow2.f32 %v1767_v63  ;;  %v1763_v6 = vsub.f32 %v1590_v54, %v1749_v5 }
 0x35f   :  { %v1775_v7 = vmul.f32 1.442695, %v1763_v6 }
 0x360   :  { %v1740_v9 = vpop.xlane.xlu1 %1739 }
 0x361   :  { %8259 = vpow2.f32 %v1775_v7  ;;  %v1760_v10 = vsub.f32 %v1452_v42, %v1740_v9 }
 0x363   :  { %v1769_v11 = vmul.f32 1.442695, %v1760_v10 }
 0x364   :  { %v1755_v24 = vpop.xlane.xlu1 %1754 }
 0x365   :  { %8261 = vpow2.f32 %v1769_v11 }
 0x368   :  { %v1743_v32 = vpop.xlane.xlu0 %1742  ;;  %v1080_v25 = vpop.permute.xlu1 %1079 }
 0x369   :  { %v1761_v14 = vsub.f32 %v1498_v34, %v1743_v32  ;;  %v1101_v30 = vcombine.low %v1068_v62, %v1080_v25  ;;  %v1102_v34 = vcombine.high %v1068_v62, %v1080_v25 }
 0x36a   :  { %v9001_v15 = vpop.eup %8257 }
 0x36b   :  { %v1771_v16 = vmul.f32 1.442695, %v1761_v14  ;;  %v1783_v18 = vsel %vm1734_vm2, %v9001_v15, 0.0  ;;  %v1109_v39 = vrot.slane %v1101_v30, %v8812_v52  ;;  %v1116_v40 = vrot.slane %v1102_v34, %v8812_v52 }
 0x36c   :  { %1784 = vadd.xlane.f32.xlu1 %v1783_v18  ;;  %v1765_v30 = vsub.f32 %v8983_v28, %v1755_v24 }
 0x36d   :  { %8263 = vpow2.f32 %v1771_v16 }
 0x36e   :  { %v9005_v17 = vpop.eup %8259  ;;  %v1779_v34 = vmul.f32 1.442695, %v1765_v30 }
 0x36f   :  { %v1795_v22 = vsel %vm1734_vm2, %v9005_v17, 0.0 }
 0x370   :  { %v1746_v19 = vpop.xlane.xlu0 %1745  ;;  %1796 = vadd.xlane.f32.xlu0 %v1795_v22 }
 0x371   :  { %v1762_v20 = vsub.f32 %v1544_v44, %v1746_v19 }
 0x372   :  { %v9009_v55 = vpop.eup %8261 }
 0x373   :  { %v1773_v54 = vmul.f32 1.442695, %v1762_v20  ;;  %v1786_v42 = vsel %vm1734_vm2, %v9009_v55, 0.0 }
 0x374   :  { %1787 = vadd.xlane.f32.xlu0 %v1786_v42 }
 0x375   :  { %8265 = vpow2.f32 %v1773_v54 }
 0x378   :  { %v1752_v23 = vpop.xlane.xlu0 %1751 }
 0x379   :  { %v1764_v54 = vsub.f32 %v8989_v13, %v1752_v23 }
 0x37a   :  { %v9013_v1 = vpop.eup %8263 }
 0x37b   :  { %v1789_v43 = vsel %vm1734_vm2, %v9013_v1, 0.0  ;;  %v1777_v25 = vmul.f32 1.442695, %v1764_v54 }
 0x37c   :  { %1790 = vadd.xlane.f32.xlu1 %v1789_v43 }
 0x37d   :  { %8267 = vpow2.f32 %v1777_v25 }
 0x37e   :  { %8269 = vpow2.f32 %v1779_v34 }
 0x380   :  { %v9017_v26 = vpop.xlane.xlu0 %1757 }
 0x381   :  { %v1766_v28 = vsub.f32 %v8995_v50, %v9017_v26 }
 0x382   :  { %v9019_v27 = vpop.eup %8265 }
 0x383   :  { %v1792_v35 = vsel %vm1734_vm2, %v9019_v27, 0.0  ;;  %v1781_v24 = vmul.f32 1.442695, %v1766_v28 }
 0x384   :  { %v1074_v36 = vpop.permute.xlu0 %1073  ;;  %1793 = vadd.xlane.f32.xlu0 %v1792_v35 }
 0x385   :  { %v1085_v37 = vcombine.low %v8966_v8, %v1074_v36  ;;  %v1086_v38 = vcombine.high %v8966_v8, %v1074_v36  ;;  %8271 = vpow2.f32 %v1781_v24 }
 0x387   :  { %v1093_v41 = vrot.slane %v1085_v37, %v8812_v52  ;;  %v1100_v44 = vrot.slane %v1086_v38, %v8812_v52 }
 0x389   :  { %v1117_v45 = vcombine.low %v1093_v41, %v1109_v39  ;;  %v1118_v2 = vcombine.high %v1093_v41, %v1109_v39  ;;  %v1133_v3 = vcombine.low %v1100_v44, %v1116_v40  ;;  %v1134_v4 = vcombine.high %v1100_v44, %v1116_v40 }
 0x38a   :  { %v9051_v13 = vpop.eup %8267 }
 0x38b   :  { %v1125_v46 = vrot.slane %v1117_v45, %v8815_v59  ;;  %v1132_v47 = vrot.slane %v1118_v2, %v8815_v59  ;;  %v1141_v48 = vrot.slane %v1133_v3, %v8815_v59  ;;  %v1148_v8 = vrot.slane %v1134_v4, %v8815_v59  ;;  %v9055_v35 = vpop.eup %8269 }
 0x38c   :  { %v1798_v23 = vsel %vm1734_vm2, %v9051_v13, 0.0  ;;  %v1801_v36 = vsel %vm1734_vm2, %v9055_v35, 0.0 }
 0x38d   :  { %v1221_v49 = vcombine.low %v1125_v46, %v1132_v47  ;;  %v7192_v51 = vcombine.high %v1125_v46, %v1132_v47  ;;  %v1237_v53 = vcombine.low %v1141_v48, %v1148_v8  ;;  %v7193_v56 = vcombine.high %v1141_v48, %v1148_v8  ;;  %1075 = vrot.lane.b32.xlu1 %v8972_v12, %s8597_s28 }
 0x38f   :  { %v1228_v57 = vrot.slane %v1221_v49, %v8812_v52  ;;  %v1236_v60 = vrot.slane %v7192_v51, %v8812_v52  ;;  %v1244_v61 = vrot.slane %v1237_v53, %v8812_v52  ;;  %v1252_v62 = vrot.slane %v7193_v56, %v8812_v52 }
 0x391   :  { %v1253_v63 = vcombine.low %v1228_v57, %v1236_v60  ;;  %v1269_v5 = vcombine.low %v1244_v61, %v1252_v62  ;;  %v1254_v6 = vcombine.high %v1228_v57, %v1236_v60  ;;  %v1270_v7 = vcombine.high %v1244_v61, %v1252_v62 }
 0x392   :  { %v9063_v37 = vpop.eup %8271 }
 0x393   :  { %v1261_v9 = vrot.slane %v1253_v63, %v8815_v59  ;;  %v1277_v10 = vrot.slane %v1269_v5, %v8815_v59  ;;  %v1268_v11 = vrot.slane %v1254_v6, %v8815_v59  ;;  %v1284_v32 = vrot.slane %v1270_v7, %v8815_v59 }
 0x394   :  { %v1804_v38 = vsel %vm1734_vm2, %v9063_v37, 0.0 }
 0x395   :  { %v1285_v14 = vcombine.low %v1261_v9, %v1277_v10  ;;  %v1286_v16 = vcombine.high %v1261_v9, %v1277_v10  ;;  %v1287_v18 = vcombine.low %v1268_v11, %v1284_v32  ;;  %v1288_v19 = vcombine.high %v1268_v11, %v1284_v32 }
 0x397   :  { %v1357_v20 = vpack.c.bf16 %v1285_v14, %v1285_v14  ;;  %v1358_v22 = vpack.c.bf16 %v1286_v16, %v1286_v16  ;;  %v1359_v2 = vpack.c.bf16 %v1287_v18, %v1287_v18 }
 0x399   :  { %v1836_v42 = vsel %vm1834_vm3, %v1357_v20, 0  ;;  %v1882_v43 = vsel %vm1834_vm3, %v1358_v22, 0  ;;  %v1928_v26 = vsel %vm1834_vm3, %v1359_v2, 0 }
 0x39a   :  { %1069 = vrot.lane.b32.xlu0 %v8972_v12, %s8620_s9  ;;  %7752 = vmatpush3.bf16.msra.mxu0 %v1836_v42 }
 0x39b   :  { %7758 = vmatpush3.bf16.msra.mxu1 %v1882_v43  ;;  %7763 = vmatprep.subr.bf16.mxu0 %v8618_v21 }
 0x39c   :  { %7769 = vmatprep.subr.bf16.mxu1 %v8618_v21 }
 0x3b1   :  { %1799 = vadd.xlane.f32.xlu1 %v1798_v23 }
 0x3b9   :  { %1802 = vadd.xlane.f32.xlu0 %v1801_v36 }
 0x3c2   :  { %1081 = vrot.lane.b32.xlu1 %v8972_v12, %s8616_s22 }
 0x3e6   :  { %1805 = vadd.xlane.f32.xlu1 %v1804_v38 }
 0x3f5   :  { %v1785_v39 = vpop.xlane.xlu1 %1784 }
 0x3f6   :  { %8273 = vrcp.f32 %v1785_v39 }
 0x3f9   :  { %v1797_v40 = vpop.xlane.xlu0 %1796 }
 0x3fd   :  { %v1788_v41 = vpop.xlane.xlu0 %1787 }
 0x3fe   :  { %8275 = vrcp.f32 %v1788_v41 }
 0x403   :  { %v8274_v44 = vpop.eup %8273 }
 0x404   :  { %v1815_v45 = vmul.f32 %v8274_v44, %v9001_v15  ;;  %v1360_v15 = vpack.c.bf16 %v1288_v19, %v1288_v19 }
 0x405   :  { %v1791_v3 = vpop.xlane.xlu1 %1790 }
 0x406   :  { %8277 = vrcp.f32 %v1791_v3  ;;  %v1823_v50 = vpack.c.bf16 %v1815_v45, %v1815_v45  ;;  %v1974_v8 = vsel %vm1834_vm3, %v1360_v15, 0 }
 0x408   :  { %7754 = vmatmul.mubr.msk.bf16.vlgmr.msra.gmra.mxu0 %vm1734_vm2, %v1823_v50 }
 0x409   :  { %7764 = vmatpush3.bf16.msra.mxu0 %v1928_v26  ;;  %7765 = vmatprep.mubr.msk.bf16.mxu0 %vm8619_vm0, %v8618_v21  ;;  %v1076_v60 = vpop.permute.xlu1 %1075 }
 0x40a   :  { %7775 = vmatprep.subr.bf16.mxu0 %v8618_v21  ;;  %v1154_v62 = vcombine.high %v8972_v12, %v1076_v60 }
 0x40b   :  { %v8276_v4 = vpop.eup %8275 }
 0x40c   :  { %v1816_v47 = vmul.f32 %v8276_v4, %v9009_v55 }
 0x40d   :  { %v1794_v46 = vpop.xlane.xlu0 %1793 }
 0x40e   :  { %8279 = vrcp.f32 %v1794_v46  ;;  %v1824_v48 = vpack.c.bf16 %v1816_v47, %v1816_v47 }
 0x40f   :  { %8281 = vrcp.f32 %v1797_v40 }
 0x410   :  { %7760 = vmatmul.mubr.msk.bf16.vlgmr.msra.gmra.mxu1 %vm1734_vm2, %v1824_v48 }
 0x411   :  { %7770 = vmatpush3.bf16.msra.mxu1 %v1974_v8  ;;  %7771 = vmatprep.mubr.msk.bf16.mxu1 %vm8619_vm0, %v8618_v21  ;;  %v1070_v63 = vpop.permute.xlu0 %1069 }
 0x412   :  { %7781 = vmatprep.subr.bf16.mxu1 %v8618_v21 }
 0x413   :  { %v8278_v49 = vpop.eup %8277 }
 0x414   :  { %v1817_v51 = vmul.f32 %v8278_v49, %v9013_v1  ;;  %v1153_v1 = vcombine.low %v8972_v12, %v1076_v60 }
 0x416   :  { %v1825_v53 = vpack.c.bf16 %v1817_v51, %v1817_v51  ;;  %v1161_v9 = vrot.slane %v1153_v1, %v8812_v52 }
 0x418   :  { %7766 = vmatmul.mubr.msk.bf16.vlgmr.msra.gmra.mxu0 %vm1734_vm2, %v1825_v53 }
 0x419   :  { %7777 = vmatprep.mubr.msk.bf16.mxu0 %vm8619_vm0, %v8618_v21 }
 0x41b   :  { %v8280_v55 = vpop.eup %8279 }
 0x41c   :  { %v1818_v56 = vmul.f32 %v8280_v55, %v9019_v27  ;;  %v1168_v27 = vrot.slane %v1154_v62, %v8812_v52  ;;  %v8282_v41 = vpop.eup %8281 }
 0x41d   :  { %v1819_v8 = vmul.f32 %v8282_v41, %v9005_v17 }
 0x41e   :  { %v1826_v57 = vpack.c.bf16 %v1818_v56, %v1818_v56 }
 0x41f   :  { %v1827_v60 = vpack.c.bf16 %v1819_v8, %v1819_v8 }
 0x420   :  { %7772 = vmatmul.mubr.msk.bf16.vlgmr.msra.gmra.mxu1 %vm1734_vm2, %v1826_v57 }
 0x421   :  { %7783 = vmatprep.mubr.msk.bf16.mxu1 %vm8619_vm0, %v8618_v21 }
 0x43a   :  { %v1800_v61 = vpop.xlane.xlu1 %1799 }
 0x43b   :  { %8283 = vrcp.f32 %v1800_v61 }
 0x43e   :  { %v1082_v5 = vpop.permute.xlu1 %1081 }
 0x43f   :  { %v1169_v6 = vcombine.low %v1070_v63, %v1082_v5  ;;  %v1170_v7 = vcombine.high %v1070_v63, %v1082_v5 }
 0x441   :  { %v1177_v10 = vrot.slane %v1169_v6, %v8812_v52  ;;  %v1184_v11 = vrot.slane %v1170_v7, %v8812_v52 }
 0x442   :  { %v1803_v54 = vpop.xlane.xlu0 %1802 }
 0x443   :  { %v1185_v32 = vcombine.low %v1161_v9, %v1177_v10  ;;  %v1186_v14 = vcombine.high %v1161_v9, %v1177_v10  ;;  %v1201_v16 = vcombine.low %v1168_v27, %v1184_v11  ;;  %v1202_v18 = vcombine.high %v1168_v27, %v1184_v11 }
 0x444   :  { %8285 = vrcp.f32 %v1803_v54 }
 0x445   :  { %v1193_v12 = vrot.slane %v1185_v32, %v8815_v59  ;;  %v1200_v19 = vrot.slane %v1186_v14, %v8815_v59  ;;  %v1209_v20 = vrot.slane %v1201_v16, %v8815_v59  ;;  %v1216_v22 = vrot.slane %v1202_v18, %v8815_v59 }
 0x447   :  { %v1289_v42 = vcombine.low %v1193_v12, %v1200_v19  ;;  %v7194_v43 = vcombine.high %v1193_v12, %v1200_v19  ;;  %v1305_v25 = vcombine.low %v1209_v20, %v1216_v22  ;;  %v7195_v30 = vcombine.high %v1209_v20, %v1216_v22  ;;  %v8049_v22 = vld [vmem:[#allocation8 + $0x38] sm:$0xff]  }
 0x448   :  { %v8284_v50 = vpop.eup %8283 }
 0x449   :  { %v1296_v34 = vrot.slane %v1289_v42, %v8812_v52  ;;  %v1304_v23 = vrot.slane %v7194_v43, %v8812_v52  ;;  %v1312_v36 = vrot.slane %v1305_v25, %v8812_v52  ;;  %v1320_v28 = vrot.slane %v7195_v30, %v8812_v52 }
 0x44a   :  { %v1820_v49 = vmul.f32 %v8284_v50, %v9051_v13 }
 0x44b   :  { %v1321_v24 = vcombine.low %v1296_v34, %v1304_v23  ;;  %v1337_v38 = vcombine.low %v1312_v36, %v1320_v28  ;;  %v1322_v39 = vcombine.high %v1296_v34, %v1304_v23  ;;  %v1338_v40 = vcombine.high %v1312_v36, %v1320_v28  ;;  %v8051_v34 = vld [vmem:[#allocation8 + $0x28] sm:$0xff]  }
 0x44c   :  { %v1828_v61 = vpack.c.bf16 %v1820_v49, %v1820_v49  ;;  %v8053_v49 = vld [vmem:[#allocation8 + $0x18] sm:$0xff]  }
 0x44d   :  { %v1329_v44 = vrot.slane %v1321_v24, %v8815_v59  ;;  %v1345_v45 = vrot.slane %v1337_v38, %v8815_v59  ;;  %v1336_v2 = vrot.slane %v1322_v39, %v8815_v59  ;;  %v1352_v3 = vrot.slane %v1338_v40, %v8815_v59 }
 0x44f   :  { %v1353_v26 = vcombine.low %v1329_v44, %v1345_v45  ;;  %v1354_v4 = vcombine.high %v1329_v44, %v1345_v45  ;;  %v1355_v46 = vcombine.low %v1336_v2, %v1352_v3  ;;  %v1356_v47 = vcombine.high %v1336_v2, %v1352_v3  ;;  %v8052_v2 = vld [vmem:[#allocation8 + $0x20] sm:$0xff]  }
 0x451   :  { %v1361_v15 = vpack.c.bf16 %v1353_v26, %v1353_v26  ;;  %v1362_v48 = vpack.c.bf16 %v1354_v4, %v1354_v4  ;;  %v1363_v55 = vpack.c.bf16 %v1355_v46, %v1355_v46  ;;  %v1364_v56 = vpack.c.bf16 %v1356_v47, %v1356_v47  ;;  %v8286_v57 = vpop.eup %8285 }
 0x452   :  { %v1821_v1 = vmul.f32 %v8286_v57, %v9055_v35 }
 0x453   :  { %v2020_v51 = vsel %vm1834_vm3, %v1361_v15, 0  ;;  %v2066_v53 = vsel %vm1834_vm3, %v1362_v48, 0  ;;  %v2112_v17 = vsel %vm1834_vm3, %v1363_v55, 0  ;;  %v2158_v13 = vsel %vm1834_vm3, %v1364_v56, 0 }
 0x454   :  { %7776 = vmatpush3.bf16.msra.mxu0 %v2020_v51  ;;  %7782 = vmatpush3.bf16.msra.mxu1 %v2066_v53  ;;  %v1829_v62 = vpack.c.bf16 %v1821_v1, %v1821_v1 }
 0x455   :  { %7787 = vmatprep.subr.bf16.mxu0 %v8618_v21  ;;  %7793 = vmatprep.subr.bf16.mxu1 %v8618_v21 }
 0x457   :  { %7778 = vmatmul.mubr.msk.bf16.vlgmr.msra.gmra.mxu0 %vm1734_vm2, %v1827_v60  ;;  %7784 = vmatmul.mubr.msk.bf16.vlgmr.msra.gmra.mxu1 %vm1734_vm2, %v1828_v61 }
 0x458   :  { %7788 = vmatpush3.bf16.msra.mxu0 %v2112_v17  ;;  %7794 = vmatpush3.bf16.msra.mxu1 %v2158_v13  ;;  %v8054_v13 = vld [vmem:[#allocation8 + $0x10] sm:$0xff]  }
 0x459   :  { %7789 = vmatprep.mubr.msk.bf16.mxu0 %vm8619_vm0, %v8618_v21  ;;  %7795 = vmatprep.mubr.msk.bf16.mxu1 %vm8619_vm0, %v8618_v21 }
 0x45a   :  { %7799 = vmatprep.subr.bf16.mxu0 %v8618_v21 }
 0x45f   :  { %7790 = vmatmul.mubr.msk.bf16.vlgmr.msra.gmra.mxu0 %vm1734_vm2, %v1829_v62 }
 0x460   :  { %7815 = vmatprep.mubr.msk.bf16.mxu0 %vm8619_vm0, %v8618_v21  ;;  %7800 = vmatpush3.bf16.msra.mxu0 %v8049_v22 }
 0x461   :  { %7801 = vmatprep.subr.bf16.mxu0 %v8618_v21 }
 0x46f   :  { %v1806_v63 = vpop.xlane.xlu1 %1805 }
 0x470   :  { %8287 = vrcp.f32 %v1806_v63 }
 0x47d   :  { %v8288_v5 = vpop.eup %8287 }
 0x47e   :  { %v1822_v6 = vmul.f32 %v8288_v5, %v9063_v37  ;;  %v8050_v37 = vld [vmem:[#allocation8 + $0x30] sm:$0xff]  }
 0x47f   :  { %7802 = vmatpush3.bf16.msra.mxu0 %v8050_v37 }
 0x480   :  { %v1830_v7 = vpack.c.bf16 %v1822_v6, %v1822_v6  ;;  %7803 = vmatprep.subr.bf16.mxu0 %v8618_v21 }
 0x482   :  { %7796 = vmatmul.mubr.msk.bf16.vlgmr.msra.gmra.mxu1 %vm1734_vm2, %v1830_v7 }
 0x483   :  { %2907 = vmatprep.mubr.bf16.mxu1 %v8617_v0  ;;  %7804 = vmatpush3.bf16.msra.mxu0 %v8051_v34 }
 0x484   :  { %7805 = vmatprep.subr.bf16.mxu0 %v8618_v21 }
 0x487   :  { %7806 = vmatpush3.bf16.msra.mxu0 %v8052_v2 }
 0x488   :  { %7807 = vmatprep.subr.bf16.mxu0 %v8618_v21 }
 0x48b   :  { %7808 = vmatpush3.bf16.msra.mxu0 %v8053_v49 }
 0x48c   :  { %7809 = vmatprep.subr.bf16.mxu0 %v8618_v21 }
 0x48f   :  { %7810 = vmatpush3.bf16.msra.mxu0 %v8054_v13 }
 0x490   :  { %7811 = vmatprep.subr.bf16.mxu0 %v8618_v21 }
 0x4c8   :  { %v1872_v35 = vpop.f32.mrf.mxu0 }
 0x4ca   :  { %v7755_v9 = vpop.f32.mrf.mxu0 }
 0x4cc   :  { %v1875_v27 = vpop.f32.mrf.mxu0 }
 0x4ce   :  { %v7756_v10 = vpop.f32.mrf.mxu0 }
 0x4d0   :  { %v1918_v11 = vpop.f32.mrf.mxu1 }
 0x4d2   :  { %v7761_v32 = vpop.f32.mrf.mxu1 }
 0x4d4   :  { %v1921_v14 = vpop.f32.mrf.mxu1 }
 0x4d6   :  { %v7762_v18 = vpop.f32.mrf.mxu1 }
 0x4d8   :  { %v1964_v16 = vpop.f32.mrf.mxu0 }
 0x4d9   :  { %v2200_v12 = vcombine.low %v1872_v35, %v1964_v16  ;;  %v2201_v19 = vcombine.high %v1872_v35, %v1964_v16 }
 0x4da   :  { %v7767_v20 = vpop.f32.mrf.mxu0 }
 0x4db   :  { %v2208_v36 = vrot.slane %v2200_v12, %v8812_v52  ;;  %v2215_v28 = vrot.slane %v2201_v19, %v8812_v52 }
 0x4dc   :  { %v1967_v54 = vpop.f32.mrf.mxu0 }
 0x4de   :  { %v7768_v42 = vpop.f32.mrf.mxu0 }
 0x4e0   :  { %v2010_v43 = vpop.f32.mrf.mxu1 }
 0x4e1   :  { %v2216_v25 = vcombine.low %v1918_v11, %v2010_v43  ;;  %v2217_v30 = vcombine.high %v1918_v11, %v2010_v43 }
 0x4e2   :  { %v7773_v23 = vpop.f32.mrf.mxu1 }
 0x4e3   :  { %v2224_v24 = vrot.slane %v2216_v25, %v8812_v52  ;;  %v2231_v38 = vrot.slane %v2217_v30, %v8812_v52 }
 0x4e4   :  { %v2013_v39 = vpop.f32.mrf.mxu1 }
 0x4e5   :  { %v2232_v40 = vcombine.low %v2208_v36, %v2224_v24  ;;  %v2233_v41 = vcombine.high %v2208_v36, %v2224_v24  ;;  %v2248_v44 = vcombine.low %v2215_v28, %v2231_v38  ;;  %v2249_v45 = vcombine.high %v2215_v28, %v2231_v38 }
 0x4e6   :  { %v7774_v3 = vpop.f32.mrf.mxu1 }
 0x4e7   :  { %v2240_v50 = vrot.slane %v2232_v40, %v8815_v59  ;;  %v2247_v26 = vrot.slane %v2233_v41, %v8815_v59  ;;  %v2256_v4 = vrot.slane %v2248_v44, %v8815_v59  ;;  %v2263_v46 = vrot.slane %v2249_v45, %v8815_v59 }
 0x4e9   :  { %v2336_v47 = vcombine.low %v2240_v50, %v2247_v26  ;;  %v7212_v15 = vcombine.high %v2240_v50, %v2247_v26  ;;  %v2352_v48 = vcombine.low %v2256_v4, %v2263_v46  ;;  %v7213_v8 = vcombine.high %v2256_v4, %v2263_v46 }
 0x4eb   :  { %v2343_v51 = vrot.slane %v2336_v47, %v8812_v52  ;;  %v2351_v53 = vrot.slane %v7212_v15, %v8812_v52  ;;  %v2359_v55 = vrot.slane %v2352_v48, %v8812_v52  ;;  %v2367_v56 = vrot.slane %v7213_v8, %v8812_v52  ;;  %v8055_v48 = vld [vmem:[#allocation8 + $0x8] sm:$0xff]  }
 0x4ec   :  { %7812 = vmatpush3.bf16.msra.mxu0 %v8055_v48 }
 0x4ed   :  { %v2369_v57 = vcombine.high %v2343_v51, %v2351_v53  ;;  %v2385_v60 = vcombine.high %v2359_v55, %v2367_v56  ;;  %v2368_v61 = vcombine.low %v2343_v51, %v2351_v53  ;;  %v2384_v17 = vcombine.low %v2359_v55, %v2367_v56  ;;  %7813 = vmatprep.subr.bf16.mxu0 %v8618_v21 }
 0x4ef   :  { %v9145_v1 = vrot.slane %v2369_v57, %v8815_v59  ;;  %v9148_v62 = vrot.slane %v2385_v60, %v8815_v59  ;;  %v9151_v63 = vrot.slane %v2368_v61, %v8815_v59  ;;  %v9154_v5 = vrot.slane %v2384_v17, %v8815_v59 }
 0x4f1   :  { %v2402_v6 = vcombine.low %v9145_v1, %v9148_v62  ;;  %v2400_v7 = vcombine.low %v9151_v63, %v9154_v5  ;;  %v2401_v35 = vcombine.high %v9151_v63, %v9154_v5  ;;  %v2403_v9 = vcombine.high %v9145_v1, %v9148_v62  ;;  %v7216_v63 = vld [vmem:[#allocation10] ss:$0 sm:$0xff] }
 0x517   :  { %v2056_v27 = vpop.f32.mrf.mxu0  ;;  %v2102_v10 = vpop.f32.mrf.mxu1 }
 0x519   :  { %v7779_v11 = vpop.f32.mrf.mxu0  ;;  %v7785_v32 = vpop.f32.mrf.mxu1 }
 0x51b   :  { %v2059_v14 = vpop.f32.mrf.mxu0  ;;  %v2105_v16 = vpop.f32.mrf.mxu1 }
 0x51d   :  { %v7780_v18 = vpop.f32.mrf.mxu0  ;;  %v7786_v12 = vpop.f32.mrf.mxu1 }
 0x51f   :  { %v2148_v19 = vpop.f32.mrf.mxu0 }
 0x520   :  { %v2268_v37 = vcombine.low %v2056_v27, %v2148_v19  ;;  %v2269_v42 = vcombine.high %v2056_v27, %v2148_v19 }
 0x521   :  { %v7791_v20 = vpop.f32.mrf.mxu0 }
 0x522   :  { %v2276_v23 = vrot.slane %v2268_v37, %v8812_v52  ;;  %v2283_v36 = vrot.slane %v2269_v42, %v8812_v52 }
 0x523   :  { %v2151_v22 = vpop.f32.mrf.mxu0 }
 0x525   :  { %v7792_v54 = vpop.f32.mrf.mxu0 }
 0x542   :  { %v2194_v43 = vpop.f32.mrf.mxu1 }
 0x543   :  { %v2284_v25 = vcombine.low %v2102_v10, %v2194_v43  ;;  %v2285_v30 = vcombine.high %v2102_v10, %v2194_v43  ;;  %v8056_v10 = vld [vmem:[#allocation8] sm:$0xff]  }
 0x544   :  { %v7797_v34 = vpop.f32.mrf.mxu1  ;;  %7814 = vmatpush3.bf16.msra.mxu0 %v8056_v10  ;;  %v8080_v10 = vld [vmem:[#allocation14 + $0x8c] ss:$16 sps:$4 sm:$0xff]  }
 0x545   :  { %v2292_v28 = vrot.slane %v2284_v25, %v8812_v52  ;;  %v2299_v24 = vrot.slane %v2285_v30, %v8812_v52 }
 0x546   :  { %v2197_v38 = vpop.f32.mrf.mxu1 }
 0x547   :  { %v2300_v39 = vcombine.low %v2276_v23, %v2292_v28  ;;  %v2301_v40 = vcombine.high %v2276_v23, %v2292_v28  ;;  %v2316_v41 = vcombine.low %v2283_v36, %v2299_v24  ;;  %v2317_v44 = vcombine.high %v2283_v36, %v2299_v24  ;;  %v8337_v24 = vld [vmem:[#allocation2] sm:$0xff] }
 0x548   :  { %v7798_v45 = vpop.f32.mrf.mxu1 }
 0x549   :  { %v2308_v2 = vrot.slane %v2300_v39, %v8815_v59  ;;  %v2315_v3 = vrot.slane %v2301_v40, %v8815_v59  ;;  %v2324_v50 = vrot.slane %v2316_v41, %v8815_v59  ;;  %v2331_v26 = vrot.slane %v2317_v44, %v8815_v59  ;;  %v8338_v44 = vld [vmem:[#allocation2 + $0x8] sm:$0xff] }
 0x54b   :  { %v2404_v4 = vcombine.low %v2308_v2, %v2315_v3  ;;  %v7214_v46 = vcombine.high %v2308_v2, %v2315_v3  ;;  %v2420_v47 = vcombine.low %v2324_v50, %v2331_v26  ;;  %v7215_v15 = vcombine.high %v2324_v50, %v2331_v26  ;;  %v8057_v2 = vld [vmem:[#allocation14 + $0xe0] ss:$16 sps:$4 sm:$0xff]   ;;  %v8059_v3 = vld [vmem:[#allocation14 + $0xe4] ss:$16 sps:$4 sm:$0xff]   ;;  %v8060_v50 = vld [vmem:[#allocation14 + $0xe8] ss:$16 sps:$4 sm:$0xff]  }
 0x54c   :  { %v8062_v26 = vld [vmem:[#allocation14 + $0xec] ss:$16 sps:$4 sm:$0xff]   ;;  %2875 = vmatprep.subr.bf16.mxu1 %v8059_v3 }
 0x54d   :  { %v2411_v8 = vrot.slane %v2404_v4, %v8812_v52  ;;  %v2419_v49 = vrot.slane %v7214_v46, %v8812_v52  ;;  %v2427_v51 = vrot.slane %v2420_v47, %v8812_v52  ;;  %v2435_v53 = vrot.slane %v7215_v15, %v8812_v52  ;;  %2918 = vmatprep.subr.bf16.mxu0 %v8062_v26  ;;  %v8108_v26 = vld [vmem:[#allocation16 + $0xb8] sm:$0xff]  }
 0x54e   :  { %2876 = vmatpush1.bf16.msra.mxu1 %v8057_v2 }
 0x54f   :  { %v2437_v55 = vcombine.high %v2411_v8, %v2419_v49  ;;  %v2453_v56 = vcombine.high %v2427_v51, %v2435_v53  ;;  %v2436_v57 = vcombine.low %v2411_v8, %v2419_v49  ;;  %v2452_v60 = vcombine.low %v2427_v51, %v2435_v53  ;;  %v8063_v53 = vld [vmem:[#allocation14 + $0xc0] ss:$16 sps:$4 sm:$0xff]  }
 0x551   :  { %v2451_v61 = vrot.slane %v2437_v55, %v8815_v59  ;;  %v2467_v17 = vrot.slane %v2453_v56, %v8815_v59  ;;  %v2444_v13 = vrot.slane %v2436_v57, %v8815_v59  ;;  %v2460_v27 = vrot.slane %v2452_v60, %v8815_v59  ;;  %v8065_v55 = vld [vmem:[#allocation14 + $0xc4] ss:$16 sps:$4 sm:$0xff]   ;;  %v8066_v56 = vld [vmem:[#allocation14 + $0xc8] ss:$16 sps:$4 sm:$0xff]   ;;  %v8068_v57 = vld [vmem:[#allocation14 + $0xcc] ss:$16 sps:$4 sm:$0xff]  }
 0x552   :  { %2877 = vmatprep.subr.bf16.mxu1 %v8065_v55  ;;  %v8069_v60 = vld [vmem:[#allocation14 + $0xa0] ss:$16 sps:$4 sm:$0xff]  }
 0x553   :  { %v2470_v11 = vcombine.low %v2451_v61, %v2467_v17  ;;  %v2469_v32 = vcombine.high %v2444_v13, %v2460_v27  ;;  %v2468_v14 = vcombine.low %v2444_v13, %v2460_v27  ;;  %v2471_v12 = vcombine.high %v2451_v61, %v2467_v17  ;;  %2878 = vmatpush1.bf16.msra.mxu1 %v8063_v53  ;;  %v8071_v61 = vld [vmem:[#allocation14 + $0xa4] ss:$16 sps:$4 sm:$0xff]   ;;  %v8072_v17 = vld [vmem:[#allocation14 + $0xa8] ss:$16 sps:$4 sm:$0xff]   ;;  %v8074_v13 = vld [vmem:[#allocation14 + $0xac] ss:$16 sps:$4 sm:$0xff]  }
 0x554   :  { %v8077_v27 = vld [vmem:[#allocation14 + $0x84] ss:$16 sps:$4 sm:$0xff]   ;;  %2879 = vmatprep.subr.bf16.mxu1 %v8071_v61  ;;  %v8116_v53 = vld [vmem:[#allocation16 + $0xa8] sm:$0xff]   ;;  %v8121_v61 = vld [vmem:[#allocation16 + $0x58] sm:$0xff]  }
 0x555   :  { %v7992_v16 = vpack.i.bf16 %v2470_v11, %v2402_v6  ;;  %v7987_v18 = vpack.i.bf16 %v2469_v32, %v2401_v35  ;;  %v7997_v19 = vpack.i.bf16 %v2471_v12, %v2403_v9  ;;  %v8075_v11 = vld [vmem:[#allocation14 + $0x80] ss:$16 sps:$4 sm:$0xff]   ;;  %v8078_v32 = vld [vmem:[#allocation14 + $0x88] ss:$16 sps:$4 sm:$0xff]  }
 0x556   :  { %v8084_v12 = vld [vmem:[#allocation14 + $0x68] ss:$16 sps:$4 sm:$0xff]   ;;  %v8117_v55 = vld [vmem:[#allocation16 + $0x60] sm:$0xff]  }
 0x557   :  { %7993 = vrot.lane.b32.xlu1 %v7992_v16, %s8597_s28  ;;  %7988 = vrot.lane.b32.xlu0 %v7987_v18, %s8616_s22  ;;  %v8086_v16 = vld [vmem:[#allocation14 + $0x6c] ss:$16 sps:$4 sm:$0xff]   ;;  %v8081_v18 = vld [vmem:[#allocation14 + $0x60] ss:$16 sps:$4 sm:$0xff]  }
 0x558   :  { %2880 = vmatpush1.bf16.msra.mxu1 %v8069_v60  ;;  %v8120_v60 = vld [vmem:[#allocation16 + $0xa0] sm:$0xff]  }
 0x559   :  { %2881 = vmatprep.subr.bf16.mxu1 %v8077_v27  ;;  %v8124_v27 = vld [vmem:[#allocation16 + $0x98] sm:$0xff]  }
 0x55b   :  { %7998 = vrot.lane.b32.xlu0 %v7997_v19, %s8620_s9  ;;  %v8089_v19 = vld [vmem:[#allocation14 + $0x44] ss:$16 sps:$4 sm:$0xff]  }
 0x55c   :  { %2882 = vmatpush1.bf16.msra.mxu1 %v8075_v11  ;;  %v8126_v11 = vld [vmem:[#allocation16 + $0xd0] sm:$0xff]  }
 0x5c9   :  { %v7994_v20 = vpop.permute.xlu1 %7993  ;;  %v7989_v22 = vpop.permute.xlu0 %7988 }
 0x5ca   :  { %v7991_v54 = vunpack.i.h.bf16 %v7989_v22  ;;  %v7990_v37 = vunpack.i.l.bf16 %v7989_v22  ;;  %v7996_v42 = vunpack.i.h.bf16 %v7994_v20  ;;  %v7995_v43 = vunpack.i.l.bf16 %v7994_v20  ;;  %v8092_v20 = vld [vmem:[#allocation14 + $0x4c] ss:$16 sps:$4 sm:$0xff]   ;;  %v8087_v22 = vld [vmem:[#allocation14 + $0x40] ss:$16 sps:$4 sm:$0xff]  }
 0x5cc   :  { %v2496_v6 = vsel %vm1365_vm1, %v2400_v7, %v7990_v37  ;;  %v2497_v35 = vsel %vm1365_vm1, %v2468_v14, %v7991_v54  ;;  %v8083_v14 = vld [vmem:[#allocation14 + $0x64] ss:$16 sps:$4 sm:$0xff]   ;;  %v8090_v54 = vld [vmem:[#allocation14 + $0x48] ss:$16 sps:$4 sm:$0xff]  }
 0x5cd   :  { %v7999_v25 = vpop.permute.xlu0 %7998  ;;  %v2499_v9 = vsel %vm2498_vm4, %v2496_v6, %v7995_v43  ;;  %v2500_v30 = vsel %vm2498_vm4, %v2497_v35, %v7996_v42  ;;  %2883 = vmatprep.subr.bf16.mxu1 %v8083_v14  ;;  %v8095_v37 = vld [vmem:[#allocation14 + $0x24] ss:$16 sps:$4 sm:$0xff]   ;;  %v8098_v42 = vld [vmem:[#allocation14 + $0x2c] ss:$16 sps:$4 sm:$0xff]   ;;  %v8093_v43 = vld [vmem:[#allocation14 + $0x20] ss:$16 sps:$4 sm:$0xff]  }
 0x5ce   :  { %v8001_v1 = vunpack.i.h.bf16 %v7999_v25  ;;  %v8000_v62 = vunpack.i.l.bf16 %v7999_v25  ;;  %2884 = vmatpush1.bf16.msra.mxu1 %v8081_v18  ;;  %v8096_v6 = vld [vmem:[#allocation14 + $0x28] ss:$16 sps:$4 sm:$0xff]   ;;  %v8101_v35 = vld [vmem:[#allocation14 + $0x4] ss:$16 sps:$4 sm:$0xff]   ;;  %v8104_v25 = vld [vmem:[#allocation14 + $0xc] ss:$16 sps:$4 sm:$0xff]  }
 0x5cf   :  { %2885 = vmatprep.subr.bf16.mxu1 %v8089_v19  ;;  %v8128_v14 = vld [vmem:[#allocation16 + $0x90] sm:$0xff]   ;;  %v8130_v18 = vld [vmem:[#allocation16 + $0xc8] sm:$0xff]  }
 0x5d0   :  { %v2502_v34 = vsel %vm2501_vm5, %v2499_v9, %v8000_v62  ;;  %v2503_v23 = vsel %vm2501_vm5, %v2500_v30, %v8001_v1  ;;  %v8099_v1 = vld [vmem:[#allocation14] ss:$16 sps:$4 sm:$0xff]   ;;  %v8102_v62 = vld [vmem:[#allocation14 + $0x8] ss:$16 sps:$4 sm:$0xff]  }
 0x5d1   :  { %v2504_v36 = vpack.c.bf16 %v2503_v23, %v2502_v34  ;;  %v8105_v9 = vld [vmem:[#allocation16 + $0x78] sm:$0xff]   ;;  %v8132_v19 = vld [vmem:[#allocation16 + $0x88] sm:$0xff]  }
 0x5d2   :  { %2886 = vmatpush1.bf16.msra.mxu1 %v8087_v22  ;;  %v8106_v30 = vld [vmem:[#allocation16 + $0xf8] sm:$0xff]   ;;  %v8134_v22 = vld [vmem:[#allocation16 + $0xc0] sm:$0xff]  }
 0x5d3   :  { %7816 = vmatmul.mubr.bf16.vlgmr.msra.gmra.mxu0 %v2504_v36  ;;  %2887 = vmatprep.subr.bf16.mxu1 %v8095_v37  ;;  %v8136_v37 = vld [vmem:[#allocation16 + $0x80] sm:$0xff]  }
 0x5d4   :  { %2950 = vmatprep.mubr.bf16.mxu0 %v8617_v0  ;;  %2919 = vmatpush1.bf16.msra.mxu0 %v8060_v50  ;;  %v8107_v50 = vld [vmem:[#allocation16 + $0x38] sm:$0xff]  }
 0x5d5   :  { %2920 = vmatprep.subr.bf16.mxu0 %v8068_v57  ;;  %v8119_v57 = vld [vmem:[#allocation16 + $0x20] sm:$0xff]  }
 0x5d6   :  { %2888 = vmatpush1.bf16.msra.mxu1 %v8093_v43  ;;  %v2693_v43 = vld [vmem:[%s9761_s8] sm:$0xf] }
 0x5d7   :  { %2889 = vmatprep.subr.bf16.mxu1 %v8101_v35 }
 0x5d8   :  { %2921 = vmatpush1.bf16.msra.mxu0 %v8066_v56  ;;  %v8118_v56 = vld [vmem:[#allocation16 + $0xe0] sm:$0xff]  }
 0x5d9   :  { %2922 = vmatprep.subr.bf16.mxu0 %v8074_v13  ;;  %v8123_v13 = vld [vmem:[#allocation16 + $0x18] sm:$0xff]  }
 0x5da   :  { %2890 = vmatpush1.bf16.msra.mxu1 %v8099_v1 }
 0x5db   :  { %7545 = vmatprep.subr.bf16.mxu1 %v8105_v9  ;;  %v2706_v9 = vrot.slane %v2693_v43, %v8955_v58 }
 0x5dc   :  { %2923 = vmatpush1.bf16.msra.mxu0 %v8072_v17  ;;  %v8122_v17 = vld [vmem:[#allocation16 + $0xd8] sm:$0xff]  }
 0x5dd   :  { %2924 = vmatprep.subr.bf16.mxu0 %v8080_v10  ;;  %v8125_v10 = vld [vmem:[#allocation16 + $0x50] sm:$0xff]  }
 0x5e0   :  { %2925 = vmatpush1.bf16.msra.mxu0 %v8078_v32  ;;  %v8127_v32 = vld [vmem:[#allocation16 + $0x10] sm:$0xff]  }
 0x5e1   :  { %2926 = vmatprep.subr.bf16.mxu0 %v8086_v16  ;;  %v8129_v16 = vld [vmem:[#allocation16 + $0x48] sm:$0xff]  }
 0x5e4   :  { %2927 = vmatpush1.bf16.msra.mxu0 %v8084_v12  ;;  %v8131_v12 = vld [vmem:[#allocation16 + $0x8] sm:$0xff]  }
 0x5e5   :  { %2928 = vmatprep.subr.bf16.mxu0 %v8092_v20  ;;  %v8133_v20 = vld [vmem:[#allocation16 + $0x40] sm:$0xff]  }
 0x5e8   :  { %2929 = vmatpush1.bf16.msra.mxu0 %v8090_v54  ;;  %v8135_v54 = vld [vmem:[#allocation16] sm:$0xff]  }
 0x5e9   :  { %2930 = vmatprep.subr.bf16.mxu0 %v8098_v42  ;;  %v9216_v42 = vsub.s32 3, %v8767_v29 }
 0x5eb   :  { %v2710_v1 = vrot.slane %v2693_v43, %v9216_v42 }
 0x5ec   :  { %2931 = vmatpush1.bf16.msra.mxu0 %v8096_v6 }
 0x5ed   :  { %2932 = vmatprep.subr.bf16.mxu0 %v8104_v25  ;;  %v2702_v25 = vrot.slane %v2693_v43, %v8771_v31 }
 0x5f0   :  { %2933 = vmatpush1.bf16.msra.mxu0 %v8102_v62  ;;  %v2698_v62 = vrot.slane %v2693_v43, %v8781_v33  ;;  %v8139_v43 = vld [vmem:[#allocation5 + $0x16c] ss:$12 sps:$4 sm:$0xff]  }
 0x5f1   :  { %7567 = vmatprep.subr.bf16.mxu0 %v8106_v30 }
 0x693   :  { %v2610_v5 = vpop.f32.mrf.mxu0 }
 0x694   :  { %v2611_v7 = vadd.f32 %v7216_v63, %v2610_v5 }
 0x695   :  { %v7817_v28 = vpop.f32.mrf.mxu0 }
 0x696   :  { %v2617_v38 = vadd.f32 %v8337_v24, %v2611_v7 }
 0x697   :  { %v2613_v39 = vpop.f32.mrf.mxu0 }
 0x698   :  { %v2614_v40 = vadd.f32 %v7216_v63, %v2613_v39  ;;  %2621 = vadd.xlane.f32.xlu1 %v2617_v38 }
 0x699   :  { %v7818_v41 = vpop.f32.mrf.mxu0 }
 0x69a   :  { %v2618_v45 = vadd.f32 %v8338_v44, %v2614_v40  ;;  %v7226_v44 = vld [vmem:[#allocation13] ss:$0 sm:$0xff] }
 0x69c   :  { %2623 = vadd.xlane.f32.xlu0 %v2618_v45 }
 0x721   :  { %v2622_v4 = vpop.xlane.xlu1 %2621 }
 0x722   :  { %v2626_v46 = vmul.f32 0.0078125, %v2622_v4 }
 0x724   :  { %v9198_v47 = vsub.f32 %v2617_v38, %v2626_v46  ;;  %v7225_v38 = vld [vmem:[#allocation11] ss:$0 sm:$0xff]  ;;  %v8109_v46 = vld [vmem:[#allocation16 + $0x70] sm:$0xff]  }
 0x725   :  { %v2624_v15 = vpop.xlane.xlu0 %2623 }
 0x726   :  { %v2627_v48 = vmul.f32 0.0078125, %v2624_v15  ;;  %v2630_v8 = vmul.f32 %v9198_v47, %v9198_v47  ;;  %v8110_v15 = vld [vmem:[#allocation16 + $0xf0] sm:$0xff]  }
 0x728   :  { %v9202_v49 = vsub.f32 %v2618_v45, %v2627_v48  ;;  %2632 = vadd.xlane.f32.xlu0 %v2630_v8  ;;  %v8112_v48 = vld [vmem:[#allocation16 + $0xb0] sm:$0xff]   ;;  %v8113_v8 = vld [vmem:[#allocation16 + $0x68] sm:$0xff]  }
 0x72a   :  { %v2631_v51 = vmul.f32 %v9202_v49, %v9202_v49 }
 0x72c   :  { %2634 = vadd.xlane.f32.xlu1 %v2631_v51  ;;  %v8115_v51 = vld [vmem:[#allocation16 + $0x28] sm:$0xff]  }
 0x7b1   :  { %v2633_v34 = vpop.xlane.xlu0 %2632 }
 0x7b2   :  { %v2636_v23 = vmul.f32 0.0078125, %v2633_v34 }
 0x7b4   :  { %v2638_v36 = vadd.f32 1e-05, %v2636_v23 }
 0x7b5   :  { %v2635_v63 = vpop.xlane.xlu1 %2634 }
 0x7b6   :  { %8289 = vrsqrt.f32 %v2638_v36  ;;  %v2637_v5 = vmul.f32 0.0078125, %v2635_v63 }
 0x7b8   :  { %v2639_v7 = vadd.f32 1e-05, %v2637_v5 }
 0x7ba   :  { %8291 = vrsqrt.f32 %v2639_v7 }
 0x7c3   :  { %v8290_v28 = vpop.eup %8289 }
 0x7c4   :  { %v2642_v24 = vmul.f32 %v8290_v28, %v9198_v47  ;;  %v8111_v47 = vld [vmem:[#allocation16 + $0x30] sm:$0xff]  }
 0x7c6   :  { %v2650_v41 = vmul.f32 %v7225_v38, %v2642_v24 }
 0x7c7   :  { %v8292_v39 = vpop.eup %8291 }
 0x7c8   :  { %v2643_v40 = vmul.f32 %v8292_v39, %v9202_v49  ;;  %v9208_v2 = vadd.f32 %v7226_v44, %v2650_v41  ;;  %v8114_v49 = vld [vmem:[#allocation16 + $0xe8] sm:$0xff]  }
 0x7ca   :  { %v2651_v45 = vmul.f32 %v7225_v38, %v2643_v40 }
 0x7cc   :  { %v9210_v3 = vadd.f32 %v7226_v44, %v2651_v45 }
 0x7ce   :  { %v2660_v4 = vpack.c.bf16 %v9210_v3, %v9208_v2 }
 0x7d0   :  { %2908 = vmatmul.mubr.bf16.vlgmr.msra.gmra.mxu1 %v2660_v4  ;;  %2951 = vmatmul.mubr.bf16.vlgmr.msra.gmra.mxu0 %v2660_v4 }
 0x7d1   :  { %7546 = vmatpush3.bf16.msra.mxu1 %v8107_v50  ;;  %7568 = vmatpush3.bf16.msra.mxu0 %v8108_v26 }
 0x7d2   :  { %7547 = vmatprep.subr.bf16.mxu1 %v8109_v46  ;;  %7569 = vmatprep.subr.bf16.mxu0 %v8110_v15 }
 0x7d5   :  { %7548 = vmatpush3.bf16.msra.mxu1 %v8111_v47  ;;  %7570 = vmatpush3.bf16.msra.mxu0 %v8112_v48 }
 0x7d6   :  { %7549 = vmatprep.subr.bf16.mxu1 %v8113_v8  ;;  %7571 = vmatprep.subr.bf16.mxu0 %v8114_v49 }
 0x7d9   :  { %7550 = vmatpush3.bf16.msra.mxu1 %v8115_v51  ;;  %7572 = vmatpush3.bf16.msra.mxu0 %v8116_v53 }
 0x7da   :  { %7551 = vmatprep.subr.bf16.mxu1 %v8117_v55  ;;  %7573 = vmatprep.subr.bf16.mxu0 %v8118_v56 }
 0x7dd   :  { %7552 = vmatpush3.bf16.msra.mxu1 %v8119_v57  ;;  %7574 = vmatpush3.bf16.msra.mxu0 %v8120_v60  ;;  %v7259_v57 = vld [vmem:[%s9763_s10] ss:$0 sm:$0xff] }
 0x7de   :  { %7553 = vmatprep.subr.bf16.mxu1 %v8121_v61  ;;  %7575 = vmatprep.subr.bf16.mxu0 %v8122_v17 }
 0x7e1   :  { %7554 = vmatpush3.bf16.msra.mxu1 %v8123_v13  ;;  %7576 = vmatpush3.bf16.msra.mxu0 %v8124_v27 }
 0x7e2   :  { %7555 = vmatprep.subr.bf16.mxu1 %v8125_v10  ;;  %7577 = vmatprep.subr.bf16.mxu0 %v8126_v11 }
 0x7e5   :  { %7556 = vmatpush3.bf16.msra.mxu1 %v8127_v32  ;;  %7578 = vmatpush3.bf16.msra.mxu0 %v8128_v14 }
 0x7e6   :  { %7557 = vmatprep.subr.bf16.mxu1 %v8129_v16  ;;  %7579 = vmatprep.subr.bf16.mxu0 %v8130_v18 }
 0x7e9   :  { %7558 = vmatpush3.bf16.msra.mxu1 %v8131_v12  ;;  %7580 = vmatpush3.bf16.msra.mxu0 %v8132_v19 }
 0x7ea   :  { %7559 = vmatprep.subr.bf16.mxu1 %v8133_v20  ;;  %7581 = vmatprep.subr.bf16.mxu0 %v8134_v22 }
 0x7ed   :  { %7560 = vmatpush3.bf16.msra.mxu1 %v8135_v54  ;;  %7582 = vmatpush3.bf16.msra.mxu0 %v8136_v37  ;;  %v8137_v37 = vld [vmem:[#allocation5 + $0x168] ss:$12 sps:$4 sm:$0xff]  }
 0x7ee   :  { %7819 = vmatprep.subr.bf16.mxu0 %v8618_v21  ;;  %3540 = vmatprep.subr.bf16.mxu1 %v8139_v43 }
 0x890   :  { %v2909_v6 = vpop.f32.mrf.mxu1  ;;  %v2952_v35 = vpop.f32.mrf.mxu0 }
 0x891   :  { %v2910_v24 = vadd.f32 %v2909_v6, %v2698_v62  ;;  %v2953_v38 = vadd.f32 %v2952_v35, %v2706_v9  ;;  %v8140_v6 = vld [vmem:[#allocation5 + $0x170] ss:$12 sps:$4 sm:$0xff]  }
 0x892   :  { %v2911_v30 = vpop.f32.mrf.mxu1  ;;  %v2954_v34 = vpop.f32.mrf.mxu0 }
 0x893   :  { %v2912_v63 = vadd.f32 %v2911_v30, %v2702_v25  ;;  %v2955_v5 = vadd.f32 %v2954_v34, %v2710_v1  ;;  %v2961_v47 = vmax.f32 %v2910_v24, 0.0  ;;  %v2963_v48 = vmax.f32 %v2953_v38, 0.0  ;;  %v8141_v34 = vld [vmem:[#allocation5 + $0x150] ss:$12 sps:$4 sm:$0xff]   ;;  %v8152_v24 = vld [vmem:[#allocation5 + $0x128] ss:$12 sps:$4 sm:$0xff]  }
 0x894   :  { %v2913_v23 = vpop.f32.mrf.mxu1  ;;  %v2956_v36 = vpop.f32.mrf.mxu0  ;;  %v8149_v38 = vld [vmem:[#allocation5 + $0x120] ss:$12 sps:$4 sm:$0xff]  }
 0x895   :  { %v2914_v7 = vadd.f32 %v2913_v23, %v2698_v62  ;;  %v2957_v28 = vadd.f32 %v2956_v36, %v2706_v9  ;;  %v2962_v26 = vmax.f32 %v2912_v63, 0.0  ;;  %v2964_v4 = vmax.f32 %v2955_v5, 0.0  ;;  %v8143_v23 = vld [vmem:[#allocation5 + $0x154] ss:$12 sps:$4 sm:$0xff]   ;;  %v8144_v36 = vld [vmem:[#allocation5 + $0x158] ss:$12 sps:$4 sm:$0xff]  }
 0x896   :  { %v2915_v39 = vpop.f32.mrf.mxu1  ;;  %v2958_v40 = vpop.f32.mrf.mxu0  ;;  %v8145_v63 = vld [vmem:[#allocation5 + $0x138] ss:$12 sps:$4 sm:$0xff]   ;;  %v8147_v5 = vld [vmem:[#allocation5 + $0x13c] ss:$12 sps:$4 sm:$0xff]  }
 0x897   :  { %v2916_v41 = vadd.f32 %v2915_v39, %v2702_v25  ;;  %v2959_v44 = vadd.f32 %v2958_v40, %v2710_v1  ;;  %v2965_v45 = vmax.f32 %v2914_v7, 0.0  ;;  %v2967_v50 = vmax.f32 %v2957_v28, 0.0  ;;  %v8148_v7 = vld [vmem:[#allocation5 + $0x140] ss:$12 sps:$4 sm:$0xff]   ;;  %v8151_v28 = vld [vmem:[#allocation5 + $0x124] ss:$12 sps:$4 sm:$0xff]  }
 0x898   :  { %v8155_v39 = vld [vmem:[#allocation5 + $0x10c] ss:$12 sps:$4 sm:$0xff]   ;;  %v8156_v40 = vld [vmem:[#allocation5 + $0x110] ss:$12 sps:$4 sm:$0xff]  }
 0x899   :  { %v2966_v46 = vmax.f32 %v2916_v41, 0.0  ;;  %v2968_v15 = vmax.f32 %v2959_v44, 0.0  ;;  %v2969_v51 = vpack.c.bf16 %v2965_v45, %v2961_v47  ;;  %v2971_v53 = vpack.c.bf16 %v2967_v50, %v2963_v48  ;;  %v8153_v41 = vld [vmem:[#allocation5 + $0x108] ss:$12 sps:$4 sm:$0xff]   ;;  %v8160_v45 = vld [vmem:[#allocation5 + $0xf8] ss:$12 sps:$4 sm:$0xff]  }
 0x89a   :  { %v8159_v44 = vld [vmem:[#allocation5 + $0xf4] ss:$12 sps:$4 sm:$0xff]   ;;  %v8157_v50 = vld [vmem:[#allocation5 + $0xf0] ss:$12 sps:$4 sm:$0xff]  }
 0x89b   :  { %v2970_v8 = vpack.c.bf16 %v2966_v46, %v2962_v26  ;;  %v2972_v49 = vpack.c.bf16 %v2968_v15, %v2964_v4  ;;  %v8163_v26 = vld [vmem:[#allocation5 + $0xdc] ss:$12 sps:$4 sm:$0xff]   ;;  %v8164_v4 = vld [vmem:[#allocation5 + $0xe0] ss:$12 sps:$4 sm:$0xff]   ;;  %v8161_v46 = vld [vmem:[#allocation5 + $0xd8] ss:$12 sps:$4 sm:$0xff]  }
 0x89c   :  { %v8167_v15 = vld [vmem:[#allocation5 + $0xc4] ss:$12 sps:$4 sm:$0xff]   ;;  %v8168_v47 = vld [vmem:[#allocation5 + $0xc8] ss:$12 sps:$4 sm:$0xff]   ;;  %v8165_v48 = vld [vmem:[#allocation5 + $0xc0] ss:$12 sps:$4 sm:$0xff]  }
 0x89d   :  { %3268 = vmatprep.mubr.bf16.mxu1 %v2970_v8  ;;  %3309 = vmatprep.mubr.bf16.mxu0 %v2972_v49 }
 0x89e   :  { %3269 = vmatmul.mubr.bf16.vlgmr.msra.gmra.mxu1 %v2969_v51  ;;  %3310 = vmatmul.mubr.bf16.vlgmr.msra.gmra.mxu0 %v2971_v53 }
 0x89f   :  { %3572 = vmatprep.mubr.bf16.mxu1 %v8617_v0  ;;  %7835 = vmatprep.mubr.msk.bf16.mxu0 %vm8619_vm0, %v8618_v21 }
 0x8a0   :  { %7820 = vmatpush3.bf16.msra.mxu0 %v8140_v6  ;;  %3541 = vmatpush1.bf16.msra.mxu1 %v8137_v37 }
 0x8a1   :  { %7821 = vmatprep.subr.bf16.mxu0 %v8618_v21  ;;  %3542 = vmatprep.subr.bf16.mxu1 %v8143_v23 }
 0x8a4   :  { %7822 = vmatpush3.bf16.msra.mxu0 %v8144_v36  ;;  %3543 = vmatpush1.bf16.msra.mxu1 %v8141_v34 }
 0x8a5   :  { %7823 = vmatprep.subr.bf16.mxu0 %v8618_v21  ;;  %3544 = vmatprep.subr.bf16.mxu1 %v8147_v5 }
 0x8a8   :  { %7824 = vmatpush3.bf16.msra.mxu0 %v8148_v7  ;;  %3545 = vmatpush1.bf16.msra.mxu1 %v8145_v63 }
 0x8a9   :  { %7825 = vmatprep.subr.bf16.mxu0 %v8618_v21  ;;  %3546 = vmatprep.subr.bf16.mxu1 %v8151_v28 }
 0x8ac   :  { %7826 = vmatpush3.bf16.msra.mxu0 %v8152_v24  ;;  %3547 = vmatpush1.bf16.msra.mxu1 %v8149_v38 }
 0x8ad   :  { %7827 = vmatprep.subr.bf16.mxu0 %v8618_v21  ;;  %3548 = vmatprep.subr.bf16.mxu1 %v8155_v39 }
 0x8b0   :  { %7828 = vmatpush3.bf16.msra.mxu0 %v8156_v40  ;;  %3549 = vmatpush1.bf16.msra.mxu1 %v8153_v41 }
 0x8b1   :  { %7829 = vmatprep.subr.bf16.mxu0 %v8618_v21  ;;  %3550 = vmatprep.subr.bf16.mxu1 %v8159_v44 }
 0x8b4   :  { %7830 = vmatpush3.bf16.msra.mxu0 %v8160_v45  ;;  %3551 = vmatpush1.bf16.msra.mxu1 %v8157_v50 }
 0x8b5   :  { %7831 = vmatprep.subr.bf16.mxu0 %v8618_v21  ;;  %3552 = vmatprep.subr.bf16.mxu1 %v8163_v26 }
 0x8b8   :  { %7832 = vmatpush3.bf16.msra.mxu0 %v8164_v4  ;;  %3553 = vmatpush1.bf16.msra.mxu1 %v8161_v46 }
 0x8b9   :  { %7833 = vmatprep.subr.bf16.mxu0 %v8618_v21  ;;  %3554 = vmatprep.subr.bf16.mxu1 %v8167_v15 }
 0x8bc   :  { %7834 = vmatpush3.bf16.msra.mxu0 %v8168_v47  ;;  %3555 = vmatpush1.bf16.msra.mxu1 %v8165_v48 }
 0x8bd   :  { %7863 = vmatprep.subr.bf16.mxu0 %v8618_v21  ;;  %7839 = vmatprep.subr.bf16.mxu1 %v8618_v21 }
 0x95e   :  { %v7561_v55 = vpop.f32.mrf.mxu1  ;;  %v7583_v56 = vpop.f32.mrf.mxu0 }
 0x960   :  { %v7562_v60 = vpop.f32.mrf.mxu1  ;;  %v7584_v61 = vpop.f32.mrf.mxu0 }
 0x961   :  { %v7563_v17 = vadd.f32 %v7562_v60, %v7561_v55  ;;  %v7585_v11 = vadd.f32 %v7584_v61, %v7583_v56  ;;  %v7292_v61 = vld [vmem:[%s9764_s11] ss:$0 sm:$0xff] }
 0x962   :  { %v7564_v13 = vpop.f32.mrf.mxu1  ;;  %v7586_v27 = vpop.f32.mrf.mxu0 }
 0x963   :  { %v3271_v10 = vadd.f32 %v7563_v17, %v7259_v57 }
 0x964   :  { %v7565_v32 = vpop.f32.mrf.mxu1  ;;  %v7587_v14 = vpop.f32.mrf.mxu0 }
 0x965   :  { %v3312_v16 = vadd.f32 %v7585_v11, %v3271_v10  ;;  %v7566_v18 = vadd.f32 %v7565_v32, %v7564_v13  ;;  %v7588_v19 = vadd.f32 %v7587_v14, %v7586_v27  ;;  %v7293_v10 = vld [vmem:[#allocation17] ss:$0 sm:$0xff] }
 0x967   :  { %v3274_v12 = vadd.f32 %v7566_v18, %v7259_v57  ;;  %v3318_v20 = vadd.f32 %v3312_v16, %v9208_v2  ;;  %v3395_v18 = vld [vmem:[#allocation7 + $0x3] sm:$0x7] }
 0x968   :  { %v3400_v37 = vrot.slane %v3395_v18, %v8781_v33  ;;  %v9270_v43 = vrot.slane %v3395_v18, %v8955_v58 }
 0x969   :  { %v3315_v22 = vadd.f32 %v7588_v19, %v3274_v12  ;;  %3322 = vadd.xlane.f32.xlu0 %v3318_v20  ;;  %v3404_v12 = vrot.slane %v3395_v18, %v8771_v31 }
 0x96b   :  { %v3319_v54 = vadd.f32 %v3315_v22, %v9210_v3 }
 0x96d   :  { %3324 = vadd.xlane.f32.xlu1 %v3319_v54 }
 0x9f2   :  { %v3323_v35 = vpop.xlane.xlu0 %3322 }
 0x9f3   :  { %v3326_v25 = vmul.f32 0.0078125, %v3323_v35 }
 0x9f5   :  { %v9234_v1 = vsub.f32 %v3318_v20, %v3326_v25 }
 0x9f6   :  { %v3325_v62 = vpop.xlane.xlu1 %3324 }
 0x9f7   :  { %v3327_v9 = vmul.f32 0.0078125, %v3325_v62  ;;  %v3330_v2 = vmul.f32 %v9234_v1, %v9234_v1 }
 0x9f9   :  { %v9238_v30 = vsub.f32 %v3319_v54, %v3327_v9  ;;  %3332 = vadd.xlane.f32.xlu0 %v3330_v2 }
 0x9fb   :  { %v3331_v3 = vmul.f32 %v9238_v30, %v9238_v30 }
 0x9fd   :  { %3334 = vadd.xlane.f32.xlu1 %v3331_v3 }
 0xa82   :  { %v3333_v8 = vpop.xlane.xlu0 %3332 }
 0xa83   :  { %v3336_v49 = vmul.f32 0.0078125, %v3333_v8 }
 0xa85   :  { %v3338_v51 = vadd.f32 1e-05, %v3336_v49 }
 0xa86   :  { %v3335_v53 = vpop.xlane.xlu1 %3334 }
 0xa87   :  { %8293 = vrsqrt.f32 %v3338_v51  ;;  %v3337_v55 = vmul.f32 0.0078125, %v3335_v53 }
 0xa89   :  { %v3339_v56 = vadd.f32 1e-05, %v3337_v55 }
 0xa8b   :  { %8295 = vrsqrt.f32 %v3339_v56 }
 0xa94   :  { %v8294_v57 = vpop.eup %8293 }
 0xa95   :  { %v3342_v60 = vmul.f32 %v8294_v57, %v9234_v1 }
 0xa97   :  { %v3350_v27 = vmul.f32 %v7292_v61, %v3342_v60 }
 0xa98   :  { %v8296_v17 = vpop.eup %8295 }
 0xa99   :  { %v3343_v13 = vmul.f32 %v8296_v17, %v9238_v30  ;;  %v9255_v32 = vadd.f32 %v7293_v10, %v3350_v27 }
 0xa9b   :  { %v3351_v11 = vmul.f32 %v7292_v61, %v3343_v13 }
 0xa9d   :  { %v9257_v14 = vadd.f32 %v7293_v10, %v3351_v11 }
 0xa9f   :  { %v3360_v16 = vpack.c.bf16 %v9257_v14, %v9255_v32 }
 0xaa1   :  { %3573 = vmatmul.mubr.bf16.vlgmr.msra.gmra.mxu1 %v3360_v16  ;;  %7836 = vmatmul.mubr.bf16.vlgmr.msra.gmra.mxu0 %v3360_v16 }
 0xaa2   :  { %7841 = vmatprep.mubr.msk.bf16.mxu1 %vm8619_vm0, %v8618_v21  ;;  %7865 = vmatprep.mubr.msk.bf16.mxu0 %vm8619_vm0, %v8618_v21 }
 0xb61   :  { %v3574_v19 = vpop.f32.mrf.mxu1  ;;  %v9266_v20 = vpop.f32.mrf.mxu0 }
 0xb62   :  { %v3575_v62 = vadd.f32 %v3574_v19, %v3400_v37 }
 0xb63   :  { %v3576_v22 = vpop.f32.mrf.mxu1  ;;  %v7837_v54 = vpop.f32.mrf.mxu0 }
 0xb64   :  { %v3577_v6 = vadd.f32 %v3576_v22, %v3404_v12 }
 0xb65   :  { %v3620_v35 = vpop.f32.mrf.mxu0  ;;  %v3578_v9 = vpop.f32.mrf.mxu1 }
 0xb66   :  { %v9273_v25 = vadd.f32 %v3620_v35, %v9270_v43  ;;  %3932 = vrot.lane.b32.xlu1 %v3577_v6, %s8597_s28  ;;  %3926 = vrot.lane.b32.xlu0 %v3577_v6, %s8620_s9  ;;  %v9287_v3 = vadd.f32 %v3578_v9, %v3400_v37 }
 0xb67   :  { %v7838_v1 = vpop.f32.mrf.mxu0  ;;  %v3580_v2 = vpop.f32.mrf.mxu1 }
 0xb68   :  { %v9281_v30 = vadd.f32 %v3580_v2, %v3404_v12 }
 0xb6a   :  { %3938 = vrot.lane.b32.xlu1 %v3577_v6, %s8616_s22  ;;  %3626 = vrot.lane.b32.xlu0 %v3575_v62, %s8620_s9 }
 0xb6e   :  { %3632 = vrot.lane.b32.xlu1 %v3575_v62, %s8597_s28  ;;  %3638 = vrot.lane.b32.xlu0 %v3575_v62, %s8616_s22 }
 0xb72   :  { %3928 = vrot.lane.b32.xlu1 %v9281_v30, %s8620_s9  ;;  %3934 = vrot.lane.b32.xlu0 %v9281_v30, %s8597_s28 }
 0xb76   :  { %3940 = vrot.lane.b32.xlu1 %v9281_v30, %s8616_s22  ;;  %3628 = vrot.lane.b32.xlu0 %v9287_v3, %s8620_s9 }
 0xb7a   :  { %3634 = vrot.lane.b32.xlu1 %v9287_v3, %s8597_s28  ;;  %3640 = vrot.lane.b32.xlu0 %v9287_v3, %s8616_s22 }
 0xbd8   :  { %v3933_v34 = vpop.permute.xlu1 %3932  ;;  %v3927_v23 = vpop.permute.xlu0 %3926 }
 0xbd9   :  { %v3944_v36 = vcombine.low %v3577_v6, %v3933_v34  ;;  %v3945_v63 = vcombine.high %v3577_v6, %v3933_v34 }
 0xbdb   :  { %v3952_v38 = vrot.slane %v3944_v36, %v8812_v52  ;;  %v3959_v39 = vrot.slane %v3945_v63, %v8812_v52 }
 0xbdc   :  { %v3939_v5 = vpop.permute.xlu1 %3938  ;;  %v3627_v7 = vpop.permute.xlu0 %3626 }
 0xbdd   :  { %v3960_v28 = vcombine.low %v3927_v23, %v3939_v5  ;;  %v3961_v24 = vcombine.high %v3927_v23, %v3939_v5 }
 0xbdf   :  { %v3968_v40 = vrot.slane %v3960_v28, %v8812_v52  ;;  %v3975_v41 = vrot.slane %v3961_v24, %v8812_v52 }
 0xbe0   :  { %v3633_v44 = vpop.permute.xlu1 %3632  ;;  %v3639_v45 = vpop.permute.xlu0 %3638 }
 0xbe1   :  { %v3976_v50 = vcombine.low %v3952_v38, %v3968_v40  ;;  %v3977_v26 = vcombine.high %v3952_v38, %v3968_v40  ;;  %v3992_v4 = vcombine.low %v3959_v39, %v3975_v41  ;;  %v3993_v46 = vcombine.high %v3959_v39, %v3975_v41 }
 0xbe2   :  { %v3644_v15 = vcombine.low %v3575_v62, %v3633_v44  ;;  %v3645_v47 = vcombine.high %v3575_v62, %v3633_v44  ;;  %v3660_v48 = vcombine.low %v3627_v7, %v3639_v45  ;;  %v3661_v8 = vcombine.high %v3627_v7, %v3639_v45 }
 0xbe3   :  { %v3984_v49 = vrot.slane %v3976_v50, %v8815_v59  ;;  %v3991_v51 = vrot.slane %v3977_v26, %v8815_v59  ;;  %v4000_v53 = vrot.slane %v3992_v4, %v8815_v59  ;;  %v4007_v55 = vrot.slane %v3993_v46, %v8815_v59 }
 0xbe4   :  { %v3652_v56 = vrot.slane %v3644_v15, %v8812_v52  ;;  %v3659_v57 = vrot.slane %v3645_v47, %v8812_v52  ;;  %v3668_v60 = vrot.slane %v3660_v48, %v8812_v52  ;;  %v3675_v61 = vrot.slane %v3661_v8, %v8812_v52  ;;  %v3929_v17 = vpop.permute.xlu1 %3928  ;;  %v3935_v13 = vpop.permute.xlu0 %3934 }
 0xbe5   :  { %v4080_v18 = vcombine.low %v3984_v49, %v3991_v51  ;;  %v7322_v12 = vcombine.high %v3984_v49, %v3991_v51  ;;  %v4096_v19 = vcombine.low %v4000_v53, %v4007_v55  ;;  %v4012_v62 = vcombine.low %v9281_v30, %v3935_v13 }
 0xbe6   :  { %v3676_v27 = vcombine.low %v3652_v56, %v3668_v60  ;;  %v3677_v10 = vcombine.high %v3652_v56, %v3668_v60  ;;  %v3692_v11 = vcombine.low %v3659_v57, %v3675_v61  ;;  %v3693_v16 = vcombine.high %v3659_v57, %v3675_v61 }
 0xbe7   :  { %v4013_v9 = vcombine.high %v9281_v30, %v3935_v13  ;;  %v7323_v23 = vcombine.high %v4000_v53, %v4007_v55  ;;  %v4020_v7 = vrot.slane %v4012_v62, %v8812_v52  ;;  %v9320_v39 = vrot.slane %v4080_v18, %v8812_v52 }
 0xbe8   :  { %v3684_v22 = vrot.slane %v3676_v27, %v8815_v59  ;;  %v3691_v54 = vrot.slane %v3677_v10, %v8815_v59  ;;  %v3700_v37 = vrot.slane %v3692_v11, %v8815_v59  ;;  %v3707_v6 = vrot.slane %v3693_v16, %v8815_v59  ;;  %v3941_v35 = vpop.permute.xlu1 %3940  ;;  %v3629_v1 = vpop.permute.xlu0 %3628 }
 0xbe9   :  { %v4028_v2 = vcombine.low %v3929_v17, %v3941_v35  ;;  %v4029_v34 = vcombine.high %v3929_v17, %v3941_v35  ;;  %v4027_v28 = vrot.slane %v4013_v9, %v8812_v52  ;;  %v9323_v40 = vrot.slane %v7322_v12, %v8812_v52 }
 0xbea   :  { %v3780_v36 = vcombine.low %v3684_v22, %v3691_v54  ;;  %v7318_v63 = vcombine.high %v3684_v22, %v3691_v54  ;;  %v3796_v5 = vcombine.low %v3700_v37, %v3707_v6  ;;  %v9326_v30 = vrot.slane %v4096_v19, %v8812_v52 }
 0xbeb   :  { %v4036_v24 = vrot.slane %v4028_v2, %v8812_v52  ;;  %v4043_v38 = vrot.slane %v4029_v34, %v8812_v52  ;;  %v7319_v41 = vcombine.high %v3700_v37, %v3707_v6  ;;  %v9329_v15 = vrot.slane %v7323_v23, %v8812_v52 }
 0xbec   :  { %v3635_v4 = vpop.permute.xlu1 %3634  ;;  %v3641_v46 = vpop.permute.xlu0 %3640  ;;  %v9332_v47 = vrot.slane %v3780_v36, %v8812_v52  ;;  %v9335_v48 = vrot.slane %v7318_v63, %v8812_v52  ;;  %v9338_v8 = vrot.slane %v3796_v5, %v8812_v52  ;;  %v4112_v2 = vcombine.low %v9320_v39, %v9323_v40 }
 0xbed   :  { %v4044_v44 = vcombine.low %v4020_v7, %v4036_v24  ;;  %v4045_v45 = vcombine.high %v4020_v7, %v4036_v24  ;;  %v4060_v50 = vcombine.low %v4027_v28, %v4043_v38  ;;  %v4061_v26 = vcombine.high %v4027_v28, %v4043_v38 }
 0xbee   :  { %v3712_v56 = vcombine.low %v9287_v3, %v3635_v4  ;;  %v3713_v57 = vcombine.high %v9287_v3, %v3635_v4  ;;  %v3728_v60 = vcombine.low %v3629_v1, %v3641_v46  ;;  %v3729_v61 = vcombine.high %v3629_v1, %v3641_v46 }
 0xbef   :  { %v4052_v49 = vrot.slane %v4044_v44, %v8815_v59  ;;  %v4059_v51 = vrot.slane %v4045_v45, %v8815_v59  ;;  %v4068_v53 = vrot.slane %v4060_v50, %v8815_v59  ;;  %v4075_v55 = vrot.slane %v4061_v26, %v8815_v59 }
 0xbf0   :  { %v9347_v17 = vrot.slane %v7319_v41, %v8812_v52  ;;  %v3720_v11 = vrot.slane %v3712_v56, %v8812_v52  ;;  %v3727_v16 = vrot.slane %v3713_v57, %v8812_v52  ;;  %v3736_v18 = vrot.slane %v3728_v60, %v8812_v52 }
 0xbf1   :  { %v4148_v13 = vcombine.low %v4052_v49, %v4059_v51  ;;  %v7324_v27 = vcombine.high %v4052_v49, %v4059_v51  ;;  %v4164_v10 = vcombine.low %v4068_v53, %v4075_v55  ;;  %v3743_v12 = vrot.slane %v3729_v61, %v8812_v52 }
 0xbf2   :  { %v3812_v19 = vcombine.low %v9332_v47, %v9335_v48  ;;  %v7325_v54 = vcombine.high %v4068_v53, %v4075_v55  ;;  %v3744_v37 = vcombine.low %v3720_v11, %v3736_v18  ;;  %v3745_v6 = vcombine.high %v3720_v11, %v3736_v18 }
 0xbf3   :  { %v4155_v3 = vrot.slane %v4148_v13, %v8812_v52  ;;  %v4163_v22 = vrot.slane %v7324_v27, %v8812_v52  ;;  %v3760_v35 = vcombine.low %v3727_v16, %v3743_v12  ;;  %v3761_v1 = vcombine.high %v3727_v16, %v3743_v12 }
 0xbf4   :  { %v3828_v62 = vcombine.low %v9338_v8, %v9347_v17  ;;  %v4171_v9 = vrot.slane %v4164_v10, %v8812_v52  ;;  %v4128_v34 = vcombine.low %v9326_v30, %v9329_v15  ;;  %v3752_v23 = vrot.slane %v3744_v37, %v8815_v59 }
 0xbf5   :  { %v3759_v36 = vrot.slane %v3745_v6, %v8815_v59  ;;  %v3768_v63 = vrot.slane %v3760_v35, %v8815_v59  ;;  %v3775_v5 = vrot.slane %v3761_v1, %v8815_v59  ;;  %v4179_v7 = vrot.slane %v7325_v54, %v8812_v52 }
 0xbf6   :  { %v4120_v28 = vrot.slane %v4112_v2, %v8815_v59  ;;  %v4136_v24 = vrot.slane %v4128_v34, %v8815_v59  ;;  %v4180_v38 = vcombine.low %v4155_v3, %v4163_v22  ;;  %v3820_v4 = vrot.slane %v3812_v19, %v8815_v59 }
 0xbf7   :  { %v3848_v41 = vcombine.low %v3752_v23, %v3759_v36  ;;  %v7320_v44 = vcombine.high %v3752_v23, %v3759_v36  ;;  %v3864_v45 = vcombine.low %v3768_v63, %v3775_v5  ;;  %v7321_v50 = vcombine.high %v3768_v63, %v3775_v5 }
 0xbf8   :  { %v4144_v26 = vcombine.low %v4120_v28, %v4136_v24  ;;  %v3836_v56 = vrot.slane %v3828_v62, %v8815_v59  ;;  %v9378_v57 = vrot.slane %v4180_v38, %v8815_v59  ;;  %v4196_v60 = vcombine.low %v4171_v9, %v4179_v7 }
 0xbf9   :  { %v3855_v46 = vrot.slane %v3848_v41, %v8812_v52  ;;  %v3863_v49 = vrot.slane %v7320_v44, %v8812_v52  ;;  %v3871_v51 = vrot.slane %v3864_v45, %v8812_v52  ;;  %v3879_v53 = vrot.slane %v7321_v50, %v8812_v52 }
 0xbfa   :  { %v4216_v55 = vpack.c.bf16 %v4144_v26, %v4144_v26  ;;  %v4145_v27 = vcombine.high %v4120_v28, %v4136_v24  ;;  %v4204_v11 = vrot.slane %v4196_v60, %v8815_v59  ;;  %v4113_v16 = vcombine.high %v9320_v39, %v9323_v40 }
 0xbfb   :  { %v3880_v61 = vcombine.low %v3855_v46, %v3863_v49  ;;  %v3896_v13 = vcombine.low %v3871_v51, %v3879_v53  ;;  %v4129_v18 = vcombine.high %v9326_v30, %v9329_v15  ;;  %v3844_v12 = vcombine.low %v3820_v4, %v3836_v56 }
 0xbfc   :  { %v4528_v10 = vsel %vm1365_vm1, %v4216_v55, 0  ;;  %v4212_v19 = vcombine.low %v9378_v57, %v4204_v11  ;;  %v4181_v54 = vcombine.high %v4155_v3, %v4163_v22  ;;  %v4197_v37 = vcombine.high %v4171_v9, %v4179_v7 }
 0xbfd   :  { %7840 = vmatpush3.bf16.xpose.msra.mxu1 %v4528_v10  ;;  %v4217_v6 = vpack.c.bf16 %v4145_v27, %v4145_v27  ;;  %v4127_v35 = vrot.slane %v4113_v16, %v8815_v59  ;;  %v9390_v1 = vrot.slane %v3880_v61, %v8815_v59  ;;  %v3904_v62 = vrot.slane %v3896_v13, %v8815_v59 }
 0xbfe   :  { %7845 = vmatprep.subr.bf16.mxu1 %v8618_v21  ;;  %v4220_v2 = vpack.c.bf16 %v4212_v19, %v4212_v19  ;;  %v4143_v39 = vrot.slane %v4129_v18, %v8815_v59  ;;  %v4195_v40 = vrot.slane %v4181_v54, %v8815_v59  ;;  %v4211_v30 = vrot.slane %v4197_v37, %v8815_v59 }
 0xbff   :  { %v3916_v15 = vpack.c.bf16 %v3844_v12, %v3844_v12  ;;  %v3881_v22 = vcombine.high %v3855_v46, %v3863_v49  ;;  %v3897_v9 = vcombine.high %v3871_v51, %v3879_v53  ;;  %v4574_v23 = vsel %vm1365_vm1, %v4217_v6, 0 }
 0xc00   :  { %v4712_v34 = vsel %vm1365_vm1, %v4220_v2, 0  ;;  %v4214_v3 = vcombine.low %v4195_v40, %v4211_v30  ;;  %v4146_v36 = vcombine.low %v4127_v35, %v4143_v39  ;;  %v3912_v63 = vcombine.low %v9390_v1, %v3904_v62 }
 0xc01   :  { %7864 = vmatpush3.bf16.xpose.msra.mxu0 %v4712_v34  ;;  %v3813_v5 = vcombine.high %v9332_v47, %v9335_v48  ;;  %v3829_v7 = vcombine.high %v9338_v8, %v9347_v17  ;;  %v3845_v28 = vcombine.high %v3820_v4, %v3836_v56  ;;  %v3895_v44 = vrot.slane %v3881_v22, %v8815_v59 }
 0xc02   :  { %7875 = vmatprep.subr.bf16.mxu0 %v8618_v21  ;;  %v4222_v24 = vpack.c.bf16 %v4214_v3, %v4214_v3  ;;  %v4218_v38 = vpack.c.bf16 %v4146_v36, %v4146_v36  ;;  %v3920_v41 = vpack.c.bf16 %v3912_v63, %v3912_v63  ;;  %v3911_v45 = vrot.slane %v3897_v9, %v8815_v59 }
 0xc03   :  { %v3917_v50 = vpack.c.bf16 %v3845_v28, %v3845_v28  ;;  %v3827_v47 = vrot.slane %v3813_v5, %v8815_v59  ;;  %v3843_v48 = vrot.slane %v3829_v7, %v8815_v59  ;;  %v4147_v17 = vcombine.high %v4127_v35, %v4143_v39 }
 0xc04   :  { %7842 = vmatmul.mubr.msk.bf16.vlgmr.msra.gmra.mxu1 %vm1365_vm1, %v3916_v15  ;;  %v4804_v26 = vsel %vm1365_vm1, %v4222_v24, 0  ;;  %v4620_v8 = vsel %vm1365_vm1, %v4218_v38, 0  ;;  %v3914_v4 = vcombine.low %v3895_v44, %v3911_v45  ;;  %v4213_v56 = vcombine.high %v9378_v57, %v4204_v11 }
 0xc05   :  { %7846 = vmatpush3.bf16.xpose.msra.mxu1 %v4574_v23  ;;  %7847 = vmatprep.mubr.msk.bf16.mxu1 %vm8619_vm0, %v8618_v21  ;;  %v3846_v46 = vcombine.low %v3827_v47, %v3843_v48  ;;  %v4219_v49 = vpack.c.bf16 %v4147_v17, %v4147_v17  ;;  %v3847_v60 = vcombine.high %v3827_v47, %v3843_v48 }
 0xc06   :  { %7851 = vmatprep.subr.bf16.mxu1 %v8618_v21  ;;  %v3922_v51 = vpack.c.bf16 %v3914_v4, %v3914_v4  ;;  %v4221_v61 = vpack.c.bf16 %v4213_v56, %v4213_v56  ;;  %v4215_v10 = vcombine.high %v4195_v40, %v4211_v30  ;;  %v3913_v57 = vcombine.high %v9390_v1, %v3904_v62 }
 0xc07   :  { %v3918_v53 = vpack.c.bf16 %v3846_v46, %v3846_v46  ;;  %v4666_v55 = vsel %vm1365_vm1, %v4219_v49, 0  ;;  %v3919_v13 = vpack.c.bf16 %v3847_v60, %v3847_v60  ;;  %v3915_v12 = vcombine.high %v3895_v44, %v3911_v45 }
 0xc08   :  { %7866 = vmatmul.mubr.msk.bf16.vlgmr.msra.gmra.mxu0 %vm1365_vm1, %v3920_v41  ;;  %v4758_v27 = vsel %vm1365_vm1, %v4221_v61, 0  ;;  %v4223_v11 = vpack.c.bf16 %v4215_v10, %v4215_v10  ;;  %v3921_v16 = vpack.c.bf16 %v3913_v57, %v3913_v57  ;;  %v3618_v7 = vadd.f32 %v9266_v20, %v9270_v43 }
 0xc09   :  { %7876 = vmatpush3.bf16.xpose.msra.mxu0 %v4804_v26  ;;  %7877 = vmatprep.mubr.msk.bf16.mxu0 %vm8619_vm0, %v8618_v21  ;;  %v3923_v19 = vpack.c.bf16 %v3915_v12, %v3915_v12 }
 0xc0a   :  { %7887 = vmatprep.subr.bf16.mxu0 %v8618_v21  ;;  %v4850_v18 = vsel %vm1365_vm1, %v4223_v11, 0 }
 0xc0c   :  { %7848 = vmatmul.mubr.msk.bf16.vlgmr.msra.gmra.mxu1 %vm1365_vm1, %v3917_v50 }
 0xc0d   :  { %7852 = vmatpush3.bf16.xpose.msra.mxu1 %v4620_v8  ;;  %7853 = vmatprep.mubr.msk.bf16.mxu1 %vm8619_vm0, %v8618_v21 }
 0xc0e   :  { %7857 = vmatprep.subr.bf16.mxu1 %v8618_v21 }
 0xc10   :  { %7878 = vmatmul.mubr.msk.bf16.vlgmr.msra.gmra.mxu0 %vm1365_vm1, %v3922_v51 }
 0xc11   :  { %7889 = vmatprep.mubr.msk.bf16.mxu0 %vm8619_vm0, %v8618_v21 }
 0xc14   :  { %7854 = vmatmul.mubr.msk.bf16.vlgmr.msra.gmra.mxu1 %vm1365_vm1, %v3918_v53 }
 0xc15   :  { %7858 = vmatpush3.bf16.xpose.msra.mxu1 %v4666_v55  ;;  %7859 = vmatprep.mubr.msk.bf16.mxu1 %vm8619_vm0, %v8618_v21 }
 0xc16   :  { %7869 = vmatprep.subr.bf16.mxu1 %v8618_v21 }
 0xc1c   :  { %7860 = vmatmul.mubr.msk.bf16.vlgmr.msra.gmra.mxu1 %vm1365_vm1, %v3919_v13 }
 0xc1d   :  { %7870 = vmatpush3.bf16.xpose.msra.mxu1 %v4758_v27  ;;  %7871 = vmatprep.mubr.msk.bf16.mxu1 %vm8619_vm0, %v8618_v21 }
 0xc1e   :  { %7881 = vmatprep.subr.bf16.mxu1 %v8618_v21 }
 0xc24   :  { %7872 = vmatmul.mubr.msk.bf16.vlgmr.msra.gmra.mxu1 %vm1365_vm1, %v3921_v16 }
 0xc25   :  { %7882 = vmatpush3.bf16.xpose.msra.mxu1 %v4850_v18  ;;  %7883 = vmatprep.mubr.msk.bf16.mxu1 %vm8619_vm0, %v8618_v21 }
 0xc26   :  { %7893 = vmatprep.subr.bf16.mxu1 %v8618_v21 }
 0xc2c   :  { %7884 = vmatmul.mubr.msk.bf16.vlgmr.msra.gmra.mxu1 %vm1365_vm1, %v3923_v19 }
 0xc2d   :  { %7895 = vmatprep.mubr.msk.bf16.mxu1 %vm8619_vm0, %v8618_v21 }
 0xcc4   :  { %v4564_v54 = vpop.f32.mrf.mxu1 }
 0xcc5   :  { %v4892_v37 = vsel %vm1734_vm2, %v4564_v54, -inf }
 0xcc6   :  { %4893 = vmax.xlane.f32.xlu1 %v4892_v37  ;;  %v7843_v6 = vpop.f32.mrf.mxu1 }
 0xcc8   :  { %v4567_v35 = vpop.f32.mrf.mxu1  ;;  %v4748_v62 = vpop.f32.mrf.mxu0 }
 0xcc9   :  { %v4904_v2 = vsel %vm1734_vm2, %v4748_v62, -inf }
 0xcca   :  { %v7844_v1 = vpop.f32.mrf.mxu1  ;;  %4905 = vmax.xlane.f32.xlu0 %v4904_v2  ;;  %v7867_v40 = vpop.f32.mrf.mxu0 }
 0xccc   :  { %v4610_v39 = vpop.f32.mrf.mxu1  ;;  %v4751_v15 = vpop.f32.mrf.mxu0 }
 0xccd   :  { %v4895_v34 = vsel %vm1734_vm2, %v4610_v39, -inf }
 0xcce   :  { %v7849_v30 = vpop.f32.mrf.mxu1  ;;  %4896 = vmax.xlane.f32.xlu0 %v4895_v34  ;;  %v7868_v22 = vpop.f32.mrf.mxu0 }
 0xcd0   :  { %v4613_v3 = vpop.f32.mrf.mxu1  ;;  %v9448_v23 = vpop.f32.mrf.mxu0 }
 0xcd1   :  { %v4910_v36 = vsel %vm1734_vm2, %v9448_v23, -inf }
 0xcd2   :  { %v7850_v9 = vpop.f32.mrf.mxu1  ;;  %4911 = vmax.xlane.f32.xlu0 %v4910_v36  ;;  %v7879_v5 = vpop.f32.mrf.mxu0 }
 0xcd4   :  { %v4656_v63 = vpop.f32.mrf.mxu1  ;;  %v4843_v24 = vpop.f32.mrf.mxu0 }
 0xcd5   :  { %v4898_v38 = vsel %vm1734_vm2, %v4656_v63, -inf }
 0xcd6   :  { %v7855_v28 = vpop.f32.mrf.mxu1  ;;  %4899 = vmax.xlane.f32.xlu0 %v4898_v38  ;;  %v7880_v44 = vpop.f32.mrf.mxu0 }
 0xcd7   :  { %4232 = vrot.lane.b32.xlu1 %v3618_v7, %s8597_s28 }
 0xcd8   :  { %v4659_v41 = vpop.f32.mrf.mxu1 }
 0xcda   :  { %v7856_v45 = vpop.f32.mrf.mxu1 }
 0xcdb   :  { %4238 = vrot.lane.b32.xlu1 %v3618_v7, %s8616_s22 }
 0xcdc   :  { %v9457_v50 = vpop.f32.mrf.mxu1 }
 0xcdd   :  { %v4901_v53 = vsel %vm1734_vm2, %v9457_v50, -inf }
 0xcde   :  { %v7861_v26 = vpop.f32.mrf.mxu1 }
 0xce0   :  { %v4705_v47 = vpop.f32.mrf.mxu1 }
 0xce2   :  { %v7862_v48 = vpop.f32.mrf.mxu1 }
 0xce4   :  { %v9459_v8 = vpop.f32.mrf.mxu1 }
 0xce5   :  { %v4907_v55 = vsel %vm1734_vm2, %v9459_v8, -inf }
 0xce6   :  { %v7873_v20 = vpop.f32.mrf.mxu1 }
 0xce8   :  { %v4797_v43 = vpop.f32.mrf.mxu1 }
 0xcea   :  { %v7874_v17 = vpop.f32.mrf.mxu1 }
 0xcec   :  { %v9461_v4 = vpop.f32.mrf.mxu1  ;;  %4226 = vrot.lane.b32.xlu0 %v3618_v7, %s8620_s9 }
 0xced   :  { %v4913_v56 = vsel %vm1734_vm2, %v9461_v4, -inf }
 0xcee   :  { %v7885_v46 = vpop.f32.mrf.mxu1 }
 0xcf0   :  { %v4889_v49 = vpop.f32.mrf.mxu1 }
 0xcf2   :  { %v7886_v51 = vpop.f32.mrf.mxu1 }
 0xcff   :  { %4902 = vmax.xlane.f32.xlu1 %v4901_v53 }
 0xd03   :  { %4908 = vmax.xlane.f32.xlu1 %v4907_v55 }
 0xd07   :  { %4914 = vmax.xlane.f32.xlu1 %v4913_v56 }
 0xd18   :  { %4228 = vrot.lane.b32.xlu1 %v9273_v25, %s8620_s9 }
 0xd4f   :  { %v4894_v60 = vpop.xlane.xlu1 %4893 }
 0xd50   :  { %v4916_v61 = vsub.f32 %v4564_v54, %v4894_v60 }
 0xd52   :  { %v4924_v13 = vmul.f32 1.442695, %v4916_v61 }
 0xd53   :  { %v4906_v27 = vpop.xlane.xlu0 %4905  ;;  %v4233_v19 = vpop.permute.xlu1 %4232 }
 0xd54   :  { %8297 = vpow2.f32 %v4924_v13  ;;  %v4920_v10 = vsub.f32 %v4748_v62, %v4906_v27  ;;  %v4244_v1 = vcombine.low %v3618_v7, %v4233_v19  ;;  %v4245_v2 = vcombine.high %v3618_v7, %v4233_v19 }
 0xd56   :  { %v4932_v57 = vmul.f32 1.442695, %v4920_v10  ;;  %v4252_v3 = vrot.slane %v4244_v1, %v8812_v52  ;;  %v4259_v22 = vrot.slane %v4245_v2, %v8812_v52 }
 0xd57   :  { %v4897_v11 = vpop.xlane.xlu0 %4896  ;;  %v4239_v40 = vpop.permute.xlu1 %4238 }
 0xd58   :  { %8299 = vpow2.f32 %v4932_v57  ;;  %v4917_v16 = vsub.f32 %v4610_v39, %v4897_v11 }
 0xd5a   :  { %v4926_v18 = vmul.f32 1.442695, %v4917_v16 }
 0xd5b   :  { %v9472_v12 = vpop.xlane.xlu0 %4911 }
 0xd5c   :  { %8301 = vpow2.f32 %v4926_v18 }
 0xd5f   :  { %v4900_v6 = vpop.xlane.xlu0 %4899 }
 0xd60   :  { %v4918_v54 = vsub.f32 %v4656_v63, %v4900_v6 }
 0xd61   :  { %v9474_v37 = vpop.eup %8297 }
 0xd62   :  { %v4940_v35 = vsel %vm1734_vm2, %v9474_v37, 0.0  ;;  %v4928_v62 = vmul.f32 1.442695, %v4918_v54 }
 0xd63   :  { %4941 = vadd.xlane.f32.xlu0 %v4940_v35  ;;  %v4227_v30 = vpop.permute.xlu0 %4226 }
 0xd64   :  { %8303 = vpow2.f32 %v4928_v62  ;;  %v4260_v39 = vcombine.low %v4227_v30, %v4239_v40  ;;  %v4261_v15 = vcombine.high %v4227_v30, %v4239_v40 }
 0xd65   :  { %v9478_v34 = vpop.eup %8299 }
 0xd66   :  { %v4268_v9 = vrot.slane %v4260_v39, %v8812_v52  ;;  %v4275_v36 = vrot.slane %v4261_v15, %v8812_v52  ;;  %v4952_v63 = vsel %vm1734_vm2, %v9478_v34, 0.0 }
 0xd67   :  { %4953 = vadd.xlane.f32.xlu0 %v4952_v63 }
 0xd68   :  { %v4276_v5 = vcombine.low %v4252_v3, %v4268_v9  ;;  %v4277_v7 = vcombine.high %v4252_v3, %v4268_v9  ;;  %v4292_v28 = vcombine.low %v4259_v22, %v4275_v36  ;;  %v4293_v24 = vcombine.high %v4259_v22, %v4275_v36 }
 0xd69   :  { %v9486_v38 = vpop.eup %8301 }
 0xd6a   :  { %v4284_v41 = vrot.slane %v4276_v5, %v8815_v59  ;;  %v4291_v44 = vrot.slane %v4277_v7, %v8815_v59  ;;  %v4300_v45 = vrot.slane %v4292_v28, %v8815_v59  ;;  %v4307_v26 = vrot.slane %v4293_v24, %v8815_v59 }
 0xd6b   :  { %v4943_v47 = vsel %vm1734_vm2, %v9486_v38, 0.0 }
 0xd6c   :  { %v4380_v48 = vcombine.low %v4284_v41, %v4291_v44  ;;  %v7326_v20 = vcombine.high %v4284_v41, %v4291_v44  ;;  %v4396_v43 = vcombine.low %v4300_v45, %v4307_v26  ;;  %v7327_v17 = vcombine.high %v4300_v45, %v4307_v26  ;;  %4944 = vadd.xlane.f32.xlu1 %v4943_v47 }
 0xd6e   :  { %v4387_v46 = vrot.slane %v4380_v48, %v8812_v52  ;;  %v4395_v49 = vrot.slane %v7326_v20, %v8812_v52  ;;  %v4403_v51 = vrot.slane %v4396_v43, %v8812_v52  ;;  %v4411_v53 = vrot.slane %v7327_v17, %v8812_v52 }
 0xd70   :  { %v4412_v55 = vcombine.low %v4387_v46, %v4395_v49  ;;  %v4428_v56 = vcombine.low %v4403_v51, %v4411_v53  ;;  %v4413_v60 = vcombine.high %v4387_v46, %v4395_v49  ;;  %v4429_v61 = vcombine.high %v4403_v51, %v4411_v53 }
 0xd71   :  { %v9498_v13 = vpop.eup %8303 }
 0xd72   :  { %v4946_v27 = vsel %vm1734_vm2, %v9498_v13, 0.0  ;;  %v4420_v10 = vrot.slane %v4412_v55, %v8815_v59  ;;  %v4436_v57 = vrot.slane %v4428_v56, %v8815_v59  ;;  %v4427_v11 = vrot.slane %v4413_v60, %v8815_v59 }
 0xd73   :  { %4947 = vadd.xlane.f32.xlu0 %v4946_v27  ;;  %v4443_v16 = vrot.slane %v4429_v61, %v8815_v59 }
 0xd74   :  { %v4444_v18 = vcombine.low %v4420_v10, %v4436_v57  ;;  %v4445_v19 = vcombine.high %v4420_v10, %v4436_v57 }
 0xd75   :  { %v4446_v6 = vcombine.low %v4427_v11, %v4443_v16  ;;  %v4447_v35 = vcombine.high %v4427_v11, %v4443_v16 }
 0xd76   :  { %v4516_v54 = vpack.c.bf16 %v4444_v18, %v4444_v18  ;;  %v4517_v1 = vpack.c.bf16 %v4445_v19, %v4445_v19 }
 0xd77   :  { %v4518_v43 = vpack.c.bf16 %v4446_v6, %v4446_v6  ;;  %v4519_v55 = vpack.c.bf16 %v4447_v35, %v4447_v35 }
 0xd78   :  { %v4992_v2 = vsel %vm1834_vm3, %v4516_v54, 0  ;;  %v5038_v62 = vsel %vm1834_vm3, %v4517_v1, 0 }
 0xd79   :  { %7888 = vmatpush3.bf16.msra.mxu0 %v4992_v2  ;;  %7894 = vmatpush3.bf16.msra.mxu1 %v5038_v62  ;;  %v5084_v49 = vsel %vm1834_vm3, %v4518_v43, 0 }
 0xd7a   :  { %7899 = vmatprep.subr.bf16.mxu0 %v8618_v21  ;;  %7905 = vmatprep.subr.bf16.mxu1 %v8618_v21 }
 0xd88   :  { %v4903_v40 = vpop.xlane.xlu1 %4902 }
 0xd89   :  { %v4919_v30 = vsub.f32 %v9457_v50, %v4903_v40  ;;  %v4922_v50 = vsub.f32 %v9448_v23, %v9472_v12 }
 0xd8b   :  { %v4930_v39 = vmul.f32 1.442695, %v4919_v30  ;;  %v4936_v7 = vmul.f32 1.442695, %v4922_v50 }
 0xd8c   :  { %v4909_v15 = vpop.xlane.xlu1 %4908 }
 0xd8d   :  { %8305 = vpow2.f32 %v4930_v39  ;;  %v4921_v3 = vsub.f32 %v9459_v8, %v4909_v15 }
 0xd8f   :  { %v4934_v22 = vmul.f32 1.442695, %v4921_v3 }
 0xd90   :  { %v4915_v8 = vpop.xlane.xlu1 %4914 }
 0xd91   :  { %8307 = vpow2.f32 %v4934_v22  ;;  %v4923_v28 = vsub.f32 %v9461_v4, %v4915_v8 }
 0xd92   :  { %8309 = vpow2.f32 %v4936_v7 }
 0xd93   :  { %v4938_v24 = vmul.f32 1.442695, %v4923_v28 }
 0xd94   :  { %v4229_v12 = vpop.permute.xlu1 %4228 }
 0xd95   :  { %8311 = vpow2.f32 %v4938_v24 }
 0xd9a   :  { %v9512_v9 = vpop.eup %8305 }
 0xd9b   :  { %v4949_v36 = vsel %vm1734_vm2, %v9512_v9, 0.0 }
 0xd9c   :  { %4950 = vadd.xlane.f32.xlu1 %v4949_v36 }
 0xd9e   :  { %v9516_v63 = vpop.eup %8307 }
 0xd9f   :  { %v4955_v5 = vsel %vm1734_vm2, %v9516_v63, 0.0  ;;  %v9527_v41 = vpop.eup %8309 }
 0xda0   :  { %4956 = vadd.xlane.f32.xlu0 %v4955_v5  ;;  %v4958_v44 = vsel %vm1734_vm2, %v9527_v41, 0.0 }
 0xda2   :  { %v9531_v45 = vpop.eup %8311 }
 0xda3   :  { %v4961_v26 = vsel %vm1734_vm2, %v9531_v45, 0.0 }
 0xdad   :  { %4240 = vrot.lane.b32.xlu1 %v9273_v25, %s8616_s22 }
 0xdb6   :  { %4234 = vrot.lane.b32.xlu0 %v9273_v25, %s8597_s28 }
 0xdd1   :  { %4959 = vadd.xlane.f32.xlu1 %v4958_v44 }
 0xdd5   :  { %4962 = vadd.xlane.f32.xlu0 %v4961_v26 }
 0xdec   :  { %v4942_v23 = vpop.xlane.xlu0 %4941 }
 0xded   :  { %8313 = vrcp.f32 %v4942_v23 }
 0xdf0   :  { %v4954_v48 = vpop.xlane.xlu0 %4953 }
 0xdf5   :  { %v4945_v47 = vpop.xlane.xlu1 %4944 }
 0xdf6   :  { %8315 = vrcp.f32 %v4945_v47 }
 0xdfa   :  { %v8314_v4 = vpop.eup %8313 }
 0xdfb   :  { %v4972_v20 = vmul.f32 %v8314_v4, %v9474_v37  ;;  %v5130_v37 = vsel %vm1834_vm3, %v4519_v55, 0 }
 0xdfc   :  { %v4948_v46 = vpop.xlane.xlu0 %4947 }
 0xdfd   :  { %v4980_v17 = vpack.c.bf16 %v4972_v20, %v4972_v20  ;;  %8317 = vrcp.f32 %v4948_v46 }
 0xdff   :  { %7890 = vmatmul.mubr.msk.bf16.vlgmr.msra.gmra.mxu0 %vm1734_vm2, %v4980_v17 }
 0xe00   :  { %7900 = vmatpush3.bf16.msra.mxu0 %v5084_v49  ;;  %7901 = vmatprep.mubr.msk.bf16.mxu0 %vm8619_vm0, %v8618_v21 }
 0xe01   :  { %7911 = vmatprep.subr.bf16.mxu0 %v8618_v21 }
 0xe03   :  { %v8316_v51 = vpop.eup %8315 }
 0xe04   :  { %v4973_v53 = vmul.f32 %v8316_v51, %v9486_v38 }
 0xe06   :  { %v4981_v56 = vpack.c.bf16 %v4973_v53, %v4973_v53 }
 0xe08   :  { %7896 = vmatmul.mubr.msk.bf16.vlgmr.msra.gmra.mxu1 %vm1734_vm2, %v4981_v56 }
 0xe09   :  { %7906 = vmatpush3.bf16.msra.mxu1 %v5130_v37  ;;  %7907 = vmatprep.mubr.msk.bf16.mxu1 %vm8619_vm0, %v8618_v21 }
 0xe0a   :  { %v8318_v60 = vpop.eup %8317  ;;  %7917 = vmatprep.subr.bf16.mxu1 %v8618_v21 }
 0xe0b   :  { %v4974_v61 = vmul.f32 %v8318_v60, %v9498_v13 }
 0xe0d   :  { %v4982_v27 = vpack.c.bf16 %v4974_v61, %v4974_v61 }
 0xe0f   :  { %7902 = vmatmul.mubr.msk.bf16.vlgmr.msra.gmra.mxu0 %vm1734_vm2, %v4982_v27 }
 0xe10   :  { %7913 = vmatprep.mubr.msk.bf16.mxu0 %vm8619_vm0, %v8618_v21 }
 0xe25   :  { %v4951_v38 = vpop.xlane.xlu1 %4950 }
 0xe26   :  { %8319 = vrcp.f32 %v4951_v38 }
 0xe27   :  { %8321 = vrcp.f32 %v4954_v48 }
 0xe29   :  { %v4241_v10 = vpop.permute.xlu1 %4240  ;;  %v4957_v57 = vpop.xlane.xlu0 %4956 }
 0xe2a   :  { %v4328_v11 = vcombine.low %v4229_v12, %v4241_v10  ;;  %v4329_v16 = vcombine.high %v4229_v12, %v4241_v10  ;;  %8323 = vrcp.f32 %v4957_v57 }
 0xe2c   :  { %v4336_v13 = vrot.slane %v4328_v11, %v8812_v52  ;;  %v4343_v35 = vrot.slane %v4329_v16, %v8812_v52 }
 0xe2d   :  { %v4235_v18 = vpop.permute.xlu0 %4234 }
 0xe2e   :  { %v4312_v19 = vcombine.low %v9273_v25, %v4235_v18  ;;  %v4313_v6 = vcombine.high %v9273_v25, %v4235_v18 }
 0xe30   :  { %v4320_v54 = vrot.slane %v4312_v19, %v8812_v52  ;;  %v4327_v1 = vrot.slane %v4313_v6, %v8812_v52 }
 0xe32   :  { %v4344_v2 = vcombine.low %v4320_v54, %v4336_v13  ;;  %v4345_v62 = vcombine.high %v4320_v54, %v4336_v13  ;;  %v4360_v40 = vcombine.low %v4327_v1, %v4343_v35  ;;  %v4361_v30 = vcombine.high %v4327_v1, %v4343_v35 }
 0xe33   :  { %v8320_v39 = vpop.eup %8319 }
 0xe34   :  { %v4352_v15 = vrot.slane %v4344_v2, %v8815_v59  ;;  %v4359_v3 = vrot.slane %v4345_v62, %v8815_v59  ;;  %v4368_v25 = vrot.slane %v4360_v40, %v8815_v59  ;;  %v4375_v22 = vrot.slane %v4361_v30, %v8815_v59  ;;  %v8322_v48 = vpop.eup %8321 }
 0xe35   :  { %v4975_v36 = vmul.f32 %v8320_v39, %v9512_v9  ;;  %v4976_v61 = vmul.f32 %v8322_v48, %v9478_v34 }
 0xe36   :  { %v4448_v5 = vcombine.low %v4352_v15, %v4359_v3  ;;  %v7328_v50 = vcombine.high %v4352_v15, %v4359_v3  ;;  %v4464_v8 = vcombine.low %v4368_v25, %v4375_v22  ;;  %v7329_v7 = vcombine.high %v4368_v25, %v4375_v22  ;;  %v8170_v22 = vld [vmem:[#allocation8 + $0x70] sm:$0xff]  }
 0xe37   :  { %v4983_v28 = vpack.c.bf16 %v4975_v36, %v4975_v36  ;;  %v8324_v20 = vpop.eup %8323  ;;  %v4984_v16 = vpack.c.bf16 %v4976_v61, %v4976_v61 }
 0xe38   :  { %v4455_v24 = vrot.slane %v4448_v5, %v8812_v52  ;;  %v4463_v44 = vrot.slane %v7328_v50, %v8812_v52  ;;  %v4471_v26 = vrot.slane %v4464_v8, %v8812_v52  ;;  %v4479_v23 = vrot.slane %v7329_v7, %v8812_v52  ;;  %v8171_v5 = vld [vmem:[#allocation8 + $0x68] sm:$0xff]  }
 0xe39   :  { %7908 = vmatmul.mubr.msk.bf16.vlgmr.msra.gmra.mxu1 %vm1734_vm2, %v4983_v28  ;;  %v4977_v27 = vmul.f32 %v8324_v20, %v9516_v63 }
 0xe3a   :  { %v4480_v12 = vcombine.low %v4455_v24, %v4463_v44  ;;  %v4496_v47 = vcombine.low %v4471_v26, %v4479_v23  ;;  %7919 = vmatprep.mubr.msk.bf16.mxu1 %vm8619_vm0, %v8618_v21  ;;  %v4481_v9 = vcombine.high %v4455_v24, %v4463_v44  ;;  %v4497_v4 = vcombine.high %v4471_v26, %v4479_v23  ;;  %v8172_v24 = vld [vmem:[#allocation8 + $0x60] sm:$0xff]   ;;  %v8173_v23 = vld [vmem:[#allocation8 + $0x58] sm:$0xff]  }
 0xe3b   :  { %v4985_v18 = vpack.c.bf16 %v4977_v27, %v4977_v27 }
 0xe3c   :  { %v4488_v43 = vrot.slane %v4480_v12, %v8815_v59  ;;  %v4504_v17 = vrot.slane %v4496_v47, %v8815_v59  ;;  %v4495_v46 = vrot.slane %v4481_v9, %v8815_v59  ;;  %v4511_v49 = vrot.slane %v4497_v4, %v8815_v59  ;;  %v8174_v12 = vld [vmem:[#allocation8 + $0x50] sm:$0xff]  }
 0xe3e   :  { %v4512_v51 = vcombine.low %v4488_v43, %v4504_v17  ;;  %v4513_v53 = vcombine.high %v4488_v43, %v4504_v17  ;;  %v4514_v55 = vcombine.low %v4495_v46, %v4511_v49  ;;  %v4515_v56 = vcombine.high %v4495_v46, %v4511_v49 }
 0xe40   :  { %v4520_v37 = vpack.c.bf16 %v4512_v51, %v4512_v51  ;;  %v4521_v60 = vpack.c.bf16 %v4513_v53, %v4513_v53  ;;  %v4522_v57 = vpack.c.bf16 %v4514_v55, %v4514_v55  ;;  %v4523_v11 = vpack.c.bf16 %v4515_v56, %v4515_v56 }
 0xe42   :  { %v5176_v38 = vsel %vm1834_vm3, %v4520_v37, 0  ;;  %v5222_v10 = vsel %vm1834_vm3, %v4521_v60, 0  ;;  %v5268_v34 = vsel %vm1834_vm3, %v4522_v57, 0  ;;  %v5314_v63 = vsel %vm1834_vm3, %v4523_v11, 0 }
 0xe43   :  { %7912 = vmatpush3.bf16.msra.mxu0 %v5176_v38  ;;  %7918 = vmatpush3.bf16.msra.mxu1 %v5222_v10 }
 0xe44   :  { %7923 = vmatprep.subr.bf16.mxu0 %v8618_v21  ;;  %7929 = vmatprep.subr.bf16.mxu1 %v8618_v21 }
 0xe46   :  { %7914 = vmatmul.mubr.msk.bf16.vlgmr.msra.gmra.mxu0 %vm1734_vm2, %v4984_v16  ;;  %7920 = vmatmul.mubr.msk.bf16.vlgmr.msra.gmra.mxu1 %vm1734_vm2, %v4985_v18 }
 0xe47   :  { %7924 = vmatpush3.bf16.msra.mxu0 %v5268_v34  ;;  %7930 = vmatpush3.bf16.msra.mxu1 %v5314_v63 }
 0xe48   :  { %7925 = vmatprep.mubr.msk.bf16.mxu0 %vm8619_vm0, %v8618_v21  ;;  %7931 = vmatprep.mubr.msk.bf16.mxu1 %vm8619_vm0, %v8618_v21 }
 0xe49   :  { %7935 = vmatprep.subr.bf16.mxu0 %v8618_v21 }
 0xe5a   :  { %v4960_v19 = vpop.xlane.xlu1 %4959 }
 0xe5b   :  { %8325 = vrcp.f32 %v4960_v19 }
 0xe5e   :  { %v4963_v6 = vpop.xlane.xlu0 %4962 }
 0xe5f   :  { %8327 = vrcp.f32 %v4963_v6 }
 0xe68   :  { %v8326_v13 = vpop.eup %8325 }
 0xe69   :  { %v4978_v35 = vmul.f32 %v8326_v13, %v9527_v41  ;;  %v8169_v41 = vld [vmem:[#allocation8 + $0x78] sm:$0xff]  }
 0xe6b   :  { %v4986_v54 = vpack.c.bf16 %v4978_v35, %v4978_v35 }
 0xe6c   :  { %v8328_v1 = vpop.eup %8327 }
 0xe6d   :  { %7926 = vmatmul.mubr.msk.bf16.vlgmr.msra.gmra.mxu0 %vm1734_vm2, %v4986_v54  ;;  %v4979_v2 = vmul.f32 %v8328_v1, %v9531_v45 }
 0xe6e   :  { %7951 = vmatprep.mubr.msk.bf16.mxu0 %vm8619_vm0, %v8618_v21  ;;  %7936 = vmatpush3.bf16.msra.mxu0 %v8169_v41 }
 0xe6f   :  { %v4987_v62 = vpack.c.bf16 %v4979_v2, %v4979_v2  ;;  %7937 = vmatprep.subr.bf16.mxu0 %v8618_v21 }
 0xe71   :  { %7932 = vmatmul.mubr.msk.bf16.vlgmr.msra.gmra.mxu1 %vm1734_vm2, %v4987_v62 }
 0xe72   :  { %6066 = vmatprep.mubr.bf16.mxu1 %v8617_v0  ;;  %7938 = vmatpush3.bf16.msra.mxu0 %v8170_v22 }
 0xe73   :  { %7939 = vmatprep.subr.bf16.mxu0 %v8618_v21 }
 0xe76   :  { %7940 = vmatpush3.bf16.msra.mxu0 %v8171_v5 }
 0xe77   :  { %7941 = vmatprep.subr.bf16.mxu0 %v8618_v21 }
 0xe7a   :  { %7942 = vmatpush3.bf16.msra.mxu0 %v8172_v24 }
 0xe7b   :  { %7943 = vmatprep.subr.bf16.mxu0 %v8618_v21 }
 0xe7e   :  { %7944 = vmatpush3.bf16.msra.mxu0 %v8173_v23 }
 0xe7f   :  { %7945 = vmatprep.subr.bf16.mxu0 %v8618_v21 }
 0xe82   :  { %7946 = vmatpush3.bf16.msra.mxu0 %v8174_v12 }
 0xe83   :  { %7947 = vmatprep.subr.bf16.mxu0 %v8618_v21 }
 0xebf   :  { %v5028_v40 = vpop.f32.mrf.mxu0 }
 0xec1   :  { %v7891_v30 = vpop.f32.mrf.mxu0 }
 0xec3   :  { %v5031_v39 = vpop.f32.mrf.mxu0 }
 0xec5   :  { %v7892_v15 = vpop.f32.mrf.mxu0 }
 0xec8   :  { %v5074_v3 = vpop.f32.mrf.mxu1 }
 0xeca   :  { %v7897_v25 = vpop.f32.mrf.mxu1 }
 0xecc   :  { %v5077_v45 = vpop.f32.mrf.mxu1 }
 0xece   :  { %v7898_v36 = vpop.f32.mrf.mxu1 }
 0xecf   :  { %v5120_v50 = vpop.f32.mrf.mxu0 }
 0xed0   :  { %v5356_v8 = vcombine.low %v5028_v40, %v5120_v50  ;;  %v5357_v7 = vcombine.high %v5028_v40, %v5120_v50 }
 0xed1   :  { %v7903_v28 = vpop.f32.mrf.mxu0 }
 0xed2   :  { %v5364_v20 = vrot.slane %v5356_v8, %v8812_v52  ;;  %v5371_v43 = vrot.slane %v5357_v7, %v8812_v52 }
 0xed3   :  { %v5123_v44 = vpop.f32.mrf.mxu0 }
 0xed5   :  { %v7904_v26 = vpop.f32.mrf.mxu0 }
 0xef9   :  { %v5166_v47 = vpop.f32.mrf.mxu1 }
 0xefa   :  { %v5372_v9 = vcombine.low %v5074_v3, %v5166_v47  ;;  %v5373_v4 = vcombine.high %v5074_v3, %v5166_v47 }
 0xefb   :  { %v7909_v48 = vpop.f32.mrf.mxu1 }
 0xefc   :  { %v5380_v17 = vrot.slane %v5372_v9, %v8812_v52  ;;  %v5387_v46 = vrot.slane %v5373_v4, %v8812_v52 }
 0xefd   :  { %v5169_v49 = vpop.f32.mrf.mxu1 }
 0xefe   :  { %v5388_v51 = vcombine.low %v5364_v20, %v5380_v17  ;;  %v5389_v53 = vcombine.high %v5364_v20, %v5380_v17  ;;  %v5404_v55 = vcombine.low %v5371_v43, %v5387_v46  ;;  %v5405_v56 = vcombine.high %v5371_v43, %v5387_v46 }
 0xeff   :  { %v7910_v37 = vpop.f32.mrf.mxu1 }
 0xf00   :  { %v5396_v60 = vrot.slane %v5388_v51, %v8815_v59  ;;  %v5403_v61 = vrot.slane %v5389_v53, %v8815_v59  ;;  %v5412_v27 = vrot.slane %v5404_v55, %v8815_v59  ;;  %v5419_v38 = vrot.slane %v5405_v56, %v8815_v59 }
 0xf02   :  { %v5492_v10 = vcombine.low %v5396_v60, %v5403_v61  ;;  %v7346_v57 = vcombine.high %v5396_v60, %v5403_v61  ;;  %v5508_v11 = vcombine.low %v5412_v27, %v5419_v38  ;;  %v7347_v16 = vcombine.high %v5412_v27, %v5419_v38 }
 0xf04   :  { %v5499_v18 = vrot.slane %v5492_v10, %v8812_v52  ;;  %v5507_v34 = vrot.slane %v7346_v57, %v8812_v52  ;;  %v5515_v63 = vrot.slane %v5508_v11, %v8812_v52  ;;  %v5523_v19 = vrot.slane %v7347_v16, %v8812_v52  ;;  %v8175_v16 = vld [vmem:[#allocation8 + $0x48] sm:$0xff]  }
 0xf05   :  { %7948 = vmatpush3.bf16.msra.mxu0 %v8175_v16  ;;  %v8183_v16 = vld [vmem:[#allocation14 + $0x1c0] ss:$16 sps:$4 sm:$0xff]  }
 0xf06   :  { %v5212_v6 = vpop.f32.mrf.mxu0  ;;  %v5258_v13 = vpop.f32.mrf.mxu1  ;;  %v5525_v35 = vcombine.high %v5499_v18, %v5507_v34  ;;  %v5541_v54 = vcombine.high %v5515_v63, %v5523_v19  ;;  %v5524_v1 = vcombine.low %v5499_v18, %v5507_v34  ;;  %v5540_v2 = vcombine.low %v5515_v63, %v5523_v19  ;;  %7949 = vmatprep.subr.bf16.mxu0 %v8618_v21 }
 0xf08   :  { %v7915_v62 = vpop.f32.mrf.mxu0  ;;  %v7921_v40 = vpop.f32.mrf.mxu1  ;;  %v9614_v30 = vrot.slane %v5525_v35, %v8815_v59  ;;  %v9617_v39 = vrot.slane %v5541_v54, %v8815_v59  ;;  %v9620_v15 = vrot.slane %v5524_v1, %v8815_v59  ;;  %v9623_v3 = vrot.slane %v5540_v2, %v8815_v59 }
 0xf0a   :  { %v5215_v41 = vpop.f32.mrf.mxu0  ;;  %v5261_v25 = vpop.f32.mrf.mxu1  ;;  %v5558_v22 = vcombine.low %v9614_v30, %v9617_v39  ;;  %v5556_v45 = vcombine.low %v9620_v15, %v9623_v3  ;;  %v5557_v36 = vcombine.high %v9620_v15, %v9623_v3  ;;  %v5559_v5 = vcombine.high %v9614_v30, %v9617_v39  ;;  %v8176_v30 = vld [vmem:[#allocation8 + $0x40] sm:$0xff]  }
 0xf0b   :  { %7950 = vmatpush3.bf16.msra.mxu0 %v8176_v30  ;;  %v7350_v15 = vld [vmem:[#allocation10 + $0x1] ss:$0 sm:$0xff]  ;;  %v8206_v30 = vld [vmem:[#allocation14 + $0x16c] ss:$16 sps:$4 sm:$0xff]  }
 0xf0c   :  { %v7916_v50 = vpop.f32.mrf.mxu0  ;;  %v7922_v8 = vpop.f32.mrf.mxu1 }
 0xf2d   :  { %v5304_v7 = vpop.f32.mrf.mxu0 }
 0xf2e   :  { %v5424_v24 = vcombine.low %v5212_v6, %v5304_v7  ;;  %v5425_v44 = vcombine.high %v5212_v6, %v5304_v7 }
 0xf2f   :  { %v7927_v28 = vpop.f32.mrf.mxu0 }
 0xf30   :  { %v5432_v48 = vrot.slane %v5424_v24, %v8812_v52  ;;  %v5439_v20 = vrot.slane %v5425_v44, %v8812_v52 }
 0xf31   :  { %v5307_v26 = vpop.f32.mrf.mxu0  ;;  %v5350_v23 = vpop.f32.mrf.mxu1 }
 0xf32   :  { %v5440_v12 = vcombine.low %v5258_v13, %v5350_v23  ;;  %v5441_v47 = vcombine.high %v5258_v13, %v5350_v23 }
 0xf33   :  { %v7928_v9 = vpop.f32.mrf.mxu0  ;;  %v7933_v4 = vpop.f32.mrf.mxu1 }
 0xf34   :  { %v5448_v43 = vrot.slane %v5440_v12, %v8812_v52  ;;  %v5455_v17 = vrot.slane %v5441_v47, %v8812_v52 }
 0xf35   :  { %v5353_v46 = vpop.f32.mrf.mxu1 }
 0xf36   :  { %v5456_v49 = vcombine.low %v5432_v48, %v5448_v43  ;;  %v5457_v51 = vcombine.high %v5432_v48, %v5448_v43  ;;  %v5472_v53 = vcombine.low %v5439_v20, %v5455_v17  ;;  %v5473_v55 = vcombine.high %v5439_v20, %v5455_v17 }
 0xf37   :  { %v7934_v56 = vpop.f32.mrf.mxu1 }
 0xf38   :  { %v5464_v37 = vrot.slane %v5456_v49, %v8815_v59  ;;  %v5471_v60 = vrot.slane %v5457_v51, %v8815_v59  ;;  %v5480_v61 = vrot.slane %v5472_v53, %v8815_v59  ;;  %v5487_v27 = vrot.slane %v5473_v55, %v8815_v59  ;;  %v8177_v55 = vld [vmem:[#allocation14 + $0x1e0] ss:$16 sps:$4 sm:$0xff]   ;;  %v8179_v56 = vld [vmem:[#allocation14 + $0x1e4] ss:$16 sps:$4 sm:$0xff]  }
 0xf39   :  { %6034 = vmatprep.subr.bf16.mxu1 %v8179_v56  ;;  %v8228_v56 = vld [vmem:[#allocation16 + $0x1b8] sm:$0xff]  }
 0xf3a   :  { %v5560_v38 = vcombine.low %v5464_v37, %v5471_v60  ;;  %v7348_v10 = vcombine.high %v5464_v37, %v5471_v60  ;;  %v5576_v57 = vcombine.low %v5480_v61, %v5487_v27  ;;  %v7349_v11 = vcombine.high %v5480_v61, %v5487_v27  ;;  %v8180_v37 = vld [vmem:[#allocation14 + $0x1e8] ss:$16 sps:$4 sm:$0xff]   ;;  %v8182_v60 = vld [vmem:[#allocation14 + $0x1ec] ss:$16 sps:$4 sm:$0xff]   ;;  %6035 = vmatpush1.bf16.msra.mxu1 %v8177_v55 }
 0xf3b   :  { %6077 = vmatprep.subr.bf16.mxu0 %v8182_v60  ;;  %v8227_v55 = vld [vmem:[#allocation16 + $0x138] sm:$0xff]   ;;  %v8229_v60 = vld [vmem:[#allocation16 + $0x170] sm:$0xff]  }
 0xf3c   :  { %v5567_v18 = vrot.slane %v5560_v38, %v8812_v52  ;;  %v5575_v34 = vrot.slane %v7348_v10, %v8812_v52  ;;  %v5583_v63 = vrot.slane %v5576_v57, %v8812_v52  ;;  %v5591_v19 = vrot.slane %v7349_v11, %v8812_v52 }
 0xf3e   :  { %v5593_v6 = vcombine.high %v5567_v18, %v5575_v34  ;;  %v5609_v13 = vcombine.high %v5583_v63, %v5591_v19  ;;  %v5592_v35 = vcombine.low %v5567_v18, %v5575_v34  ;;  %v5608_v54 = vcombine.low %v5583_v63, %v5591_v19  ;;  %v8185_v18 = vld [vmem:[#allocation14 + $0x1c4] ss:$16 sps:$4 sm:$0xff]   ;;  %v8186_v34 = vld [vmem:[#allocation14 + $0x1c8] ss:$16 sps:$4 sm:$0xff]   ;;  %v8188_v63 = vld [vmem:[#allocation14 + $0x1cc] ss:$16 sps:$4 sm:$0xff]  }
 0xf3f   :  { %6036 = vmatprep.subr.bf16.mxu1 %v8185_v18  ;;  %v8189_v19 = vld [vmem:[#allocation14 + $0x1a0] ss:$16 sps:$4 sm:$0xff]  }
 0xf40   :  { %v5607_v1 = vrot.slane %v5593_v6, %v8815_v59  ;;  %v5623_v2 = vrot.slane %v5609_v13, %v8815_v59  ;;  %v5600_v62 = vrot.slane %v5592_v35, %v8815_v59  ;;  %v5616_v40 = vrot.slane %v5608_v54, %v8815_v59  ;;  %6037 = vmatpush1.bf16.msra.mxu1 %v8183_v16  ;;  %v8191_v6 = vld [vmem:[#allocation14 + $0x1a4] ss:$16 sps:$4 sm:$0xff]   ;;  %v8192_v13 = vld [vmem:[#allocation14 + $0x1a8] ss:$16 sps:$4 sm:$0xff]   ;;  %v8194_v35 = vld [vmem:[#allocation14 + $0x1ac] ss:$16 sps:$4 sm:$0xff]  }
 0xf41   :  { %v8197_v54 = vld [vmem:[#allocation14 + $0x184] ss:$16 sps:$4 sm:$0xff]   ;;  %6038 = vmatprep.subr.bf16.mxu1 %v8191_v6  ;;  %v8243_v6 = vld [vmem:[#allocation16 + $0x118] sm:$0xff]  }
 0xf42   :  { %v5626_v39 = vcombine.low %v5607_v1, %v5623_v2  ;;  %v5625_v41 = vcombine.high %v5600_v62, %v5616_v40  ;;  %v5624_v25 = vcombine.low %v5600_v62, %v5616_v40  ;;  %v5627_v8 = vcombine.high %v5607_v1, %v5623_v2  ;;  %v8200_v1 = vld [vmem:[#allocation14 + $0x18c] ss:$16 sps:$4 sm:$0xff]   ;;  %v8195_v2 = vld [vmem:[#allocation14 + $0x180] ss:$16 sps:$4 sm:$0xff]   ;;  %v8198_v62 = vld [vmem:[#allocation14 + $0x188] ss:$16 sps:$4 sm:$0xff]  }
 0xf43   :  { %v8203_v40 = vld [vmem:[#allocation14 + $0x164] ss:$16 sps:$4 sm:$0xff]  }
 0xf44   :  { %v8007_v52 = vpack.i.bf16 %v5626_v39, %v5558_v22  ;;  %v8002_v50 = vpack.i.bf16 %v5625_v41, %v5557_v36  ;;  %v8012_v21 = vpack.i.bf16 %v5627_v8, %v5559_v5  ;;  %6039 = vmatpush1.bf16.msra.mxu1 %v8189_v19  ;;  %v8201_v39 = vld [vmem:[#allocation14 + $0x160] ss:$16 sps:$4 sm:$0xff]   ;;  %v8204_v41 = vld [vmem:[#allocation14 + $0x168] ss:$16 sps:$4 sm:$0xff]  }
 0xf45   :  { %6040 = vmatprep.subr.bf16.mxu1 %v8197_v54  ;;  %v8210_v8 = vld [vmem:[#allocation14 + $0x148] ss:$16 sps:$4 sm:$0xff]   ;;  %v8238_v16 = vld [vmem:[#allocation16 + $0x1e0] sm:$0xff]   ;;  %v8246_v54 = vld [vmem:[#allocation16 + $0x1d0] sm:$0xff]  }
 0xf46   :  { %8008 = vrot.lane.b32.xlu1 %v8007_v52, %s8597_s28  ;;  %8003 = vrot.lane.b32.xlu0 %v8002_v50, %s8616_s22  ;;  %v8212_v52 = vld [vmem:[#allocation14 + $0x14c] ss:$16 sps:$4 sm:$0xff]   ;;  %v8207_v50 = vld [vmem:[#allocation14 + $0x140] ss:$16 sps:$4 sm:$0xff]  }
 0xf47   :  { %v8239_v18 = vld [vmem:[#allocation16 + $0x120] sm:$0xff]   ;;  %v8242_v19 = vld [vmem:[#allocation16 + $0x1d8] sm:$0xff]  }
 0xf48   :  { %6041 = vmatpush1.bf16.msra.mxu1 %v8195_v2  ;;  %v8248_v2 = vld [vmem:[#allocation16 + $0x190] sm:$0xff]  }
 0xf49   :  { %6042 = vmatprep.subr.bf16.mxu1 %v8203_v40  ;;  %v8250_v40 = vld [vmem:[#allocation16 + $0x1c8] sm:$0xff]  }
 0xf4a   :  { %8013 = vrot.lane.b32.xlu1 %v8012_v21, %s8620_s9  ;;  %v8215_v21 = vld [vmem:[#allocation14 + $0x124] ss:$16 sps:$4 sm:$0xff]  }
 0xf4c   :  { %6043 = vmatpush1.bf16.msra.mxu1 %v8201_v39  ;;  %v8252_v39 = vld [vmem:[#allocation16 + $0x188] sm:$0xff]  }
 0xfb8   :  { %v8009_v7 = vpop.permute.xlu1 %8008  ;;  %v8004_v28 = vpop.permute.xlu0 %8003 }
 0xfb9   :  { %v8006_v24 = vunpack.i.h.bf16 %v8004_v28  ;;  %v8005_v44 = vunpack.i.l.bf16 %v8004_v28  ;;  %v8011_v59 = vunpack.i.h.bf16 %v8009_v7  ;;  %v8010_v26 = vunpack.i.l.bf16 %v8009_v7  ;;  %v8218_v7 = vld [vmem:[#allocation14 + $0x12c] ss:$16 sps:$4 sm:$0xff]   ;;  %v8213_v28 = vld [vmem:[#allocation14 + $0x120] ss:$16 sps:$4 sm:$0xff]  }
 0xfbb   :  { %v5652_v22 = vsel %vm1365_vm1, %v5556_v45, %v8005_v44  ;;  %v5653_v36 = vsel %vm1365_vm1, %v5624_v25, %v8006_v24  ;;  %v8209_v25 = vld [vmem:[#allocation14 + $0x144] ss:$16 sps:$4 sm:$0xff]   ;;  %v8216_v24 = vld [vmem:[#allocation14 + $0x128] ss:$16 sps:$4 sm:$0xff]  }
 0xfbc   :  { %v8014_v23 = vpop.permute.xlu1 %8013  ;;  %v5654_v5 = vsel %vm2498_vm4, %v5652_v22, %v8010_v26  ;;  %v5655_v9 = vsel %vm2498_vm4, %v5653_v36, %v8011_v59  ;;  %6044 = vmatprep.subr.bf16.mxu1 %v8209_v25  ;;  %v8221_v44 = vld [vmem:[#allocation14 + $0x104] ss:$16 sps:$4 sm:$0xff]   ;;  %v8224_v59 = vld [vmem:[#allocation14 + $0x10c] ss:$16 sps:$4 sm:$0xff]   ;;  %v8219_v26 = vld [vmem:[#allocation14 + $0x100] ss:$16 sps:$4 sm:$0xff]  }
 0xfbd   :  { %v8016_v12 = vunpack.i.h.bf16 %v8014_v23  ;;  %v8015_v47 = vunpack.i.l.bf16 %v8014_v23  ;;  %6045 = vmatpush1.bf16.msra.mxu1 %v8207_v50  ;;  %v8222_v22 = vld [vmem:[#allocation14 + $0x108] ss:$16 sps:$4 sm:$0xff]   ;;  %v8254_v25 = vld [vmem:[#allocation16 + $0x1c0] sm:$0xff]  }
 0xfbe   :  { %6046 = vmatprep.subr.bf16.mxu1 %v8215_v21  ;;  %v8225_v36 = vld [vmem:[#allocation16 + $0x178] sm:$0xff]   ;;  %v8256_v50 = vld [vmem:[#allocation16 + $0x180] sm:$0xff]  }
 0xfbf   :  { %v5656_v4 = vsel %vm2501_vm5, %v5654_v5, %v8015_v47  ;;  %v5657_v48 = vsel %vm2501_vm5, %v5655_v9, %v8016_v12  ;;  %v8226_v23 = vld [vmem:[#allocation16 + $0x1f8] sm:$0xff]  }
 0xfc0   :  { %v5658_v20 = vpack.c.bf16 %v5657_v48, %v5656_v4 }
 0xfc1   :  { %6047 = vmatpush1.bf16.msra.mxu1 %v8213_v28 }
 0xfc2   :  { %7952 = vmatmul.mubr.bf16.vlgmr.msra.gmra.mxu0 %v5658_v20  ;;  %6048 = vmatprep.subr.bf16.mxu1 %v8221_v44 }
 0xfc3   :  { %6109 = vmatprep.mubr.bf16.mxu0 %v8617_v0  ;;  %6078 = vmatpush1.bf16.msra.mxu0 %v8180_v37 }
 0xfc4   :  { %6079 = vmatprep.subr.bf16.mxu0 %v8188_v63  ;;  %v8241_v63 = vld [vmem:[#allocation16 + $0x158] sm:$0xff]  }
 0xfc5   :  { %6049 = vmatpush1.bf16.msra.mxu1 %v8219_v26 }
 0xfc6   :  { %7639 = vmatprep.subr.bf16.mxu1 %v8225_v36 }
 0xfc7   :  { %6080 = vmatpush1.bf16.msra.mxu0 %v8186_v34  ;;  %v8240_v34 = vld [vmem:[#allocation16 + $0x1a0] sm:$0xff]  }
 0xfc8   :  { %6081 = vmatprep.subr.bf16.mxu0 %v8194_v35  ;;  %v8245_v35 = vld [vmem:[#allocation16 + $0x150] sm:$0xff]  }
 0xfcb   :  { %6082 = vmatpush1.bf16.msra.mxu0 %v8192_v13  ;;  %v8244_v13 = vld [vmem:[#allocation16 + $0x198] sm:$0xff]  }
 0xfcc   :  { %6083 = vmatprep.subr.bf16.mxu0 %v8200_v1  ;;  %v8247_v1 = vld [vmem:[#allocation16 + $0x110] sm:$0xff]  }
 0xfcf   :  { %6084 = vmatpush1.bf16.msra.mxu0 %v8198_v62  ;;  %v8249_v62 = vld [vmem:[#allocation16 + $0x148] sm:$0xff]  }
 0xfd0   :  { %6085 = vmatprep.subr.bf16.mxu0 %v8206_v30  ;;  %v8251_v30 = vld [vmem:[#allocation16 + $0x108] sm:$0xff]  }
 0xfd3   :  { %6086 = vmatpush1.bf16.msra.mxu0 %v8204_v41  ;;  %v8253_v41 = vld [vmem:[#allocation16 + $0x140] sm:$0xff]  }
 0xfd4   :  { %6087 = vmatprep.subr.bf16.mxu0 %v8212_v52  ;;  %v8255_v52 = vld [vmem:[#allocation16 + $0x100] sm:$0xff]  }
 0xfd7   :  { %6088 = vmatpush1.bf16.msra.mxu0 %v8210_v8  ;;  %v7361_v8 = vld [vmem:[%s9761_s8 + $0x4] sm:$0xf] }
 0xfd8   :  { %6089 = vmatprep.subr.bf16.mxu0 %v8218_v7  ;;  %v5861_v28 = vrot.slane %v7361_v8, %v8771_v31  ;;  %v5857_v44 = vrot.slane %v7361_v8, %v8781_v33 }
 0xfdb   :  { %6090 = vmatpush1.bf16.msra.mxu0 %v8216_v24  ;;  %v5869_v24 = vrot.slane %v7361_v8, %v9216_v42 }
 0xfdc   :  { %6091 = vmatprep.subr.bf16.mxu0 %v8224_v59  ;;  %v5865_v59 = vrot.slane %v7361_v8, %v8955_v58 }
 0xfdf   :  { %6092 = vmatpush1.bf16.msra.mxu0 %v8222_v22 }
 0xfe0   :  { %7661 = vmatprep.subr.bf16.mxu0 %v8226_v23 }
0x1082   :  { %v5766_v3 = vpop.f32.mrf.mxu0 }
0x1083   :  { %v5767_v45 = vadd.f32 %v7350_v15, %v5766_v3  ;;  %v7359_v3 = vld [vmem:[#allocation11 + $0x1] ss:$0 sm:$0xff] }
0x1084   :  { %v7953_v43 = vpop.f32.mrf.mxu0 }
0x1085   :  { %v5773_v17 = vadd.f32 %v5767_v45, %v9255_v32 }
0x1086   :  { %v5769_v46 = vpop.f32.mrf.mxu0 }
0x1087   :  { %v5770_v49 = vadd.f32 %v7350_v15, %v5769_v46  ;;  %5779 = vadd.xlane.f32.xlu0 %v5773_v17  ;;  %v7360_v46 = vld [vmem:[#allocation13 + $0x1] ss:$0 sm:$0xff] }
0x1088   :  { %v7954_v51 = vpop.f32.mrf.mxu0 }
0x1089   :  { %v5774_v53 = vadd.f32 %v5770_v49, %v9257_v14 }
0x108b   :  { %5781 = vadd.xlane.f32.xlu1 %v5774_v53 }
0x1110   :  { %v5780_v61 = vpop.xlane.xlu0 %5779 }
0x1111   :  { %v5783_v27 = vmul.f32 0.0078125, %v5780_v61  ;;  %v8230_v61 = vld [vmem:[#allocation16 + $0x1f0] sm:$0xff]  }
0x1113   :  { %v9665_v38 = vsub.f32 %v5773_v17, %v5783_v27  ;;  %v8231_v27 = vld [vmem:[#allocation16 + $0x130] sm:$0xff]  }
0x1114   :  { %v5782_v32 = vpop.xlane.xlu1 %5781 }
0x1115   :  { %v5784_v10 = vmul.f32 0.0078125, %v5782_v32  ;;  %v5787_v57 = vmul.f32 %v9665_v38, %v9665_v38  ;;  %v8233_v32 = vld [vmem:[#allocation16 + $0x168] sm:$0xff]  }
0x1117   :  { %v9669_v11 = vsub.f32 %v5774_v53, %v5784_v10  ;;  %5789 = vadd.xlane.f32.xlu0 %v5787_v57  ;;  %v8234_v10 = vld [vmem:[#allocation16 + $0x1e8] sm:$0xff]  }
0x1118   :  { %v8235_v57 = vld [vmem:[#allocation16 + $0x128] sm:$0xff]  }
0x1119   :  { %v5788_v14 = vmul.f32 %v9669_v11, %v9669_v11 }
0x111b   :  { %5791 = vadd.xlane.f32.xlu0 %v5788_v14  ;;  %v8237_v14 = vld [vmem:[#allocation16 + $0x160] sm:$0xff]  }
0x11a0   :  { %v5790_v12 = vpop.xlane.xlu0 %5789 }
0x11a1   :  { %v5793_v47 = vmul.f32 0.0078125, %v5790_v12 }
0x11a3   :  { %v5795_v5 = vadd.f32 1e-05, %v5793_v47 }
0x11a4   :  { %v5792_v9 = vpop.xlane.xlu0 %5791 }
0x11a5   :  { %8329 = vrsqrt.f32 %v5795_v5  ;;  %v5794_v4 = vmul.f32 0.0078125, %v5792_v9 }
0x11a7   :  { %v5796_v48 = vadd.f32 1e-05, %v5794_v4 }
0x11a9   :  { %8331 = vrsqrt.f32 %v5796_v48 }
0x11b2   :  { %v8330_v20 = vpop.eup %8329 }
0x11b3   :  { %v5799_v15 = vmul.f32 %v8330_v20, %v9665_v38  ;;  %v8232_v38 = vld [vmem:[#allocation16 + $0x1b0] sm:$0xff]  }
0x11b5   :  { %v5807_v17 = vmul.f32 %v7359_v3, %v5799_v15 }
0x11b6   :  { %v8332_v45 = vpop.eup %8331 }
0x11b7   :  { %v5800_v43 = vmul.f32 %v8332_v45, %v9669_v11  ;;  %v9675_v51 = vadd.f32 %v7360_v46, %v5807_v17  ;;  %v8236_v11 = vld [vmem:[#allocation16 + $0x1a8] sm:$0xff]  }
0x11b9   :  { %v5808_v49 = vmul.f32 %v7359_v3, %v5800_v43 }
0x11bb   :  { %v9677_v53 = vadd.f32 %v7360_v46, %v5808_v49 }
0x11bd   :  { %v5817_v37 = vpack.c.bf16 %v9677_v53, %v9675_v51 }
0x11bf   :  { %6067 = vmatmul.mubr.bf16.vlgmr.msra.gmra.mxu1 %v5817_v37  ;;  %6110 = vmatmul.mubr.bf16.vlgmr.msra.gmra.mxu0 %v5817_v37 }
0x11c0   :  { %7640 = vmatpush3.bf16.msra.mxu1 %v8227_v55  ;;  %7662 = vmatpush3.bf16.msra.mxu0 %v8228_v56 }
0x11c1   :  { %7641 = vmatprep.subr.bf16.mxu1 %v8229_v60  ;;  %7663 = vmatprep.subr.bf16.mxu0 %v8230_v61 }
0x11c4   :  { %7642 = vmatpush3.bf16.msra.mxu1 %v8231_v27  ;;  %7664 = vmatpush3.bf16.msra.mxu0 %v8232_v38 }
0x11c5   :  { %7643 = vmatprep.subr.bf16.mxu1 %v8233_v32  ;;  %7665 = vmatprep.subr.bf16.mxu0 %v8234_v10 }
0x11c8   :  { %7644 = vmatpush3.bf16.msra.mxu1 %v8235_v57  ;;  %7666 = vmatpush3.bf16.msra.mxu0 %v8236_v11  ;;  %v7395_v11 = vld [vmem:[%s9763_s10 + $0x1] ss:$0 sm:$0xff] }
0x11c9   :  { %7645 = vmatprep.subr.bf16.mxu1 %v8237_v14  ;;  %7667 = vmatprep.subr.bf16.mxu0 %v8238_v16 }
0x11cc   :  { %7646 = vmatpush3.bf16.msra.mxu1 %v8239_v18  ;;  %7668 = vmatpush3.bf16.msra.mxu0 %v8240_v34 }
0x11cd   :  { %7647 = vmatprep.subr.bf16.mxu1 %v8241_v63  ;;  %7669 = vmatprep.subr.bf16.mxu0 %v8242_v19 }
0x11d0   :  { %7648 = vmatpush3.bf16.msra.mxu1 %v8243_v6  ;;  %7670 = vmatpush3.bf16.msra.mxu0 %v8244_v13 }
0x11d1   :  { %7649 = vmatprep.subr.bf16.mxu1 %v8245_v35  ;;  %7671 = vmatprep.subr.bf16.mxu0 %v8246_v54 }
0x11d4   :  { %7650 = vmatpush3.bf16.msra.mxu1 %v8247_v1  ;;  %7672 = vmatpush3.bf16.msra.mxu0 %v8248_v2 }
0x11d5   :  { %7651 = vmatprep.subr.bf16.mxu1 %v8249_v62  ;;  %7673 = vmatprep.subr.bf16.mxu0 %v8250_v40 }
0x11d8   :  { %7652 = vmatpush3.bf16.msra.mxu1 %v8251_v30  ;;  %7674 = vmatpush3.bf16.msra.mxu0 %v8252_v39 }
0x11d9   :  { %7653 = vmatprep.subr.bf16.mxu1 %v8253_v41  ;;  %7675 = vmatprep.subr.bf16.mxu0 %v8254_v25  ;;  %v6580_v41 = vld [vmem:[#allocation19 + $0x1c0] sm:$0xff] }
0x11da   :  { %v6584_v25 = vld [vmem:[#allocation19 + $0x1e0] sm:$0xff] }
0x11db   :  { %v7488_v8 = vcombine.high %v6580_v41, %v6584_v25 }
0x11dc   :  { %7654 = vmatpush3.bf16.msra.mxu1 %v8255_v52  ;;  %7676 = vmatpush3.bf16.msra.mxu0 %v8256_v50  ;;  %v6581_v52 = vld [vmem:[#allocation19 + $0x1c8] sm:$0xff]  ;;  %v7487_v50 = vcombine.low %v6580_v41, %v6584_v25  ;;  %v6532_v25 = vld [vmem:[#allocation19 + $0x40] sm:$0xff] }
0x11dd   :  { %6950 = vmatprep.subr.bf16.mxu1 %v7488_v8  ;;  %v6533_v8 = vld [vmem:[#allocation19 + $0x48] sm:$0xff] }
0x127f   :  { %v6068_v21 = vpop.f32.mrf.mxu1  ;;  %v6111_v7 = vpop.f32.mrf.mxu0 }
0x1280   :  { %v6069_v4 = vadd.f32 %v6068_v21, %v5857_v44  ;;  %v6112_v48 = vadd.f32 %v6111_v7, %v5865_v59  ;;  %v6585_v21 = vld [vmem:[#allocation19 + $0x1e8] sm:$0xff] }
0x1281   :  { %v6070_v26 = vpop.f32.mrf.mxu1  ;;  %v6113_v22 = vpop.f32.mrf.mxu0  ;;  %v7489_v7 = vcombine.low %v6581_v52, %v6585_v21 }
0x1282   :  { %v6071_v12 = vadd.f32 %v6070_v26, %v5861_v28  ;;  %v6114_v47 = vadd.f32 %v6113_v22, %v5869_v24  ;;  %v6120_v37 = vmax.f32 %v6069_v4, 0.0  ;;  %v6122_v60 = vmax.f32 %v6112_v48, 0.0  ;;  %v6577_v4 = vld [vmem:[#allocation19 + $0x1a8] sm:$0xff] }
0x1283   :  { %v6072_v36 = vpop.f32.mrf.mxu1  ;;  %v6115_v23 = vpop.f32.mrf.mxu0 }
0x1284   :  { %v6073_v5 = vadd.f32 %v6072_v36, %v5857_v44  ;;  %v6116_v9 = vadd.f32 %v6115_v23, %v5865_v59  ;;  %v6121_v46 = vmax.f32 %v6071_v12, 0.0  ;;  %v6123_v49 = vmax.f32 %v6114_v47, 0.0  ;;  %v6572_v23 = vld [vmem:[#allocation19 + $0x180] sm:$0xff]  ;;  %v6573_v47 = vld [vmem:[#allocation19 + $0x188] sm:$0xff] }
0x1285   :  { %v6074_v20 = vpop.f32.mrf.mxu1  ;;  %v6117_v15 = vpop.f32.mrf.mxu0  ;;  %v6576_v12 = vld [vmem:[#allocation19 + $0x1a0] sm:$0xff]  ;;  %v7481_v48 = vcombine.low %v6573_v47, %v6577_v4 }
0x1286   :  { %v6075_v3 = vadd.f32 %v6074_v20, %v5861_v28  ;;  %v6118_v45 = vadd.f32 %v6117_v15, %v5869_v24  ;;  %v6124_v43 = vmax.f32 %v6073_v5, 0.0  ;;  %v6126_v17 = vmax.f32 %v6116_v9, 0.0  ;;  %v6564_v15 = vld [vmem:[#allocation19 + $0x140] sm:$0xff] }
0x1287   :  { %v7490_v28 = vcombine.high %v6581_v52, %v6585_v21  ;;  %v7479_v5 = vcombine.low %v6572_v23, %v6576_v12  ;;  %v7480_v9 = vcombine.high %v6572_v23, %v6576_v12  ;;  %v7482_v20 = vcombine.high %v6573_v47, %v6577_v4  ;;  %v6536_v52 = vld [vmem:[#allocation19 + $0x60] sm:$0xff]  ;;  %v6537_v21 = vld [vmem:[#allocation19 + $0x68] sm:$0xff] }
0x1288   :  { %v6125_v55 = vmax.f32 %v6075_v3, 0.0  ;;  %v6127_v56 = vmax.f32 %v6118_v45, 0.0  ;;  %v6128_v38 = vpack.c.bf16 %v6124_v43, %v6120_v37  ;;  %v6130_v32 = vpack.c.bf16 %v6126_v17, %v6122_v60  ;;  %v6568_v3 = vld [vmem:[#allocation19 + $0x160] sm:$0xff]  ;;  %v6565_v45 = vld [vmem:[#allocation19 + $0x148] sm:$0xff] }
0x1289   :  { %6993 = vmatprep.subr.bf16.mxu0 %v7490_v28  ;;  %v7471_v43 = vcombine.low %v6564_v15, %v6568_v3  ;;  %v7472_v17 = vcombine.high %v6564_v15, %v6568_v3  ;;  %v7439_v23 = vcombine.low %v6532_v25, %v6536_v52  ;;  %v7441_v12 = vcombine.low %v6533_v8, %v6537_v21 }
0x128a   :  { %v6129_v61 = vpack.c.bf16 %v6125_v55, %v6121_v46  ;;  %v6131_v27 = vpack.c.bf16 %v6127_v56, %v6123_v49  ;;  %v6569_v46 = vld [vmem:[#allocation19 + $0x168] sm:$0xff]  ;;  %v6556_v49 = vld [vmem:[#allocation19 + $0x100] sm:$0xff] }
0x128b   :  { %v6560_v55 = vld [vmem:[#allocation19 + $0x120] sm:$0xff]  ;;  %v7473_v56 = vcombine.low %v6565_v45, %v6569_v46  ;;  %v7474_v37 = vcombine.high %v6565_v45, %v6569_v46 }
0x128c   :  { %6429 = vmatprep.mubr.bf16.mxu1 %v6129_v61  ;;  %6470 = vmatprep.mubr.bf16.mxu0 %v6131_v27  ;;  %v7464_v60 = vcombine.high %v6556_v49, %v6560_v55  ;;  %v6557_v61 = vld [vmem:[#allocation19 + $0x108] sm:$0xff] }
0x128d   :  { %6430 = vmatmul.mubr.bf16.vlgmr.msra.gmra.mxu1 %v6128_v38  ;;  %6471 = vmatmul.mubr.bf16.vlgmr.msra.gmra.mxu0 %v6130_v32  ;;  %v6561_v27 = vld [vmem:[#allocation19 + $0x128] sm:$0xff]  ;;  %v6548_v38 = vld [vmem:[#allocation19 + $0xc0] sm:$0xff] }
0x128e   :  { %6982 = vmatprep.mubr.bf16.mxu1 %v8617_v0  ;;  %7025 = vmatprep.mubr.bf16.mxu0 %v8617_v0  ;;  %v7466_v32 = vcombine.high %v6557_v61, %v6561_v27 }
0x128f   :  { %6951 = vmatpush1.bf16.msra.mxu1 %v7487_v50  ;;  %6994 = vmatpush1.bf16.msra.mxu0 %v7489_v7 }
0x1290   :  { %6952 = vmatprep.subr.bf16.mxu1 %v7480_v9  ;;  %6995 = vmatprep.subr.bf16.mxu0 %v7482_v20 }
0x1293   :  { %6953 = vmatpush1.bf16.msra.mxu1 %v7479_v5  ;;  %6996 = vmatpush1.bf16.msra.mxu0 %v7481_v48 }
0x1294   :  { %6954 = vmatprep.subr.bf16.mxu1 %v7472_v17  ;;  %6997 = vmatprep.subr.bf16.mxu0 %v7474_v37 }
0x1297   :  { %6955 = vmatpush1.bf16.msra.mxu1 %v7471_v43  ;;  %6998 = vmatpush1.bf16.msra.mxu0 %v7473_v56  ;;  %v7429_v56 = vld [vmem:[%s9764_s11 + $0x1] ss:$0 sm:$0xff] }
0x1298   :  { %6956 = vmatprep.subr.bf16.mxu1 %v7464_v60  ;;  %6999 = vmatprep.subr.bf16.mxu0 %v7466_v32  ;;  %v6574_v32 = vld [vmem:[#allocation19 + $0x190] sm:$0xff] }
0x134d   :  { %v7655_v10 = vpop.f32.mrf.mxu1  ;;  %v7677_v57 = vpop.f32.mrf.mxu0 }
0x134f   :  { %v7656_v14 = vpop.f32.mrf.mxu1  ;;  %v7678_v16 = vpop.f32.mrf.mxu0 }
0x1350   :  { %v7657_v18 = vadd.f32 %v7656_v14, %v7655_v10  ;;  %v7679_v6 = vadd.f32 %v7678_v16, %v7677_v57  ;;  %v6552_v10 = vld [vmem:[#allocation19 + $0xe0] sm:$0xff]  ;;  %v6549_v57 = vld [vmem:[#allocation19 + $0xc8] sm:$0xff]  ;;  %v7463_v14 = vcombine.low %v6556_v49, %v6560_v55  ;;  %v7465_v16 = vcombine.low %v6557_v61, %v6561_v27  ;;  %v7430_v27 = vld [vmem:[#allocation17 + $0x1] ss:$0 sm:$0xff] }
0x1351   :  { %v7658_v34 = vpop.f32.mrf.mxu1  ;;  %v7680_v63 = vpop.f32.mrf.mxu0 }
0x1352   :  { %v6432_v19 = vadd.f32 %v7657_v18, %v7395_v11  ;;  %v7456_v18 = vcombine.high %v6548_v38, %v6552_v10  ;;  %6957 = vmatpush1.bf16.msra.mxu1 %v7463_v14  ;;  %7000 = vmatpush1.bf16.msra.mxu0 %v7465_v16 }
0x1353   :  { %v7659_v13 = vpop.f32.mrf.mxu1  ;;  %v7681_v35 = vpop.f32.mrf.mxu0 }
0x1354   :  { %v6473_v54 = vadd.f32 %v7679_v6, %v6432_v19  ;;  %v7660_v1 = vadd.f32 %v7659_v13, %v7658_v34  ;;  %v7682_v62 = vadd.f32 %v7681_v35, %v7680_v63  ;;  %v6540_v63 = vld [vmem:[#allocation19 + $0x80] sm:$0xff]  ;;  %v6541_v6 = vld [vmem:[#allocation19 + $0x88] sm:$0xff]  ;;  %v7455_v35 = vcombine.low %v6548_v38, %v6552_v10  ;;  %6958 = vmatprep.subr.bf16.mxu1 %v7456_v18  ;;  %v6578_v10 = vld [vmem:[#allocation19 + $0x1b0] sm:$0xff] }
0x1355   :  { %v6544_v19 = vld [vmem:[#allocation19 + $0xa0] sm:$0xff]  ;;  %v6545_v13 = vld [vmem:[#allocation19 + $0xa8] sm:$0xff] }
0x1356   :  { %v6435_v2 = vadd.f32 %v7660_v1, %v7395_v11  ;;  %v6479_v40 = vadd.f32 %v6473_v54, %v9675_v51  ;;  %v6553_v11 = vld [vmem:[#allocation19 + $0xe8] sm:$0xff]  ;;  %v9703_v54 = vld [vmem:[#allocation19 + $0x1d0] sm:$0xff]  ;;  %v7450_v41 = vcombine.high %v6541_v6, %v6545_v13  ;;  %6959 = vmatpush1.bf16.msra.mxu1 %v7455_v35  ;;  %v7447_v7 = vcombine.low %v6540_v63, %v6544_v19 }
0x1357   :  { %v7458_v34 = vcombine.high %v6549_v57, %v6553_v11  ;;  %v9705_v1 = vld [vmem:[#allocation19 + $0x1f0] sm:$0xff]  ;;  %v7449_v28 = vcombine.low %v6541_v6, %v6545_v13  ;;  %v6567_v6 = vld [vmem:[#allocation19 + $0x158] sm:$0xff] }
0x1358   :  { %v6476_v30 = vadd.f32 %v7682_v62, %v6435_v2  ;;  %6485 = vadd.xlane.f32.xlu1 %v6479_v40  ;;  %v9707_v2 = vld [vmem:[#allocation19 + $0x1d8] sm:$0xff]  ;;  %v7457_v62 = vcombine.low %v6549_v57, %v6553_v11  ;;  %v7492_v48 = vcombine.high %v9703_v54, %v9705_v1 }
0x1359   :  { %7001 = vmatprep.subr.bf16.mxu0 %v7458_v34  ;;  %v6575_v57 = vld [vmem:[#allocation19 + $0x198] sm:$0xff]  ;;  %v7484_v34 = vcombine.high %v6574_v32, %v6578_v10 }
0x135a   :  { %v6480_v39 = vadd.f32 %v6476_v30, %v9677_v53  ;;  %v7491_v30 = vcombine.low %v9703_v54, %v9705_v1  ;;  %7002 = vmatpush1.bf16.msra.mxu0 %v7457_v62  ;;  %v6579_v11 = vld [vmem:[#allocation19 + $0x1b8] sm:$0xff] }
0x135b   :  { %7003 = vmatprep.subr.bf16.mxu0 %v7450_v41  ;;  %v6571_v13 = vld [vmem:[#allocation19 + $0x178] sm:$0xff]  ;;  %v7485_v35 = vcombine.low %v6575_v57, %v6579_v11  ;;  %v6558_v41 = vld [vmem:[#allocation19 + $0x110] sm:$0xff] }
0x135c   :  { %6487 = vadd.xlane.f32.xlu0 %v6480_v39  ;;  %v7477_v1 = vcombine.low %v6567_v6, %v6571_v13 }
0x135e   :  { %7004 = vmatpush1.bf16.msra.mxu0 %v7449_v28 }
0x13e1   :  { %v6486_v24 = vpop.xlane.xlu1 %6485 }
0x13e2   :  { %v6489_v44 = vmul.f32 0.0078125, %v6486_v24  ;;  %v7440_v24 = vcombine.high %v6532_v25, %v6536_v52  ;;  %v6562_v25 = vld [vmem:[#allocation19 + $0x130] sm:$0xff]  ;;  %v6559_v52 = vld [vmem:[#allocation19 + $0x118] sm:$0xff] }
0x13e3   :  { %v7467_v28 = vcombine.low %v6558_v41, %v6562_v25 }
0x13e4   :  { %v9695_v51 = vsub.f32 %v6479_v40, %v6489_v44  ;;  %v7448_v40 = vcombine.high %v6540_v63, %v6544_v19  ;;  %v7442_v44 = vcombine.high %v6533_v8, %v6537_v21  ;;  %v6566_v63 = vld [vmem:[#allocation19 + $0x150] sm:$0xff]  ;;  %v6563_v8 = vld [vmem:[#allocation19 + $0x138] sm:$0xff] }
0x13e5   :  { %v6488_v59 = vpop.xlane.xlu0 %6487  ;;  %v6570_v19 = vld [vmem:[#allocation19 + $0x170] sm:$0xff]  ;;  %v6551_v21 = vld [vmem:[#allocation19 + $0xd8] sm:$0xff] }
0x13e6   :  { %v6490_v26 = vmul.f32 0.0078125, %v6488_v59  ;;  %v6493_v53 = vmul.f32 %v9695_v51, %v9695_v51  ;;  %6960 = vmatprep.subr.bf16.mxu1 %v7448_v40  ;;  %v6524_v59 = vld [vmem:[#allocation19] sm:$0xff]  ;;  %7005 = vmatprep.subr.bf16.mxu0 %v7442_v44  ;;  %v7476_v62 = vcombine.high %v6566_v63, %v6570_v19  ;;  %v7478_v40 = vcombine.high %v6567_v6, %v6571_v13 }
0x13e7   :  { %6961 = vmatpush1.bf16.msra.mxu1 %v7447_v7  ;;  %7006 = vmatpush1.bf16.msra.mxu0 %v7441_v12  ;;  %v7475_v54 = vcombine.low %v6566_v63, %v6570_v19  ;;  %v6555_v7 = vld [vmem:[#allocation19 + $0xf8] sm:$0xff] }
0x13e8   :  { %v9699_v22 = vsub.f32 %v6480_v39, %v6490_v26  ;;  %6495 = vadd.xlane.f32.xlu1 %v6493_v53  ;;  %v9711_v39 = vld [vmem:[#allocation19 + $0x1f8] sm:$0xff]  ;;  %v6528_v26 = vld [vmem:[#allocation19 + $0x20] sm:$0xff]  ;;  %v6525_v53 = vld [vmem:[#allocation19 + $0x8] sm:$0xff]  ;;  %6962 = vmatprep.subr.bf16.mxu1 %v7440_v24  ;;  %v7469_v24 = vcombine.low %v6559_v52, %v6563_v8  ;;  %v7461_v12 = vcombine.low %v6551_v21, %v6555_v7 }
0x13e9   :  { %v7493_v50 = vcombine.low %v9707_v2, %v9711_v39  ;;  %v7432_v47 = vcombine.high %v6524_v59, %v6528_v26  ;;  %v7431_v9 = vcombine.low %v6524_v59, %v6528_v26  ;;  %v7494_v20 = vcombine.high %v9707_v2, %v9711_v39  ;;  %v6550_v39 = vld [vmem:[#allocation19 + $0xd0] sm:$0xff] }
0x13ea   :  { %v6494_v36 = vmul.f32 %v9699_v22, %v9699_v22  ;;  %v7468_v2 = vcombine.high %v6558_v41, %v6562_v25  ;;  %v6542_v59 = vld [vmem:[#allocation19 + $0x90] sm:$0xff]  ;;  %v6608_v41 = vsub.s32 4, %v8767_v29  ;;  %v6616_v25 = vsub.s32 6, %v8767_v29 }
0x13eb   :  { %6963 = vmatpush1.bf16.msra.mxu1 %v7439_v23  ;;  %v6546_v26 = vld [vmem:[#allocation19 + $0xb0] sm:$0xff] }
0x13ec   :  { %6497 = vadd.xlane.f32.xlu0 %v6494_v36  ;;  %v6529_v36 = vld [vmem:[#allocation19 + $0x28] sm:$0xff]  ;;  %6964 = vmatprep.subr.bf16.mxu1 %v7432_v47  ;;  %v7452_v47 = vcombine.high %v6542_v59, %v6546_v26 }
0x13ed   :  { %v7434_v5 = vcombine.high %v6525_v53, %v6529_v36  ;;  %v7433_v4 = vcombine.low %v6525_v53, %v6529_v36  ;;  %v6543_v53 = vld [vmem:[#allocation19 + $0x98] sm:$0xff] }
0x13ee   :  { %v6547_v36 = vld [vmem:[#allocation19 + $0xb8] sm:$0xff] }
0x13ef   :  { %7007 = vmatprep.subr.bf16.mxu0 %v7434_v5  ;;  %6965 = vmatpush1.bf16.msra.mxu1 %v7431_v9  ;;  %v7454_v5 = vcombine.high %v6543_v53, %v6547_v36  ;;  %v6534_v9 = vld [vmem:[#allocation19 + $0x50] sm:$0xff] }
0x13f0   :  { %7008 = vmatpush1.bf16.msra.mxu0 %v7433_v4  ;;  %7036 = vmatprep.subr.bf16.mxu1 %v7492_v48  ;;  %v6538_v4 = vld [vmem:[#allocation19 + $0x70] sm:$0xff]  ;;  %v6535_v48 = vld [vmem:[#allocation19 + $0x58] sm:$0xff] }
0x13f1   :  { %7079 = vmatprep.subr.bf16.mxu0 %v7494_v20  ;;  %v6539_v20 = vld [vmem:[#allocation19 + $0x78] sm:$0xff] }
0x1471   :  { %v6496_v15 = vpop.xlane.xlu1 %6495 }
0x1472   :  { %v6499_v3 = vmul.f32 0.0078125, %v6496_v15  ;;  %v7451_v15 = vcombine.low %v6542_v59, %v6546_v26 }
0x1474   :  { %v6501_v45 = vadd.f32 1e-05, %v6499_v3  ;;  %v7453_v3 = vcombine.low %v6543_v53, %v6547_v36 }
0x1475   :  { %v6498_v43 = vpop.xlane.xlu0 %6497 }
0x1476   :  { %8333 = vrsqrt.f32 %v6501_v45  ;;  %v6500_v17 = vmul.f32 0.0078125, %v6498_v43  ;;  %v7444_v45 = vcombine.high %v6534_v9, %v6538_v4  ;;  %v7446_v43 = vcombine.high %v6535_v48, %v6539_v20 }
0x1478   :  { %v6502_v46 = vadd.f32 1e-05, %v6500_v17  ;;  %v6526_v17 = vld [vmem:[#allocation19 + $0x10] sm:$0xff] }
0x147a   :  { %8335 = vrsqrt.f32 %v6502_v46  ;;  %v6530_v46 = vld [vmem:[#allocation19 + $0x30] sm:$0xff] }
0x1483   :  { %v8334_v49 = vpop.eup %8333 }
0x1484   :  { %v6505_v55 = vmul.f32 %v8334_v49, %v9695_v51  ;;  %v7486_v51 = vcombine.high %v6575_v57, %v6579_v11  ;;  %v6527_v49 = vld [vmem:[#allocation19 + $0x18] sm:$0xff] }
0x1486   :  { %v6513_v61 = vmul.f32 %v7429_v56, %v6505_v55  ;;  %v6531_v55 = vld [vmem:[#allocation19 + $0x38] sm:$0xff] }
0x1487   :  { %v8336_v37 = vpop.eup %8335 }
0x1488   :  { %v6506_v60 = vmul.f32 %v8336_v37, %v9699_v22  ;;  %v6521_v14 = vadd.f32 %v7430_v27, %v6513_v61  ;;  %v7483_v22 = vcombine.low %v6574_v32, %v6578_v10  ;;  %v7445_v37 = vcombine.low %v6535_v48, %v6539_v20  ;;  %v6588_v32 = vld [vmem:[%s9767_s14] sm:$0xff]  ;;  %s8623_s14 = smov [#allocation20]  }
0x1489   :  { %v7438_v61 = vcombine.high %v6527_v49, %v6531_v55  ;;  %v6593_v10 = vrot.slane %v6588_v32, %v8781_v33  ;;  %v6601_v57 = vrot.slane %v6588_v32, %v8955_v58  ;;  %v6597_v11 = vrot.slane %v6588_v32, %v8771_v31  ;;  %s7143_s3 = sshll.u32 %s8623_s14, 4  ;;  %s7144_s3 = int_to_ptr.vmem [resolvable:$true] %s7143_s3 }
0x148a   :  { %v6514_v38 = vmul.f32 %v7429_v56, %v6506_v60  ;;  %v7443_v56 = vcombine.low %v6534_v9, %v6538_v4  ;;  %v7436_v60 = vcombine.high %v6526_v17, %v6530_v46  ;;  %s8559_s24 = scalar_lea.vmem %s7144_s3, 2048  ;;  %p8564_p0 = scmp.lt.s32.totalorder %s7144_s3, %s7144_s3 }
0x148b   :  { %p8560_p13 = scmp.ne.s32.totalorder %s7144_s3, %s8559_s24  ;;  %p8565_p1 = scmp.lt.s32.totalorder %s8559_s24, %s8559_s24 }
0x148c   :  { %v6522_v16 = vadd.f32 %v7430_v27, %v6514_v38  ;;  %v7435_v27 = vcombine.low %v6526_v17, %v6530_v46  ;;  %v7437_v38 = vcombine.low %v6527_v49, %v6531_v55 }
0x148d   :  { %p8566_p2 = por %p8565_p1, %p8564_p0 }
0x148e   :  { %v9724_v18 = vpack.c.bf16 %v6522_v16, %v6521_v14  ;;  %v6605_v14 = vrot.slane %v6588_v32, %v9216_v42 }
0x148f   :  { %p8567_p3 = pnand %p8566_p2, %p8560_p13 }
0x1490   :  { %6983 = vmatmul.mubr.bf16.vlgmr.msra.gmra.mxu1 %v9724_v18  ;;  %7026 = vmatmul.mubr.bf16.vlgmr.msra.gmra.mxu0 %v9724_v18 }
0x1491   :  { %7037 = vmatpush1.bf16.msra.mxu1 %v7491_v30  ;;  %7080 = vmatpush1.bf16.msra.mxu0 %v7493_v50  ;;  %v7470_v30 = vcombine.high %v6559_v52, %v6563_v8  ;;  %v6554_v50 = vld [vmem:[#allocation19 + $0xf0] sm:$0xff]  ;;  %v6612_v52 = vsub.s32 5, %v8767_v29  ;;  %v6620_v8 = vsub.s32 7, %v8767_v29 }
0x1492   :  { %7038 = vmatprep.subr.bf16.mxu1 %v7484_v34  ;;  %7081 = vmatprep.subr.bf16.mxu0 %v7486_v51  ;;  %v7460_v44 = vcombine.high %v6550_v39, %v6554_v50  ;;  %v7459_v23 = vcombine.low %v6550_v39, %v6554_v50 }
0x1493   :  { %7068 = vmatprep.mubr.bf16.mxu1 %v8617_v0  ;;  %7111 = vmatprep.mubr.bf16.mxu0 %v8617_v0  ;;  %v7462_v0 = vcombine.high %v6551_v21, %v6555_v7 }
0x1495   :  { %7039 = vmatpush1.bf16.msra.mxu1 %v7483_v22  ;;  %7082 = vmatpush1.bf16.msra.mxu0 %v7485_v35 }
0x1496   :  { %7040 = vmatprep.subr.bf16.mxu1 %v7476_v62  ;;  %7083 = vmatprep.subr.bf16.mxu0 %v7478_v40 }
0x1499   :  { %7041 = vmatpush1.bf16.msra.mxu1 %v7475_v54  ;;  %7084 = vmatpush1.bf16.msra.mxu0 %v7477_v1  ;;  %v6609_v54 = vrot.slane %v6588_v32, %v6608_v41  ;;  %v6617_v1 = vrot.slane %v6588_v32, %v6616_v25 }
0x149a   :  { %7042 = vmatprep.subr.bf16.mxu1 %v7468_v2  ;;  %7085 = vmatprep.subr.bf16.mxu0 %v7470_v30  ;;  %v6613_v2 = vrot.slane %v6588_v32, %v6612_v52  ;;  %v6621_v30 = vrot.slane %v6588_v32, %v6620_v8 }
0x149d   :  { %7043 = vmatpush1.bf16.msra.mxu1 %v7467_v28  ;;  %7086 = vmatpush1.bf16.msra.mxu0 %v7469_v24 }
0x149e   :  { %7044 = vmatprep.subr.bf16.mxu1 %v7460_v44  ;;  %7087 = vmatprep.subr.bf16.mxu0 %v7462_v0 }
0x14a1   :  { %7045 = vmatpush1.bf16.msra.mxu1 %v7459_v23  ;;  %7088 = vmatpush1.bf16.msra.mxu0 %v7461_v12 }
0x14a2   :  { %7046 = vmatprep.subr.bf16.mxu1 %v7452_v47  ;;  %7089 = vmatprep.subr.bf16.mxu0 %v7454_v5 }
0x14a5   :  { %7047 = vmatpush1.bf16.msra.mxu1 %v7451_v15  ;;  %7090 = vmatpush1.bf16.msra.mxu0 %v7453_v3 }
0x14a6   :  { %7048 = vmatprep.subr.bf16.mxu1 %v7444_v45  ;;  %7091 = vmatprep.subr.bf16.mxu0 %v7446_v43 }
0x14a9   :  { %7049 = vmatpush1.bf16.msra.mxu1 %v7443_v56  ;;  %7092 = vmatpush1.bf16.msra.mxu0 %v7445_v37 }
0x14aa   :  { %7050 = vmatprep.subr.bf16.mxu1 %v7436_v60  ;;  %7093 = vmatprep.subr.bf16.mxu0 %v7438_v61 }
0x14ad   :  { %7051 = vmatpush1.bf16.msra.mxu1 %v7435_v27  ;;  %7094 = vmatpush1.bf16.msra.mxu0 %v7437_v38 }
0x14b0   :  { %7069 = vmatmul.mubr.bf16.vlgmr.msra.gmra.mxu1 %v9724_v18  ;;  %7112 = vmatmul.mubr.bf16.vlgmr.msra.gmra.mxu0 %v9724_v18 }
0x1550   :  { %v6984_v16 = vpop.f32.mrf.mxu1  ;;  %v7027_v34 = vpop.f32.mrf.mxu0 }
0x1551   :  { %v6985_v51 = vadd.f32 %v6984_v16, %v6593_v10  ;;  %v7028_v63 = vadd.f32 %v7027_v34, %v6601_v57 }
0x1552   :  { %v6986_v19 = vpop.f32.mrf.mxu1  ;;  %v7029_v6 = vpop.f32.mrf.mxu0 }
0x1553   :  { %7122 = vst [vmem:[#allocation20] sm:$0xff] %v6985_v51  ;;  %7124 = vst [vmem:[#allocation20 + $0x10] sm:$0xff] %v7028_v63  ;;  %v6987_v18 = vadd.f32 %v6986_v19, %v6597_v11  ;;  %v7030_v13 = vadd.f32 %v7029_v6, %v6605_v14 }
0x1554   :  { %v6988_v22 = vpop.f32.mrf.mxu1  ;;  %v7031_v35 = vpop.f32.mrf.mxu0 }
0x1555   :  { %7123 = vst [vmem:[#allocation20 + $0x8] sm:$0xff] %v6987_v18  ;;  %7125 = vst [vmem:[#allocation20 + $0x18] sm:$0xff] %v7030_v13  ;;  %v6989_v33 = vadd.f32 %v6988_v22, %v6593_v10  ;;  %v7032_v58 = vadd.f32 %v7031_v35, %v6601_v57 }
0x1556   :  { %v6990_v62 = vpop.f32.mrf.mxu1  ;;  %v7033_v31 = vpop.f32.mrf.mxu0 }
0x1557   :  { %7130 = vst [vmem:[#allocation20 + $0x40] sm:$0xff] %v6989_v33  ;;  %7132 = vst [vmem:[#allocation20 + $0x50] sm:$0xff] %v7032_v58  ;;  %v6991_v42 = vadd.f32 %v6990_v62, %v6597_v11  ;;  %v7034_v40 = vadd.f32 %v7033_v31, %v6605_v14 }
0x1559   :  { %7131 = vst [vmem:[#allocation20 + $0x48] sm:$0xff] %v6991_v42  ;;  %7133 = vst [vmem:[#allocation20 + $0x58] sm:$0xff] %v7034_v40 }
0x1570   :  { %v7070_v39 = vpop.f32.mrf.mxu1  ;;  %v7113_v50 = vpop.f32.mrf.mxu0 }
0x1571   :  { %v7071_v21 = vadd.f32 %v7070_v39, %v6609_v54  ;;  %v7114_v7 = vadd.f32 %v7113_v50, %v6617_v1 }
0x1572   :  { %v7072_v28 = vpop.f32.mrf.mxu1  ;;  %v7115_v24 = vpop.f32.mrf.mxu0 }
0x1573   :  { %7126 = vst [vmem:[#allocation20 + $0x20] sm:$0xff] %v7071_v21  ;;  %7128 = vst [vmem:[#allocation20 + $0x30] sm:$0xff] %v7114_v7  ;;  %v7073_v44 = vadd.f32 %v7072_v28, %v6613_v2  ;;  %v7116_v0 = vadd.f32 %v7115_v24, %v6621_v30 }
0x1574   :  { %v7074_v59 = vpop.f32.mrf.mxu1  ;;  %v7117_v26 = vpop.f32.mrf.mxu0 }
0x1575   :  { %7127 = vst [vmem:[#allocation20 + $0x28] sm:$0xff] %v7073_v44  ;;  %7129 = vst [vmem:[#allocation20 + $0x38] sm:$0xff] %v7116_v0  ;;  %v7075_v29 = vadd.f32 %v7074_v59, %v6609_v54  ;;  %v7118_v53 = vadd.f32 %v7117_v26, %v6617_v1 }
0x1576   :  { %v7076_v36 = vpop.f32.mrf.mxu1  ;;  %v7119_v23 = vpop.f32.mrf.mxu0 }
0x1577   :  { %7134 = vst [vmem:[#allocation20 + $0x60] sm:$0xff] %v7075_v29  ;;  %7136 = vst [vmem:[#allocation20 + $0x70] sm:$0xff] %v7118_v53  ;;  %v7077_v12 = vadd.f32 %v7076_v36, %v6613_v2  ;;  %v7120_v47 = vadd.f32 %v7119_v23, %v6621_v30 }
0x1579   :  { %7135 = vst [vmem:[#allocation20 + $0x68] sm:$0xff] %v7077_v12  ;;  %7137 = vst [vmem:[#allocation20 + $0x78] sm:$0xff] %v7120_v47 }
0x157a   :  { %8570 = shalt.err (!%p8567_p3)
}
0x157b   :  { %s8624_s25 = smov 1024  }
0x157c   :  { %7149 = dma.vmem_to_hbm [thread:$0]  %s7144_s3, 2048, %s9768_s15, [#allocation4], %s8624_s25, %s8624_s25, %s8597_s28  }
0x157d   :  { %8591 = dma.done.wait [#allocation4], 2048  }
0x157e   :  { %8592 = vsyncadd [#allocation4], 4294965248 }
0x157f   :  { %7153 = vsyncpa [#allocation3], 1 }
0x1580   :  { %7154 = vsyncpa [#allocation6], 1 }
0x1581   :  { %7155 = vsyncpa [#allocation9], 1 }
0x1582   :  { %7156 = vsyncpa [#allocation12], 1 }
0x1583   :  { %7157 = vsyncpa [#allocation15], 1 }
0x1584   :  { %7158 = vsyncpa [#allocation18], 1 }
0x1585   :  { %7159 = vsyncpa [#allocation4], 1 }

</bundles_post_ra>
